<compile_context>
chip_gen: v5e
topology: v5e:2x2
jax: 0.10.0
libtpu: 0.0.40
codegen_flags: <defaults>
</compile_context>

<pallas_src>
import functools
import math

import jax
import jax.numpy as jnp
from jax import lax
from jax.experimental import pallas as pl
from jax.experimental.pallas import tpu as pltpu


def _lstm_ed_kernel(x_ref, wih_e_ref, whh_e_ref, b_e_ref,
                    wih_d_ref, whh_d_ref, b_d_ref,
                    w_out_ref, b_out_ref,
                    out_ref,
                    xproj_e_ref, xproj_d_ref, h_hist_ref,
                    *, hidden_size, training, unroll):
    T, TB, F = x_ref.shape
    H = hidden_size
    G = 4 * H
    f32 = jnp.float32

    # Weights stay resident across the batch grid (constant index_map).
    wih_e = wih_e_ref[...]
    whh_e = whh_e_ref[...]
    wih_d = wih_d_ref[...]
    whh_d = whh_d_ref[...]
    w_out = w_out_ref[...]
    cdt = whh_e.dtype            # MXU input dtype (bf16 in the default config)
    b_e = b_e_ref[...]           # (1, G) f32
    b_d = b_d_ref[...]           # (1, G) f32
    b_out = b_out_ref[...]       # (1, F) f32

    # ---- hoist all non-recurrent matmuls off the serial critical path ----
    # One (T*TB, F) @ (F, 4H) matmul replaces T tiny per-step projections.
    x2 = x_ref[...].reshape(T * TB, F).astype(cdt)
    xproj_e_ref[...] = (jnp.dot(x2, wih_e, preferred_element_type=f32)
                        + b_e).reshape(T, TB, G)

    if training:
        # Teacher forcing: decoder inputs are x -> also precomputable in bulk.
        xproj_d_ref[...] = (jnp.dot(x2, wih_d, preferred_element_type=f32)
                            + b_d).reshape(T, TB, G)
        w_dec = None
        b_dec = None
    else:
        # Eval mode: decoder input is its own Linear(h) output; fold it into
        # the recurrent weight so each serial step is a single matmul:
        #   gates = h @ (whh_d + w_out @ wih_d) + (b_d + b_out @ wih_d)
        w_dec = (whh_d.astype(f32)
                 + jnp.dot(w_out, wih_d, preferred_element_type=f32)).astype(cdt)
        b_dec = jnp.broadcast_to(
            b_d + jnp.dot(b_out.astype(cdt), wih_d, preferred_element_type=f32),
            (TB, G))  # hoisted broadcast (JAX does not CSE broadcast_in_dim)

    def gates_to_hc(gates, c):
        # PyTorch gate order [i, f, g, o]; slices are lane-aligned for H % 128 == 0.
        i_g = jax.nn.sigmoid(gates[:, 0:H])
        f_g = jax.nn.sigmoid(gates[:, H:2 * H])
        g_g = jnp.tanh(gates[:, 2 * H:3 * H])
        o_g = jax.nn.sigmoid(gates[:, 3 * H:4 * H])
        c_new = f_g * c + i_g * g_g
        h_new = o_g * jnp.tanh(c_new)
        return h_new, c_new

    h0 = jnp.zeros((TB, H), f32)
    c0 = jnp.zeros((TB, H), f32)

    # ---- encoder: only h @ whh_e remains on the serial path ----
    def enc_body(t, carry):
        h, c = carry
        gates = xproj_e_ref[t] + jnp.dot(h.astype(cdt), whh_e,
                                         preferred_element_type=f32)
        return gates_to_hc(gates, c)

    h_enc, c_enc = lax.fori_loop(0, T, enc_body, (h0, c0), unroll=unroll)

    # ---- decoder: backwards over time; record h history, no per-step output stores ----
    def dec_body(j, carry):
        h, c = carry
        i = T - 1 - j
        h_hist_ref[pl.ds(i, 1)] = h[None]          # pre-update hidden -> output later
        hc = h.astype(cdt)
        if training:
            gates = xproj_d_ref[i] + jnp.dot(hc, whh_d,
                                             preferred_element_type=f32)
        else:
            gates = jnp.dot(hc, w_dec, preferred_element_type=f32) + b_dec
        return gates_to_hc(gates, c)

    _ = lax.fori_loop(0, T, dec_body, (h_enc, c_enc), unroll=unroll)

    # ---- output Linear as one bulk matmul + one bulk store ----
    h_hist = h_hist_ref[...].reshape(T * TB, H).astype(cdt)
    out2 = jnp.dot(h_hist, w_out, preferred_element_type=f32) + b_out  # (T*TB, F)
    out_ref[...] = out2.reshape(T, TB, F).astype(out_ref.dtype)


def lstm_ed_forward(x, params, *, hidden_size, training=False,
                    block_b=8, compute_dtype=jnp.bfloat16):
    """x: (B, T, F) batch-first, like the PyTorch module. Returns (B, T, F) f32."""
    B, T, F = x.shape
    H = hidden_size
    G = 4 * H

    # Batch tile: multiple of 8 so in-kernel reshapes stay sublane-tile aligned.
    TB = max(8, ((block_b + 7) // 8) * 8)
    B_pad = ((B + TB - 1) // TB) * TB
    x32 = x.astype(jnp.float32)
    if B_pad != B:
        x32 = jnp.pad(x32, ((0, B_pad - B), (0, 0), (0, 0)))
    x_tm = jnp.transpose(x32, (1, 0, 2))          # (T, B_pad, F) time-major

    cdt = compute_dtype
    wih_e = params["wih_e"].astype(cdt)
    whh_e = params["whh_e"].astype(cdt)
    wih_d = params["wih_d"].astype(cdt)
    whh_d = params["whh_d"].astype(cdt)
    w_out = params["w_out"].astype(cdt)
    b_e = params["b_e"].astype(jnp.float32)
    b_d = params["b_d"].astype(jnp.float32)
    b_out = params["b_out"].astype(jnp.float32)

    kernel = functools.partial(_lstm_ed_kernel, hidden_size=H,
                               training=training, unroll=min(T, 8))

    nb = B_pad // TB
    grid_spec = pltpu.PrefetchScalarGridSpec(
        num_scalar_prefetch=0,
        grid=(nb,),
        in_specs=[
            pl.BlockSpec((T, TB, F), lambda b: (0, b, 0)),   # x (time-major block)
            pl.BlockSpec((F, G), lambda b: (0, 0)),          # wih_e
            pl.BlockSpec((H, G), lambda b: (0, 0)),          # whh_e
            pl.BlockSpec((1, G), lambda b: (0, 0)),          # b_e
            pl.BlockSpec((F, G), lambda b: (0, 0)),          # wih_d
            pl.BlockSpec((H, G), lambda b: (0, 0)),          # whh_d
            pl.BlockSpec((1, G), lambda b: (0, 0)),          # b_d
            pl.BlockSpec((H, F), lambda b: (0, 0)),          # w_out
            pl.BlockSpec((1, F), lambda b: (0, 0)),          # b_out
        ],
        out_specs=pl.BlockSpec((T, TB, F), lambda b: (0, b, 0)),
        scratch_shapes=[
            pltpu.VMEM((T, TB, G), jnp.float32),   # encoder input projection (+bias)
            pltpu.VMEM((T, TB, G), jnp.float32),   # decoder input projection (training)
            pltpu.VMEM((T, TB, H), jnp.float32),   # decoder hidden-state history
        ],
    )

    out_tm = pl.pallas_call(
        kernel,
        out_shape=jax.ShapeDtypeStruct((T, B_pad, F), jnp.float32),
        grid_spec=grid_spec,
        compiler_params=pltpu.CompilerParams(
            dimension_semantics=("parallel",)),
    )(x_tm, wih_e, whh_e, b_e, wih_d, whh_d, b_d, w_out, b_out)

    out = jnp.transpose(out_tm, (1, 0, 2))        # (B_pad, T, F)
    return out[:B]


def lstm_ed_reference(x, params, *, hidden_size, training=False):
    """Pure-JAX f32 reference mirroring the PyTorch module semantics."""
    B, T, F = x.shape
    H = hidden_size
    x = x.astype(jnp.float32)
    wih_e, whh_e, b_e = params["wih_e"], params["whh_e"], params["b_e"][0]
    wih_d, whh_d, b_d = params["wih_d"], params["whh_d"], params["b_d"][0]
    w_out, b_out = params["w_out"], params["b_out"][0]

    def cell(x_t, h, c, wih, whh, b):
        gates = x_t @ wih + h @ whh + b
        i_g = jax.nn.sigmoid(gates[:, 0:H])
        f_g = jax.nn.sigmoid(gates[:, H:2 * H])
        g_g = jnp.tanh(gates[:, 2 * H:3 * H])
        o_g = jax.nn.sigmoid(gates[:, 3 * H:4 * H])
        c = f_g * c + i_g * g_g
        return o_g * jnp.tanh(c), c

    h = jnp.zeros((B, H), jnp.float32)
    c = jnp.zeros((B, H), jnp.float32)
    for t in range(T):
        h, c = cell(x[:, t], h, c, wih_e, whh_e, b_e)
    out = jnp.zeros((B, T, F), jnp.float32)
    for i in reversed(range(T)):
        o_i = h @ w_out + b_out
        out = out.at[:, i, :].set(o_i)
        dec_in = x[:, i] if training else o_i
        h, c = cell(dec_in, h, c, wih_d, whh_d, b_d)
    return out


def init_params(key, n_features, hidden_size):
    """PyTorch-style uniform(-1/sqrt(H), 1/sqrt(H)) init, pre-transposed for x @ W.

      wih_*: (F, 4H)   whh_*: (H, 4H)   b_*: (1, 4H) = b_ih + b_hh
      w_out: (H, F)    b_out: (1, F)
    """
    F, H = n_features, hidden_size
    bound = 1.0 / math.sqrt(H)
    keys = jax.random.split(key, 10)

    def u(k, shape):
        return jax.random.uniform(k, shape, jnp.float32, -bound, bound)

    return dict(
        wih_e=u(keys[0], (F, 4 * H)),
        whh_e=u(keys[1], (H, 4 * H)),
        b_e=u(keys[2], (1, 4 * H)) + u(keys[3], (1, 4 * H)),
        wih_d=u(keys[4], (F, 4 * H)),
        whh_d=u(keys[5], (H, 4 * H)),
        b_d=u(keys[6], (1, 4 * H)) + u(keys[7], (1, 4 * H)),
        w_out=u(keys[8], (H, F)),
        b_out=u(keys[9], (1, F)),
    )


if __name__ == "__main__":
    # batch, seq len, n_features, hidden_size (H multiple of 128 -> lane-aligned gates)
    B, T, F, H = 16, 8, 8, 128

    key = jax.random.PRNGKey(0)
    pkey, xkey = jax.random.split(key)
    params = init_params(pkey, n_features=F, hidden_size=H)
    x = jax.random.normal(xkey, (B, T, F), jnp.float32)

    for training in (False, True):
        out = lstm_ed_forward(x, params, hidden_size=H, training=training,
                              compute_dtype=jnp.bfloat16)
        out = jax.block_until_ready(out)
        assert out.shape == (B, T, F), out.shape
        assert out.dtype == jnp.float32
        assert bool(jnp.all(jnp.isfinite(out)))
        ref = lstm_ed_reference(x, params, hidden_size=H, training=training)
        err = float(jnp.max(jnp.abs(out - ref)))
        assert err < 1e-1, f"mismatch vs reference (training={training}): {err}"

    print("KERNEL_OK")
</pallas_src>

<mosaic_0001>
module attributes {stable_mosaic.version = 11 : i64} {
  func.func @_lstm_ed_kernel(%arg0: i32, %arg1: memref<8x8x8xf32, #tpu.memory_space<vmem>>, %arg2: memref<8x512xbf16, #tpu.memory_space<vmem>>, %arg3: memref<128x512xbf16, #tpu.memory_space<vmem>>, %arg4: memref<1x512xf32, #tpu.memory_space<vmem>>, %arg5: memref<8x512xbf16, #tpu.memory_space<vmem>>, %arg6: memref<128x512xbf16, #tpu.memory_space<vmem>>, %arg7: memref<1x512xf32, #tpu.memory_space<vmem>>, %arg8: memref<128x8xbf16, #tpu.memory_space<vmem>>, %arg9: memref<1x8xf32, #tpu.memory_space<vmem>>, %arg10: memref<8x8x8xf32, #tpu.memory_space<vmem>>, %arg11: memref<8x8x512xf32, #tpu.memory_space<vmem>>, %arg12: memref<8x8x512xf32, #tpu.memory_space<vmem>>, %arg13: memref<8x8x128xf32, #tpu.memory_space<vmem>>) attributes {dimension_semantics = [#tpu.dimension_semantics<parallel>], iteration_bounds = array<i64: 2>, scalar_prefetch = 0 : i64, scratch_operands = 3 : i64, tpu.core_type = #tpu.core_type<tc>, window_params = [{transform_indices = @transform_0, window_bounds = array<i64: 8, 8, 8>}, {pipeline_mode = #tpu.pipeline_mode<synchronous>, transform_indices = @transform_1, window_bounds = array<i64: 8, 512>}, {pipeline_mode = #tpu.pipeline_mode<synchronous>, transform_indices = @transform_2, window_bounds = array<i64: 128, 512>}, {pipeline_mode = #tpu.pipeline_mode<synchronous>, transform_indices = @transform_3, window_bounds = array<i64: 1, 512>}, {pipeline_mode = #tpu.pipeline_mode<synchronous>, transform_indices = @transform_4, window_bounds = array<i64: 8, 512>}, {pipeline_mode = #tpu.pipeline_mode<synchronous>, transform_indices = @transform_5, window_bounds = array<i64: 128, 512>}, {pipeline_mode = #tpu.pipeline_mode<synchronous>, transform_indices = @transform_6, window_bounds = array<i64: 1, 512>}, {pipeline_mode = #tpu.pipeline_mode<synchronous>, transform_indices = @transform_7, window_bounds = array<i64: 128, 8>}, {pipeline_mode = #tpu.pipeline_mode<synchronous>, transform_indices = @transform_8, window_bounds = array<i64: 1, 8>}, {transform_indices = @transform_9, window_bounds = array<i64: 8, 8, 8>}]} {
    %c0 = arith.constant 0 : index
    %c0_0 = arith.constant 0 : index
    %0 = vector.load %arg2[%c0, %c0_0] : memref<8x512xbf16, #tpu.memory_space<vmem>>, vector<8x512xbf16>
    %c0_1 = arith.constant 0 : index
    %c0_2 = arith.constant 0 : index
    %1 = vector.load %arg3[%c0_1, %c0_2] : memref<128x512xbf16, #tpu.memory_space<vmem>>, vector<128x512xbf16>
    %c0_3 = arith.constant 0 : index
    %c0_4 = arith.constant 0 : index
    %2 = vector.load %arg5[%c0_3, %c0_4] : memref<8x512xbf16, #tpu.memory_space<vmem>>, vector<8x512xbf16>
    %c0_5 = arith.constant 0 : index
    %c0_6 = arith.constant 0 : index
    %3 = vector.load %arg6[%c0_5, %c0_6] : memref<128x512xbf16, #tpu.memory_space<vmem>>, vector<128x512xbf16>
    %c0_7 = arith.constant 0 : index
    %c0_8 = arith.constant 0 : index
    %4 = vector.load %arg8[%c0_7, %c0_8] : memref<128x8xbf16, #tpu.memory_space<vmem>>, vector<128x8xbf16>
    %c0_9 = arith.constant 0 : index
    %c0_10 = arith.constant 0 : index
    %5 = vector.load %arg4[%c0_9, %c0_10] : memref<1x512xf32, #tpu.memory_space<vmem>>, vector<1x512xf32>
    %c0_11 = arith.constant 0 : index
    %c0_12 = arith.constant 0 : index
    %6 = vector.load %arg7[%c0_11, %c0_12] : memref<1x512xf32, #tpu.memory_space<vmem>>, vector<1x512xf32>
    %c0_13 = arith.constant 0 : index
    %c0_14 = arith.constant 0 : index
    %7 = vector.load %arg9[%c0_13, %c0_14] : memref<1x8xf32, #tpu.memory_space<vmem>>, vector<1x8xf32>
    %c0_15 = arith.constant 0 : index
    %c0_16 = arith.constant 0 : index
    %c0_17 = arith.constant 0 : index
    %8 = vector.load %arg1[%c0_15, %c0_16, %c0_17] : memref<8x8x8xf32, #tpu.memory_space<vmem>>, vector<8x8x8xf32>
    %9 = vector.shape_cast %8 : vector<8x8x8xf32> to vector<64x8xf32>
    %10 = arith.truncf %9 : vector<64x8xf32> to vector<64x8xbf16>
    %cst = arith.constant dense<0.000000e+00> : vector<64x512xf32>
    %11 = tpu.matmul %10, %0, %cst {dimension_numbers = #tpu.dot_dimension_numbers<[1], [0], [0], [1], [0, 0, 1, 1], [], []>} : vector<64x8xbf16>, vector<8x512xbf16>, vector<64x512xf32> -> vector<64x512xf32>
    %12 = vector.broadcast %5 : vector<1x512xf32> to vector<64x512xf32>
    %13 = arith.addf %11, %12 : vector<64x512xf32>
    %14 = vector.shape_cast %13 : vector<64x512xf32> to vector<8x8x512xf32>
    %c0_18 = arith.constant 0 : index
    %c0_19 = arith.constant 0 : index
    %c0_20 = arith.constant 0 : index
    %15 = vector.load %arg11[%c0_18, %c0_19, %c0_20] : memref<8x8x512xf32, #tpu.memory_space<vmem>>, vector<8x8x512xf32>
    tpu.vector_store %arg11[%c0_18, %c0_19, %c0_20], %14 {strides = array<i32>} : memref<8x8x512xf32, #tpu.memory_space<vmem>>, vector<8x8x512xf32>,
    %16 = arith.extf %3 : vector<128x512xbf16> to vector<128x512xf32>
    %cst_21 = arith.constant dense<0.000000e+00> : vector<128x512xf32>
    %17 = tpu.matmul %4, %2, %cst_21 {dimension_numbers = #tpu.dot_dimension_numbers<[1], [0], [0], [1], [0, 0, 1, 1], [], []>} : vector<128x8xbf16>, vector<8x512xbf16>, vector<128x512xf32> -> vector<128x512xf32>
    %18 = arith.addf %16, %17 : vector<128x512xf32>
    %19 = arith.truncf %18 : vector<128x512xf32> to vector<128x512xbf16>
    %20 = arith.truncf %7 : vector<1x8xf32> to vector<1x8xbf16>
    %cst_22 = arith.constant dense<0.000000e+00> : vector<1x512xf32>
    %21 = tpu.matmul %20, %2, %cst_22 {dimension_numbers = #tpu.dot_dimension_numbers<[1], [0], [0], [1], [0, 0, 1, 1], [], []>} : vector<1x8xbf16>, vector<8x512xbf16>, vector<1x512xf32> -> vector<1x512xf32>
    %22 = arith.addf %6, %21 : vector<1x512xf32>
    %23 = vector.shape_cast %22 : vector<1x512xf32> to vector<1x512xf32>
    %24 = vector.broadcast %23 : vector<1x512xf32> to vector<8x512xf32>
    %cst_23 = arith.constant 0.000000e+00 : f32
    %25 = vector.broadcast %cst_23 : f32 to vector<8x128xf32>
    %cst_24 = arith.constant 0.000000e+00 : f32
    %26 = vector.broadcast %cst_24 : f32 to vector<8x128xf32>
    %c0_i32 = arith.constant 0 : i32
    %27 = arith.index_cast %c0_i32 : i32 to index
    %c0_25 = arith.constant 0 : index
    %c0_26 = arith.constant 0 : index
    %28 = vector.load %arg11[%27, %c0_25, %c0_26] : memref<8x8x512xf32, #tpu.memory_space<vmem>>, vector<1x8x512xf32>
    %29 = vector.shape_cast %28 : vector<1x8x512xf32> to vector<8x512xf32>
    %30 = arith.truncf %25 : vector<8x128xf32> to vector<8x128xbf16>
    %cst_27 = arith.constant dense<0.000000e+00> : vector<8x512xf32>
    %31 = tpu.matmul %30, %1, %cst_27 {dimension_numbers = #tpu.dot_dimension_numbers<[1], [0], [0], [1], [0, 0, 1, 1], [], []>} : vector<8x128xbf16>, vector<128x512xbf16>, vector<8x512xf32> -> vector<8x512xf32>
    %32 = arith.addf %29, %31 : vector<8x512xf32>
    %33 = vector.extract_strided_slice %32 {offsets = [0, 0], sizes = [8, 128], strides = [1, 1]} : vector<8x512xf32> to vector<8x128xf32>
    %34 = arith.negf %33 : vector<8x128xf32>
    %35 = math.exp %34 : vector<8x128xf32>
    %cst_28 = arith.constant 1.000000e+00 : f32
    %36 = vector.broadcast %cst_28 : f32 to vector<8x128xf32>
    %37 = arith.addf %36, %35 : vector<8x128xf32>
    %38 = arith.divf %36, %37 : vector<8x128xf32>
    %39 = vector.extract_strided_slice %32 {offsets = [0, 128], sizes = [8, 128], strides = [1, 1]} : vector<8x512xf32> to vector<8x128xf32>
    %40 = arith.negf %39 : vector<8x128xf32>
    %41 = math.exp %40 : vector<8x128xf32>
    %cst_29 = arith.constant 1.000000e+00 : f32
    %42 = vector.broadcast %cst_29 : f32 to vector<8x128xf32>
    %43 = arith.addf %42, %41 : vector<8x128xf32>
    %44 = arith.divf %42, %43 : vector<8x128xf32>
    %45 = vector.extract_strided_slice %32 {offsets = [0, 256], sizes = [8, 128], strides = [1, 1]} : vector<8x512xf32> to vector<8x128xf32>
    %46 = math.tanh %45 : vector<8x128xf32>
    %47 = vector.extract_strided_slice %32 {offsets = [0, 384], sizes = [8, 128], strides = [1, 1]} : vector<8x512xf32> to vector<8x128xf32>
    %48 = arith.negf %47 : vector<8x128xf32>
    %49 = math.exp %48 : vector<8x128xf32>
    %cst_30 = arith.constant 1.000000e+00 : f32
    %50 = vector.broadcast %cst_30 : f32 to vector<8x128xf32>
    %51 = arith.addf %50, %49 : vector<8x128xf32>
    %52 = arith.divf %50, %51 : vector<8x128xf32>
    %53 = arith.mulf %44, %26 : vector<8x128xf32>
    %54 = arith.mulf %38, %46 : vector<8x128xf32>
    %55 = arith.addf %53, %54 : vector<8x128xf32>
    %56 = math.tanh %55 : vector<8x128xf32>
    %57 = arith.mulf %52, %56 : vector<8x128xf32>
    %c1_i32 = arith.constant 1 : i32
    %58 = arith.index_cast %c1_i32 : i32 to index
    %c0_31 = arith.constant 0 : index
    %c0_32 = arith.constant 0 : index
    %59 = vector.load %arg11[%58, %c0_31, %c0_32] : memref<8x8x512xf32, #tpu.memory_space<vmem>>, vector<1x8x512xf32>
    %60 = vector.shape_cast %59 : vector<1x8x512xf32> to vector<8x512xf32>
    %61 = arith.truncf %57 : vector<8x128xf32> to vector<8x128xbf16>
    %cst_33 = arith.constant dense<0.000000e+00> : vector<8x512xf32>
    %62 = tpu.matmul %61, %1, %cst_33 {dimension_numbers = #tpu.dot_dimension_numbers<[1], [0], [0], [1], [0, 0, 1, 1], [], []>} : vector<8x128xbf16>, vector<128x512xbf16>, vector<8x512xf32> -> vector<8x512xf32>
    %63 = arith.addf %60, %62 : vector<8x512xf32>
    %64 = vector.extract_strided_slice %63 {offsets = [0, 0], sizes = [8, 128], strides = [1, 1]} : vector<8x512xf32> to vector<8x128xf32>
    %65 = arith.negf %64 : vector<8x128xf32>
    %66 = math.exp %65 : vector<8x128xf32>
    %cst_34 = arith.constant 1.000000e+00 : f32
    %67 = vector.broadcast %cst_34 : f32 to vector<8x128xf32>
    %68 = arith.addf %67, %66 : vector<8x128xf32>
    %69 = arith.divf %67, %68 : vector<8x128xf32>
    %70 = vector.extract_strided_slice %63 {offsets = [0, 128], sizes = [8, 128], strides = [1, 1]} : vector<8x512xf32> to vector<8x128xf32>
    %71 = arith.negf %70 : vector<8x128xf32>
    %72 = math.exp %71 : vector<8x128xf32>
    %cst_35 = arith.constant 1.000000e+00 : f32
    %73 = vector.broadcast %cst_35 : f32 to vector<8x128xf32>
    %74 = arith.addf %73, %72 : vector<8x128xf32>
    %75 = arith.divf %73, %74 : vector<8x128xf32>
    %76 = vector.extract_strided_slice %63 {offsets = [0, 256], sizes = [8, 128], strides = [1, 1]} : vector<8x512xf32> to vector<8x128xf32>
    %77 = math.tanh %76 : vector<8x128xf32>
    %78 = vector.extract_strided_slice %63 {offsets = [0, 384], sizes = [8, 128], strides = [1, 1]} : vector<8x512xf32> to vector<8x128xf32>
    %79 = arith.negf %78 : vector<8x128xf32>
    %80 = math.exp %79 : vector<8x128xf32>
    %cst_36 = arith.constant 1.000000e+00 : f32
    %81 = vector.broadcast %cst_36 : f32 to vector<8x128xf32>
    %82 = arith.addf %81, %80 : vector<8x128xf32>
    %83 = arith.divf %81, %82 : vector<8x128xf32>
    %84 = arith.mulf %75, %55 : vector<8x128xf32>
    %85 = arith.mulf %69, %77 : vector<8x128xf32>
    %86 = arith.addf %84, %85 : vector<8x128xf32>
    %87 = math.tanh %86 : vector<8x128xf32>
    %88 = arith.mulf %83, %87 : vector<8x128xf32>
    %c2_i32 = arith.constant 2 : i32
    %89 = arith.index_cast %c2_i32 : i32 to index
    %c0_37 = arith.constant 0 : index
    %c0_38 = arith.constant 0 : index
    %90 = vector.load %arg11[%89, %c0_37, %c0_38] : memref<8x8x512xf32, #tpu.memory_space<vmem>>, vector<1x8x512xf32>
    %91 = vector.shape_cast %90 : vector<1x8x512xf32> to vector<8x512xf32>
    %92 = arith.truncf %88 : vector<8x128xf32> to vector<8x128xbf16>
    %cst_39 = arith.constant dense<0.000000e+00> : vector<8x512xf32>
    %93 = tpu.matmul %92, %1, %cst_39 {dimension_numbers = #tpu.dot_dimension_numbers<[1], [0], [0], [1], [0, 0, 1, 1], [], []>} : vector<8x128xbf16>, vector<128x512xbf16>, vector<8x512xf32> -> vector<8x512xf32>
    %94 = arith.addf %91, %93 : vector<8x512xf32>
    %95 = vector.extract_strided_slice %94 {offsets = [0, 0], sizes = [8, 128], strides = [1, 1]} : vector<8x512xf32> to vector<8x128xf32>
    %96 = arith.negf %95 : vector<8x128xf32>
    %97 = math.exp %96 : vector<8x128xf32>
    %cst_40 = arith.constant 1.000000e+00 : f32
    %98 = vector.broadcast %cst_40 : f32 to vector<8x128xf32>
    %99 = arith.addf %98, %97 : vector<8x128xf32>
    %100 = arith.divf %98, %99 : vector<8x128xf32>
    %101 = vector.extract_strided_slice %94 {offsets = [0, 128], sizes = [8, 128], strides = [1, 1]} : vector<8x512xf32> to vector<8x128xf32>
    %102 = arith.negf %101 : vector<8x128xf32>
    %103 = math.exp %102 : vector<8x128xf32>
    %cst_41 = arith.constant 1.000000e+00 : f32
    %104 = vector.broadcast %cst_41 : f32 to vector<8x128xf32>
    %105 = arith.addf %104, %103 : vector<8x128xf32>
    %106 = arith.divf %104, %105 : vector<8x128xf32>
    %107 = vector.extract_strided_slice %94 {offsets = [0, 256], sizes = [8, 128], strides = [1, 1]} : vector<8x512xf32> to vector<8x128xf32>
    %108 = math.tanh %107 : vector<8x128xf32>
    %109 = vector.extract_strided_slice %94 {offsets = [0, 384], sizes = [8, 128], strides = [1, 1]} : vector<8x512xf32> to vector<8x128xf32>
    %110 = arith.negf %109 : vector<8x128xf32>
    %111 = math.exp %110 : vector<8x128xf32>
    %cst_42 = arith.constant 1.000000e+00 : f32
    %112 = vector.broadcast %cst_42 : f32 to vector<8x128xf32>
    %113 = arith.addf %112, %111 : vector<8x128xf32>
    %114 = arith.divf %112, %113 : vector<8x128xf32>
    %115 = arith.mulf %106, %86 : vector<8x128xf32>
    %116 = arith.mulf %100, %108 : vector<8x128xf32>
    %117 = arith.addf %115, %116 : vector<8x128xf32>
    %118 = math.tanh %117 : vector<8x128xf32>
    %119 = arith.mulf %114, %118 : vector<8x128xf32>
    %c3_i32 = arith.constant 3 : i32
    %120 = arith.index_cast %c3_i32 : i32 to index
    %c0_43 = arith.constant 0 : index
    %c0_44 = arith.constant 0 : index
    %121 = vector.load %arg11[%120, %c0_43, %c0_44] : memref<8x8x512xf32, #tpu.memory_space<vmem>>, vector<1x8x512xf32>
    %122 = vector.shape_cast %121 : vector<1x8x512xf32> to vector<8x512xf32>
    %123 = arith.truncf %119 : vector<8x128xf32> to vector<8x128xbf16>
    %cst_45 = arith.constant dense<0.000000e+00> : vector<8x512xf32>
    %124 = tpu.matmul %123, %1, %cst_45 {dimension_numbers = #tpu.dot_dimension_numbers<[1], [0], [0], [1], [0, 0, 1, 1], [], []>} : vector<8x128xbf16>, vector<128x512xbf16>, vector<8x512xf32> -> vector<8x512xf32>
    %125 = arith.addf %122, %124 : vector<8x512xf32>
    %126 = vector.extract_strided_slice %125 {offsets = [0, 0], sizes = [8, 128], strides = [1, 1]} : vector<8x512xf32> to vector<8x128xf32>
    %127 = arith.negf %126 : vector<8x128xf32>
    %128 = math.exp %127 : vector<8x128xf32>
    %cst_46 = arith.constant 1.000000e+00 : f32
    %129 = vector.broadcast %cst_46 : f32 to vector<8x128xf32>
    %130 = arith.addf %129, %128 : vector<8x128xf32>
    %131 = arith.divf %129, %130 : vector<8x128xf32>
    %132 = vector.extract_strided_slice %125 {offsets = [0, 128], sizes = [8, 128], strides = [1, 1]} : vector<8x512xf32> to vector<8x128xf32>
    %133 = arith.negf %132 : vector<8x128xf32>
    %134 = math.exp %133 : vector<8x128xf32>
    %cst_47 = arith.constant 1.000000e+00 : f32
    %135 = vector.broadcast %cst_47 : f32 to vector<8x128xf32>
    %136 = arith.addf %135, %134 : vector<8x128xf32>
    %137 = arith.divf %135, %136 : vector<8x128xf32>
    %138 = vector.extract_strided_slice %125 {offsets = [0, 256], sizes = [8, 128], strides = [1, 1]} : vector<8x512xf32> to vector<8x128xf32>
    %139 = math.tanh %138 : vector<8x128xf32>
    %140 = vector.extract_strided_slice %125 {offsets = [0, 384], sizes = [8, 128], strides = [1, 1]} : vector<8x512xf32> to vector<8x128xf32>
    %141 = arith.negf %140 : vector<8x128xf32>
    %142 = math.exp %141 : vector<8x128xf32>
    %cst_48 = arith.constant 1.000000e+00 : f32
    %143 = vector.broadcast %cst_48 : f32 to vector<8x128xf32>
    %144 = arith.addf %143, %142 : vector<8x128xf32>
    %145 = arith.divf %143, %144 : vector<8x128xf32>
    %146 = arith.mulf %137, %117 : vector<8x128xf32>
    %147 = arith.mulf %131, %139 : vector<8x128xf32>
    %148 = arith.addf %146, %147 : vector<8x128xf32>
    %149 = math.tanh %148 : vector<8x128xf32>
    %150 = arith.mulf %145, %149 : vector<8x128xf32>
    %c4_i32 = arith.constant 4 : i32
    %151 = arith.index_cast %c4_i32 : i32 to index
    %c0_49 = arith.constant 0 : index
    %c0_50 = arith.constant 0 : index
    %152 = vector.load %arg11[%151, %c0_49, %c0_50] : memref<8x8x512xf32, #tpu.memory_space<vmem>>, vector<1x8x512xf32>
    %153 = vector.shape_cast %152 : vector<1x8x512xf32> to vector<8x512xf32>
    %154 = arith.truncf %150 : vector<8x128xf32> to vector<8x128xbf16>
    %cst_51 = arith.constant dense<0.000000e+00> : vector<8x512xf32>
    %155 = tpu.matmul %154, %1, %cst_51 {dimension_numbers = #tpu.dot_dimension_numbers<[1], [0], [0], [1], [0, 0, 1, 1], [], []>} : vector<8x128xbf16>, vector<128x512xbf16>, vector<8x512xf32> -> vector<8x512xf32>
    %156 = arith.addf %153, %155 : vector<8x512xf32>
    %157 = vector.extract_strided_slice %156 {offsets = [0, 0], sizes = [8, 128], strides = [1, 1]} : vector<8x512xf32> to vector<8x128xf32>
    %158 = arith.negf %157 : vector<8x128xf32>
    %159 = math.exp %158 : vector<8x128xf32>
    %cst_52 = arith.constant 1.000000e+00 : f32
    %160 = vector.broadcast %cst_52 : f32 to vector<8x128xf32>
    %161 = arith.addf %160, %159 : vector<8x128xf32>
    %162 = arith.divf %160, %161 : vector<8x128xf32>
    %163 = vector.extract_strided_slice %156 {offsets = [0, 128], sizes = [8, 128], strides = [1, 1]} : vector<8x512xf32> to vector<8x128xf32>
    %164 = arith.negf %163 : vector<8x128xf32>
    %165 = math.exp %164 : vector<8x128xf32>
    %cst_53 = arith.constant 1.000000e+00 : f32
    %166 = vector.broadcast %cst_53 : f32 to vector<8x128xf32>
    %167 = arith.addf %166, %165 : vector<8x128xf32>
    %168 = arith.divf %166, %167 : vector<8x128xf32>
    %169 = vector.extract_strided_slice %156 {offsets = [0, 256], sizes = [8, 128], strides = [1, 1]} : vector<8x512xf32> to vector<8x128xf32>
    %170 = math.tanh %169 : vector<8x128xf32>
    %171 = vector.extract_strided_slice %156 {offsets = [0, 384], sizes = [8, 128], strides = [1, 1]} : vector<8x512xf32> to vector<8x128xf32>
    %172 = arith.negf %171 : vector<8x128xf32>
    %173 = math.exp %172 : vector<8x128xf32>
    %cst_54 = arith.constant 1.000000e+00 : f32
    %174 = vector.broadcast %cst_54 : f32 to vector<8x128xf32>
    %175 = arith.addf %174, %173 : vector<8x128xf32>
    %176 = arith.divf %174, %175 : vector<8x128xf32>
    %177 = arith.mulf %168, %148 : vector<8x128xf32>
    %178 = arith.mulf %162, %170 : vector<8x128xf32>
    %179 = arith.addf %177, %178 : vector<8x128xf32>
    %180 = math.tanh %179 : vector<8x128xf32>
    %181 = arith.mulf %176, %180 : vector<8x128xf32>
    %c5_i32 = arith.constant 5 : i32
    %182 = arith.index_cast %c5_i32 : i32 to index
    %c0_55 = arith.constant 0 : index
    %c0_56 = arith.constant 0 : index
    %183 = vector.load %arg11[%182, %c0_55, %c0_56] : memref<8x8x512xf32, #tpu.memory_space<vmem>>, vector<1x8x512xf32>
    %184 = vector.shape_cast %183 : vector<1x8x512xf32> to vector<8x512xf32>
    %185 = arith.truncf %181 : vector<8x128xf32> to vector<8x128xbf16>
    %cst_57 = arith.constant dense<0.000000e+00> : vector<8x512xf32>
    %186 = tpu.matmul %185, %1, %cst_57 {dimension_numbers = #tpu.dot_dimension_numbers<[1], [0], [0], [1], [0, 0, 1, 1], [], []>} : vector<8x128xbf16>, vector<128x512xbf16>, vector<8x512xf32> -> vector<8x512xf32>
    %187 = arith.addf %184, %186 : vector<8x512xf32>
    %188 = vector.extract_strided_slice %187 {offsets = [0, 0], sizes = [8, 128], strides = [1, 1]} : vector<8x512xf32> to vector<8x128xf32>
    %189 = arith.negf %188 : vector<8x128xf32>
    %190 = math.exp %189 : vector<8x128xf32>
    %cst_58 = arith.constant 1.000000e+00 : f32
    %191 = vector.broadcast %cst_58 : f32 to vector<8x128xf32>
    %192 = arith.addf %191, %190 : vector<8x128xf32>
    %193 = arith.divf %191, %192 : vector<8x128xf32>
    %194 = vector.extract_strided_slice %187 {offsets = [0, 128], sizes = [8, 128], strides = [1, 1]} : vector<8x512xf32> to vector<8x128xf32>
    %195 = arith.negf %194 : vector<8x128xf32>
    %196 = math.exp %195 : vector<8x128xf32>
    %cst_59 = arith.constant 1.000000e+00 : f32
    %197 = vector.broadcast %cst_59 : f32 to vector<8x128xf32>
    %198 = arith.addf %197, %196 : vector<8x128xf32>
    %199 = arith.divf %197, %198 : vector<8x128xf32>
    %200 = vector.extract_strided_slice %187 {offsets = [0, 256], sizes = [8, 128], strides = [1, 1]} : vector<8x512xf32> to vector<8x128xf32>
    %201 = math.tanh %200 : vector<8x128xf32>
    %202 = vector.extract_strided_slice %187 {offsets = [0, 384], sizes = [8, 128], strides = [1, 1]} : vector<8x512xf32> to vector<8x128xf32>
    %203 = arith.negf %202 : vector<8x128xf32>
    %204 = math.exp %203 : vector<8x128xf32>
    %cst_60 = arith.constant 1.000000e+00 : f32
    %205 = vector.broadcast %cst_60 : f32 to vector<8x128xf32>
    %206 = arith.addf %205, %204 : vector<8x128xf32>
    %207 = arith.divf %205, %206 : vector<8x128xf32>
    %208 = arith.mulf %199, %179 : vector<8x128xf32>
    %209 = arith.mulf %193, %201 : vector<8x128xf32>
    %210 = arith.addf %208, %209 : vector<8x128xf32>
    %211 = math.tanh %210 : vector<8x128xf32>
    %212 = arith.mulf %207, %211 : vector<8x128xf32>
    %c6_i32 = arith.constant 6 : i32
    %213 = arith.index_cast %c6_i32 : i32 to index
    %c0_61 = arith.constant 0 : index
    %c0_62 = arith.constant 0 : index
    %214 = vector.load %arg11[%213, %c0_61, %c0_62] : memref<8x8x512xf32, #tpu.memory_space<vmem>>, vector<1x8x512xf32>
    %215 = vector.shape_cast %214 : vector<1x8x512xf32> to vector<8x512xf32>
    %216 = arith.truncf %212 : vector<8x128xf32> to vector<8x128xbf16>
    %cst_63 = arith.constant dense<0.000000e+00> : vector<8x512xf32>
    %217 = tpu.matmul %216, %1, %cst_63 {dimension_numbers = #tpu.dot_dimension_numbers<[1], [0], [0], [1], [0, 0, 1, 1], [], []>} : vector<8x128xbf16>, vector<128x512xbf16>, vector<8x512xf32> -> vector<8x512xf32>
    %218 = arith.addf %215, %217 : vector<8x512xf32>
    %219 = vector.extract_strided_slice %218 {offsets = [0, 0], sizes = [8, 128], strides = [1, 1]} : vector<8x512xf32> to vector<8x128xf32>
    %220 = arith.negf %219 : vector<8x128xf32>
    %221 = math.exp %220 : vector<8x128xf32>
    %cst_64 = arith.constant 1.000000e+00 : f32
    %222 = vector.broadcast %cst_64 : f32 to vector<8x128xf32>
    %223 = arith.addf %222, %221 : vector<8x128xf32>
    %224 = arith.divf %222, %223 : vector<8x128xf32>
    %225 = vector.extract_strided_slice %218 {offsets = [0, 128], sizes = [8, 128], strides = [1, 1]} : vector<8x512xf32> to vector<8x128xf32>
    %226 = arith.negf %225 : vector<8x128xf32>
    %227 = math.exp %226 : vector<8x128xf32>
    %cst_65 = arith.constant 1.000000e+00 : f32
    %228 = vector.broadcast %cst_65 : f32 to vector<8x128xf32>
    %229 = arith.addf %228, %227 : vector<8x128xf32>
    %230 = arith.divf %228, %229 : vector<8x128xf32>
    %231 = vector.extract_strided_slice %218 {offsets = [0, 256], sizes = [8, 128], strides = [1, 1]} : vector<8x512xf32> to vector<8x128xf32>
    %232 = math.tanh %231 : vector<8x128xf32>
    %233 = vector.extract_strided_slice %218 {offsets = [0, 384], sizes = [8, 128], strides = [1, 1]} : vector<8x512xf32> to vector<8x128xf32>
    %234 = arith.negf %233 : vector<8x128xf32>
    %235 = math.exp %234 : vector<8x128xf32>
    %cst_66 = arith.constant 1.000000e+00 : f32
    %236 = vector.broadcast %cst_66 : f32 to vector<8x128xf32>
    %237 = arith.addf %236, %235 : vector<8x128xf32>
    %238 = arith.divf %236, %237 : vector<8x128xf32>
    %239 = arith.mulf %230, %210 : vector<8x128xf32>
    %240 = arith.mulf %224, %232 : vector<8x128xf32>
    %241 = arith.addf %239, %240 : vector<8x128xf32>
    %242 = math.tanh %241 : vector<8x128xf32>
    %243 = arith.mulf %238, %242 : vector<8x128xf32>
    %c7_i32 = arith.constant 7 : i32
    %244 = arith.index_cast %c7_i32 : i32 to index
    %c0_67 = arith.constant 0 : index
    %c0_68 = arith.constant 0 : index
    %245 = vector.load %arg11[%244, %c0_67, %c0_68] : memref<8x8x512xf32, #tpu.memory_space<vmem>>, vector<1x8x512xf32>
    %246 = vector.shape_cast %245 : vector<1x8x512xf32> to vector<8x512xf32>
    %247 = arith.truncf %243 : vector<8x128xf32> to vector<8x128xbf16>
    %cst_69 = arith.constant dense<0.000000e+00> : vector<8x512xf32>
    %248 = tpu.matmul %247, %1, %cst_69 {dimension_numbers = #tpu.dot_dimension_numbers<[1], [0], [0], [1], [0, 0, 1, 1], [], []>} : vector<8x128xbf16>, vector<128x512xbf16>, vector<8x512xf32> -> vector<8x512xf32>
    %249 = arith.addf %246, %248 : vector<8x512xf32>
    %250 = vector.extract_strided_slice %249 {offsets = [0, 0], sizes = [8, 128], strides = [1, 1]} : vector<8x512xf32> to vector<8x128xf32>
    %251 = arith.negf %250 : vector<8x128xf32>
    %252 = math.exp %251 : vector<8x128xf32>
    %cst_70 = arith.constant 1.000000e+00 : f32
    %253 = vector.broadcast %cst_70 : f32 to vector<8x128xf32>
    %254 = arith.addf %253, %252 : vector<8x128xf32>
    %255 = arith.divf %253, %254 : vector<8x128xf32>
    %256 = vector.extract_strided_slice %249 {offsets = [0, 128], sizes = [8, 128], strides = [1, 1]} : vector<8x512xf32> to vector<8x128xf32>
    %257 = arith.negf %256 : vector<8x128xf32>
    %258 = math.exp %257 : vector<8x128xf32>
    %cst_71 = arith.constant 1.000000e+00 : f32
    %259 = vector.broadcast %cst_71 : f32 to vector<8x128xf32>
    %260 = arith.addf %259, %258 : vector<8x128xf32>
    %261 = arith.divf %259, %260 : vector<8x128xf32>
    %262 = vector.extract_strided_slice %249 {offsets = [0, 256], sizes = [8, 128], strides = [1, 1]} : vector<8x512xf32> to vector<8x128xf32>
    %263 = math.tanh %262 : vector<8x128xf32>
    %264 = vector.extract_strided_slice %249 {offsets = [0, 384], sizes = [8, 128], strides = [1, 1]} : vector<8x512xf32> to vector<8x128xf32>
    %265 = arith.negf %264 : vector<8x128xf32>
    %266 = math.exp %265 : vector<8x128xf32>
    %cst_72 = arith.constant 1.000000e+00 : f32
    %267 = vector.broadcast %cst_72 : f32 to vector<8x128xf32>
    %268 = arith.addf %267, %266 : vector<8x128xf32>
    %269 = arith.divf %267, %268 : vector<8x128xf32>
    %270 = arith.mulf %261, %241 : vector<8x128xf32>
    %271 = arith.mulf %255, %263 : vector<8x128xf32>
    %272 = arith.addf %270, %271 : vector<8x128xf32>
    %273 = math.tanh %272 : vector<8x128xf32>
    %274 = arith.mulf %269, %273 : vector<8x128xf32>
    %c8_i32 = arith.constant 8 : i32
    %c0_i32_73 = arith.constant 0 : i32
    %c7_i32_74 = arith.constant 7 : i32
    %275 = arith.subi %c7_i32_74, %c0_i32_73 : i32
    %276 = vector.shape_cast %274 : vector<8x128xf32> to vector<1x8x128xf32>
    %277 = arith.index_cast %275 : i32 to index
    %c0_75 = arith.constant 0 : index
    %c0_76 = arith.constant 0 : index
    %278 = vector.load %arg13[%277, %c0_75, %c0_76] : memref<8x8x128xf32, #tpu.memory_space<vmem>>, vector<1x8x128xf32>
    tpu.vector_store %arg13[%277, %c0_75, %c0_76], %276 {strides = array<i32>} : memref<8x8x128xf32, #tpu.memory_space<vmem>>, vector<1x8x128xf32>,
    %279 = arith.truncf %274 : vector<8x128xf32> to vector<8x128xbf16>
    %cst_77 = arith.constant dense<0.000000e+00> : vector<8x512xf32>
    %280 = tpu.matmul %279, %19, %cst_77 {dimension_numbers = #tpu.dot_dimension_numbers<[1], [0], [0], [1], [0, 0, 1, 1], [], []>} : vector<8x128xbf16>, vector<128x512xbf16>, vector<8x512xf32> -> vector<8x512xf32>
    %281 = arith.addf %280, %24 : vector<8x512xf32>
    %282 = vector.extract_strided_slice %281 {offsets = [0, 0], sizes = [8, 128], strides = [1, 1]} : vector<8x512xf32> to vector<8x128xf32>
    %283 = arith.negf %282 : vector<8x128xf32>
    %284 = math.exp %283 : vector<8x128xf32>
    %cst_78 = arith.constant 1.000000e+00 : f32
    %285 = vector.broadcast %cst_78 : f32 to vector<8x128xf32>
    %286 = arith.addf %285, %284 : vector<8x128xf32>
    %287 = arith.divf %285, %286 : vector<8x128xf32>
    %288 = vector.extract_strided_slice %281 {offsets = [0, 128], sizes = [8, 128], strides = [1, 1]} : vector<8x512xf32> to vector<8x128xf32>
    %289 = arith.negf %288 : vector<8x128xf32>
    %290 = math.exp %289 : vector<8x128xf32>
    %cst_79 = arith.constant 1.000000e+00 : f32
    %291 = vector.broadcast %cst_79 : f32 to vector<8x128xf32>
    %292 = arith.addf %291, %290 : vector<8x128xf32>
    %293 = arith.divf %291, %292 : vector<8x128xf32>
    %294 = vector.extract_strided_slice %281 {offsets = [0, 256], sizes = [8, 128], strides = [1, 1]} : vector<8x512xf32> to vector<8x128xf32>
    %295 = math.tanh %294 : vector<8x128xf32>
    %296 = vector.extract_strided_slice %281 {offsets = [0, 384], sizes = [8, 128], strides = [1, 1]} : vector<8x512xf32> to vector<8x128xf32>
    %297 = arith.negf %296 : vector<8x128xf32>
    %298 = math.exp %297 : vector<8x128xf32>
    %cst_80 = arith.constant 1.000000e+00 : f32
    %299 = vector.broadcast %cst_80 : f32 to vector<8x128xf32>
    %300 = arith.addf %299, %298 : vector<8x128xf32>
    %301 = arith.divf %299, %300 : vector<8x128xf32>
    %302 = arith.mulf %293, %272 : vector<8x128xf32>
    %303 = arith.mulf %287, %295 : vector<8x128xf32>
    %304 = arith.addf %302, %303 : vector<8x128xf32>
    %305 = math.tanh %304 : vector<8x128xf32>
    %306 = arith.mulf %301, %305 : vector<8x128xf32>
    %c1_i32_81 = arith.constant 1 : i32
    %c7_i32_82 = arith.constant 7 : i32
    %307 = arith.subi %c7_i32_82, %c1_i32_81 : i32
    %308 = vector.shape_cast %306 : vector<8x128xf32> to vector<1x8x128xf32>
    %309 = arith.index_cast %307 : i32 to index
    %c0_83 = arith.constant 0 : index
    %c0_84 = arith.constant 0 : index
    %310 = vector.load %arg13[%309, %c0_83, %c0_84] : memref<8x8x128xf32, #tpu.memory_space<vmem>>, vector<1x8x128xf32>
    tpu.vector_store %arg13[%309, %c0_83, %c0_84], %308 {strides = array<i32>} : memref<8x8x128xf32, #tpu.memory_space<vmem>>, vector<1x8x128xf32>,
    %311 = arith.truncf %306 : vector<8x128xf32> to vector<8x128xbf16>
    %cst_85 = arith.constant dense<0.000000e+00> : vector<8x512xf32>
    %312 = tpu.matmul %311, %19, %cst_85 {dimension_numbers = #tpu.dot_dimension_numbers<[1], [0], [0], [1], [0, 0, 1, 1], [], []>} : vector<8x128xbf16>, vector<128x512xbf16>, vector<8x512xf32> -> vector<8x512xf32>
    %313 = arith.addf %312, %24 : vector<8x512xf32>
    %314 = vector.extract_strided_slice %313 {offsets = [0, 0], sizes = [8, 128], strides = [1, 1]} : vector<8x512xf32> to vector<8x128xf32>
    %315 = arith.negf %314 : vector<8x128xf32>
    %316 = math.exp %315 : vector<8x128xf32>
    %cst_86 = arith.constant 1.000000e+00 : f32
    %317 = vector.broadcast %cst_86 : f32 to vector<8x128xf32>
    %318 = arith.addf %317, %316 : vector<8x128xf32>
    %319 = arith.divf %317, %318 : vector<8x128xf32>
    %320 = vector.extract_strided_slice %313 {offsets = [0, 128], sizes = [8, 128], strides = [1, 1]} : vector<8x512xf32> to vector<8x128xf32>
    %321 = arith.negf %320 : vector<8x128xf32>
    %322 = math.exp %321 : vector<8x128xf32>
    %cst_87 = arith.constant 1.000000e+00 : f32
    %323 = vector.broadcast %cst_87 : f32 to vector<8x128xf32>
    %324 = arith.addf %323, %322 : vector<8x128xf32>
    %325 = arith.divf %323, %324 : vector<8x128xf32>
    %326 = vector.extract_strided_slice %313 {offsets = [0, 256], sizes = [8, 128], strides = [1, 1]} : vector<8x512xf32> to vector<8x128xf32>
    %327 = math.tanh %326 : vector<8x128xf32>
    %328 = vector.extract_strided_slice %313 {offsets = [0, 384], sizes = [8, 128], strides = [1, 1]} : vector<8x512xf32> to vector<8x128xf32>
    %329 = arith.negf %328 : vector<8x128xf32>
    %330 = math.exp %329 : vector<8x128xf32>
    %cst_88 = arith.constant 1.000000e+00 : f32
    %331 = vector.broadcast %cst_88 : f32 to vector<8x128xf32>
    %332 = arith.addf %331, %330 : vector<8x128xf32>
    %333 = arith.divf %331, %332 : vector<8x128xf32>
    %334 = arith.mulf %325, %304 : vector<8x128xf32>
    %335 = arith.mulf %319, %327 : vector<8x128xf32>
    %336 = arith.addf %334, %335 : vector<8x128xf32>
    %337 = math.tanh %336 : vector<8x128xf32>
    %338 = arith.mulf %333, %337 : vector<8x128xf32>
    %c2_i32_89 = arith.constant 2 : i32
    %c7_i32_90 = arith.constant 7 : i32
    %339 = arith.subi %c7_i32_90, %c2_i32_89 : i32
    %340 = vector.shape_cast %338 : vector<8x128xf32> to vector<1x8x128xf32>
    %341 = arith.index_cast %339 : i32 to index
    %c0_91 = arith.constant 0 : index
    %c0_92 = arith.constant 0 : index
    %342 = vector.load %arg13[%341, %c0_91, %c0_92] : memref<8x8x128xf32, #tpu.memory_space<vmem>>, vector<1x8x128xf32>
    tpu.vector_store %arg13[%341, %c0_91, %c0_92], %340 {strides = array<i32>} : memref<8x8x128xf32, #tpu.memory_space<vmem>>, vector<1x8x128xf32>,
    %343 = arith.truncf %338 : vector<8x128xf32> to vector<8x128xbf16>
    %cst_93 = arith.constant dense<0.000000e+00> : vector<8x512xf32>
    %344 = tpu.matmul %343, %19, %cst_93 {dimension_numbers = #tpu.dot_dimension_numbers<[1], [0], [0], [1], [0, 0, 1, 1], [], []>} : vector<8x128xbf16>, vector<128x512xbf16>, vector<8x512xf32> -> vector<8x512xf32>
    %345 = arith.addf %344, %24 : vector<8x512xf32>
    %346 = vector.extract_strided_slice %345 {offsets = [0, 0], sizes = [8, 128], strides = [1, 1]} : vector<8x512xf32> to vector<8x128xf32>
    %347 = arith.negf %346 : vector<8x128xf32>
    %348 = math.exp %347 : vector<8x128xf32>
    %cst_94 = arith.constant 1.000000e+00 : f32
    %349 = vector.broadcast %cst_94 : f32 to vector<8x128xf32>
    %350 = arith.addf %349, %348 : vector<8x128xf32>
    %351 = arith.divf %349, %350 : vector<8x128xf32>
    %352 = vector.extract_strided_slice %345 {offsets = [0, 128], sizes = [8, 128], strides = [1, 1]} : vector<8x512xf32> to vector<8x128xf32>
    %353 = arith.negf %352 : vector<8x128xf32>
    %354 = math.exp %353 : vector<8x128xf32>
    %cst_95 = arith.constant 1.000000e+00 : f32
    %355 = vector.broadcast %cst_95 : f32 to vector<8x128xf32>
    %356 = arith.addf %355, %354 : vector<8x128xf32>
    %357 = arith.divf %355, %356 : vector<8x128xf32>
    %358 = vector.extract_strided_slice %345 {offsets = [0, 256], sizes = [8, 128], strides = [1, 1]} : vector<8x512xf32> to vector<8x128xf32>
    %359 = math.tanh %358 : vector<8x128xf32>
    %360 = vector.extract_strided_slice %345 {offsets = [0, 384], sizes = [8, 128], strides = [1, 1]} : vector<8x512xf32> to vector<8x128xf32>
    %361 = arith.negf %360 : vector<8x128xf32>
    %362 = math.exp %361 : vector<8x128xf32>
    %cst_96 = arith.constant 1.000000e+00 : f32
    %363 = vector.broadcast %cst_96 : f32 to vector<8x128xf32>
    %364 = arith.addf %363, %362 : vector<8x128xf32>
    %365 = arith.divf %363, %364 : vector<8x128xf32>
    %366 = arith.mulf %357, %336 : vector<8x128xf32>
    %367 = arith.mulf %351, %359 : vector<8x128xf32>
    %368 = arith.addf %366, %367 : vector<8x128xf32>
    %369 = math.tanh %368 : vector<8x128xf32>
    %370 = arith.mulf %365, %369 : vector<8x128xf32>
    %c3_i32_97 = arith.constant 3 : i32
    %c7_i32_98 = arith.constant 7 : i32
    %371 = arith.subi %c7_i32_98, %c3_i32_97 : i32
    %372 = vector.shape_cast %370 : vector<8x128xf32> to vector<1x8x128xf32>
    %373 = arith.index_cast %371 : i32 to index
    %c0_99 = arith.constant 0 : index
    %c0_100 = arith.constant 0 : index
    %374 = vector.load %arg13[%373, %c0_99, %c0_100] : memref<8x8x128xf32, #tpu.memory_space<vmem>>, vector<1x8x128xf32>
    tpu.vector_store %arg13[%373, %c0_99, %c0_100], %372 {strides = array<i32>} : memref<8x8x128xf32, #tpu.memory_space<vmem>>, vector<1x8x128xf32>,
    %375 = arith.truncf %370 : vector<8x128xf32> to vector<8x128xbf16>
    %cst_101 = arith.constant dense<0.000000e+00> : vector<8x512xf32>
    %376 = tpu.matmul %375, %19, %cst_101 {dimension_numbers = #tpu.dot_dimension_numbers<[1], [0], [0], [1], [0, 0, 1, 1], [], []>} : vector<8x128xbf16>, vector<128x512xbf16>, vector<8x512xf32> -> vector<8x512xf32>
    %377 = arith.addf %376, %24 : vector<8x512xf32>
    %378 = vector.extract_strided_slice %377 {offsets = [0, 0], sizes = [8, 128], strides = [1, 1]} : vector<8x512xf32> to vector<8x128xf32>
    %379 = arith.negf %378 : vector<8x128xf32>
    %380 = math.exp %379 : vector<8x128xf32>
    %cst_102 = arith.constant 1.000000e+00 : f32
    %381 = vector.broadcast %cst_102 : f32 to vector<8x128xf32>
    %382 = arith.addf %381, %380 : vector<8x128xf32>
    %383 = arith.divf %381, %382 : vector<8x128xf32>
    %384 = vector.extract_strided_slice %377 {offsets = [0, 128], sizes = [8, 128], strides = [1, 1]} : vector<8x512xf32> to vector<8x128xf32>
    %385 = arith.negf %384 : vector<8x128xf32>
    %386 = math.exp %385 : vector<8x128xf32>
    %cst_103 = arith.constant 1.000000e+00 : f32
    %387 = vector.broadcast %cst_103 : f32 to vector<8x128xf32>
    %388 = arith.addf %387, %386 : vector<8x128xf32>
    %389 = arith.divf %387, %388 : vector<8x128xf32>
    %390 = vector.extract_strided_slice %377 {offsets = [0, 256], sizes = [8, 128], strides = [1, 1]} : vector<8x512xf32> to vector<8x128xf32>
    %391 = math.tanh %390 : vector<8x128xf32>
    %392 = vector.extract_strided_slice %377 {offsets = [0, 384], sizes = [8, 128], strides = [1, 1]} : vector<8x512xf32> to vector<8x128xf32>
    %393 = arith.negf %392 : vector<8x128xf32>
    %394 = math.exp %393 : vector<8x128xf32>
    %cst_104 = arith.constant 1.000000e+00 : f32
    %395 = vector.broadcast %cst_104 : f32 to vector<8x128xf32>
    %396 = arith.addf %395, %394 : vector<8x128xf32>
    %397 = arith.divf %395, %396 : vector<8x128xf32>
    %398 = arith.mulf %389, %368 : vector<8x128xf32>
    %399 = arith.mulf %383, %391 : vector<8x128xf32>
    %400 = arith.addf %398, %399 : vector<8x128xf32>
    %401 = math.tanh %400 : vector<8x128xf32>
    %402 = arith.mulf %397, %401 : vector<8x128xf32>
    %c4_i32_105 = arith.constant 4 : i32
    %c7_i32_106 = arith.constant 7 : i32
    %403 = arith.subi %c7_i32_106, %c4_i32_105 : i32
    %404 = vector.shape_cast %402 : vector<8x128xf32> to vector<1x8x128xf32>
    %405 = arith.index_cast %403 : i32 to index
    %c0_107 = arith.constant 0 : index
    %c0_108 = arith.constant 0 : index
    %406 = vector.load %arg13[%405, %c0_107, %c0_108] : memref<8x8x128xf32, #tpu.memory_space<vmem>>, vector<1x8x128xf32>
    tpu.vector_store %arg13[%405, %c0_107, %c0_108], %404 {strides = array<i32>} : memref<8x8x128xf32, #tpu.memory_space<vmem>>, vector<1x8x128xf32>,
    %407 = arith.truncf %402 : vector<8x128xf32> to vector<8x128xbf16>
    %cst_109 = arith.constant dense<0.000000e+00> : vector<8x512xf32>
    %408 = tpu.matmul %407, %19, %cst_109 {dimension_numbers = #tpu.dot_dimension_numbers<[1], [0], [0], [1], [0, 0, 1, 1], [], []>} : vector<8x128xbf16>, vector<128x512xbf16>, vector<8x512xf32> -> vector<8x512xf32>
    %409 = arith.addf %408, %24 : vector<8x512xf32>
    %410 = vector.extract_strided_slice %409 {offsets = [0, 0], sizes = [8, 128], strides = [1, 1]} : vector<8x512xf32> to vector<8x128xf32>
    %411 = arith.negf %410 : vector<8x128xf32>
    %412 = math.exp %411 : vector<8x128xf32>
    %cst_110 = arith.constant 1.000000e+00 : f32
    %413 = vector.broadcast %cst_110 : f32 to vector<8x128xf32>
    %414 = arith.addf %413, %412 : vector<8x128xf32>
    %415 = arith.divf %413, %414 : vector<8x128xf32>
    %416 = vector.extract_strided_slice %409 {offsets = [0, 128], sizes = [8, 128], strides = [1, 1]} : vector<8x512xf32> to vector<8x128xf32>
    %417 = arith.negf %416 : vector<8x128xf32>
    %418 = math.exp %417 : vector<8x128xf32>
    %cst_111 = arith.constant 1.000000e+00 : f32
    %419 = vector.broadcast %cst_111 : f32 to vector<8x128xf32>
    %420 = arith.addf %419, %418 : vector<8x128xf32>
    %421 = arith.divf %419, %420 : vector<8x128xf32>
    %422 = vector.extract_strided_slice %409 {offsets = [0, 256], sizes = [8, 128], strides = [1, 1]} : vector<8x512xf32> to vector<8x128xf32>
    %423 = math.tanh %422 : vector<8x128xf32>
    %424 = vector.extract_strided_slice %409 {offsets = [0, 384], sizes = [8, 128], strides = [1, 1]} : vector<8x512xf32> to vector<8x128xf32>
    %425 = arith.negf %424 : vector<8x128xf32>
    %426 = math.exp %425 : vector<8x128xf32>
    %cst_112 = arith.constant 1.000000e+00 : f32
    %427 = vector.broadcast %cst_112 : f32 to vector<8x128xf32>
    %428 = arith.addf %427, %426 : vector<8x128xf32>
    %429 = arith.divf %427, %428 : vector<8x128xf32>
    %430 = arith.mulf %421, %400 : vector<8x128xf32>
    %431 = arith.mulf %415, %423 : vector<8x128xf32>
    %432 = arith.addf %430, %431 : vector<8x128xf32>
    %433 = math.tanh %432 : vector<8x128xf32>
    %434 = arith.mulf %429, %433 : vector<8x128xf32>
    %c5_i32_113 = arith.constant 5 : i32
    %c7_i32_114 = arith.constant 7 : i32
    %435 = arith.subi %c7_i32_114, %c5_i32_113 : i32
    %436 = vector.shape_cast %434 : vector<8x128xf32> to vector<1x8x128xf32>
    %437 = arith.index_cast %435 : i32 to index
    %c0_115 = arith.constant 0 : index
    %c0_116 = arith.constant 0 : index
    %438 = vector.load %arg13[%437, %c0_115, %c0_116] : memref<8x8x128xf32, #tpu.memory_space<vmem>>, vector<1x8x128xf32>
    tpu.vector_store %arg13[%437, %c0_115, %c0_116], %436 {strides = array<i32>} : memref<8x8x128xf32, #tpu.memory_space<vmem>>, vector<1x8x128xf32>,
    %439 = arith.truncf %434 : vector<8x128xf32> to vector<8x128xbf16>
    %cst_117 = arith.constant dense<0.000000e+00> : vector<8x512xf32>
    %440 = tpu.matmul %439, %19, %cst_117 {dimension_numbers = #tpu.dot_dimension_numbers<[1], [0], [0], [1], [0, 0, 1, 1], [], []>} : vector<8x128xbf16>, vector<128x512xbf16>, vector<8x512xf32> -> vector<8x512xf32>
    %441 = arith.addf %440, %24 : vector<8x512xf32>
    %442 = vector.extract_strided_slice %441 {offsets = [0, 0], sizes = [8, 128], strides = [1, 1]} : vector<8x512xf32> to vector<8x128xf32>
    %443 = arith.negf %442 : vector<8x128xf32>
    %444 = math.exp %443 : vector<8x128xf32>
    %cst_118 = arith.constant 1.000000e+00 : f32
    %445 = vector.broadcast %cst_118 : f32 to vector<8x128xf32>
    %446 = arith.addf %445, %444 : vector<8x128xf32>
    %447 = arith.divf %445, %446 : vector<8x128xf32>
    %448 = vector.extract_strided_slice %441 {offsets = [0, 128], sizes = [8, 128], strides = [1, 1]} : vector<8x512xf32> to vector<8x128xf32>
    %449 = arith.negf %448 : vector<8x128xf32>
    %450 = math.exp %449 : vector<8x128xf32>
    %cst_119 = arith.constant 1.000000e+00 : f32
    %451 = vector.broadcast %cst_119 : f32 to vector<8x128xf32>
    %452 = arith.addf %451, %450 : vector<8x128xf32>
    %453 = arith.divf %451, %452 : vector<8x128xf32>
    %454 = vector.extract_strided_slice %441 {offsets = [0, 256], sizes = [8, 128], strides = [1, 1]} : vector<8x512xf32> to vector<8x128xf32>
    %455 = math.tanh %454 : vector<8x128xf32>
    %456 = vector.extract_strided_slice %441 {offsets = [0, 384], sizes = [8, 128], strides = [1, 1]} : vector<8x512xf32> to vector<8x128xf32>
    %457 = arith.negf %456 : vector<8x128xf32>
    %458 = math.exp %457 : vector<8x128xf32>
    %cst_120 = arith.constant 1.000000e+00 : f32
    %459 = vector.broadcast %cst_120 : f32 to vector<8x128xf32>
    %460 = arith.addf %459, %458 : vector<8x128xf32>
    %461 = arith.divf %459, %460 : vector<8x128xf32>
    %462 = arith.mulf %453, %432 : vector<8x128xf32>
    %463 = arith.mulf %447, %455 : vector<8x128xf32>
    %464 = arith.addf %462, %463 : vector<8x128xf32>
    %465 = math.tanh %464 : vector<8x128xf32>
    %466 = arith.mulf %461, %465 : vector<8x128xf32>
    %c6_i32_121 = arith.constant 6 : i32
    %c7_i32_122 = arith.constant 7 : i32
    %467 = arith.subi %c7_i32_122, %c6_i32_121 : i32
    %468 = vector.shape_cast %466 : vector<8x128xf32> to vector<1x8x128xf32>
    %469 = arith.index_cast %467 : i32 to index
    %c0_123 = arith.constant 0 : index
    %c0_124 = arith.constant 0 : index
    %470 = vector.load %arg13[%469, %c0_123, %c0_124] : memref<8x8x128xf32, #tpu.memory_space<vmem>>, vector<1x8x128xf32>
    tpu.vector_store %arg13[%469, %c0_123, %c0_124], %468 {strides = array<i32>} : memref<8x8x128xf32, #tpu.memory_space<vmem>>, vector<1x8x128xf32>,
    %471 = arith.truncf %466 : vector<8x128xf32> to vector<8x128xbf16>
    %cst_125 = arith.constant dense<0.000000e+00> : vector<8x512xf32>
    %472 = tpu.matmul %471, %19, %cst_125 {dimension_numbers = #tpu.dot_dimension_numbers<[1], [0], [0], [1], [0, 0, 1, 1], [], []>} : vector<8x128xbf16>, vector<128x512xbf16>, vector<8x512xf32> -> vector<8x512xf32>
    %473 = arith.addf %472, %24 : vector<8x512xf32>
    %474 = vector.extract_strided_slice %473 {offsets = [0, 0], sizes = [8, 128], strides = [1, 1]} : vector<8x512xf32> to vector<8x128xf32>
    %475 = arith.negf %474 : vector<8x128xf32>
    %476 = math.exp %475 : vector<8x128xf32>
    %cst_126 = arith.constant 1.000000e+00 : f32
    %477 = vector.broadcast %cst_126 : f32 to vector<8x128xf32>
    %478 = arith.addf %477, %476 : vector<8x128xf32>
    %479 = arith.divf %477, %478 : vector<8x128xf32>
    %480 = vector.extract_strided_slice %473 {offsets = [0, 128], sizes = [8, 128], strides = [1, 1]} : vector<8x512xf32> to vector<8x128xf32>
    %481 = arith.negf %480 : vector<8x128xf32>
    %482 = math.exp %481 : vector<8x128xf32>
    %cst_127 = arith.constant 1.000000e+00 : f32
    %483 = vector.broadcast %cst_127 : f32 to vector<8x128xf32>
    %484 = arith.addf %483, %482 : vector<8x128xf32>
    %485 = arith.divf %483, %484 : vector<8x128xf32>
    %486 = vector.extract_strided_slice %473 {offsets = [0, 256], sizes = [8, 128], strides = [1, 1]} : vector<8x512xf32> to vector<8x128xf32>
    %487 = math.tanh %486 : vector<8x128xf32>
    %488 = vector.extract_strided_slice %473 {offsets = [0, 384], sizes = [8, 128], strides = [1, 1]} : vector<8x512xf32> to vector<8x128xf32>
    %489 = arith.negf %488 : vector<8x128xf32>
    %490 = math.exp %489 : vector<8x128xf32>
    %cst_128 = arith.constant 1.000000e+00 : f32
    %491 = vector.broadcast %cst_128 : f32 to vector<8x128xf32>
    %492 = arith.addf %491, %490 : vector<8x128xf32>
    %493 = arith.divf %491, %492 : vector<8x128xf32>
    %494 = arith.mulf %485, %464 : vector<8x128xf32>
    %495 = arith.mulf %479, %487 : vector<8x128xf32>
    %496 = arith.addf %494, %495 : vector<8x128xf32>
    %497 = math.tanh %496 : vector<8x128xf32>
    %498 = arith.mulf %493, %497 : vector<8x128xf32>
    %c7_i32_129 = arith.constant 7 : i32
    %c7_i32_130 = arith.constant 7 : i32
    %499 = arith.subi %c7_i32_130, %c7_i32_129 : i32
    %500 = vector.shape_cast %498 : vector<8x128xf32> to vector<1x8x128xf32>
    %501 = arith.index_cast %499 : i32 to index
    %c0_131 = arith.constant 0 : index
    %c0_132 = arith.constant 0 : index
    %502 = vector.load %arg13[%501, %c0_131, %c0_132] : memref<8x8x128xf32, #tpu.memory_space<vmem>>, vector<1x8x128xf32>
    tpu.vector_store %arg13[%501, %c0_131, %c0_132], %500 {strides = array<i32>} : memref<8x8x128xf32, #tpu.memory_space<vmem>>, vector<1x8x128xf32>,
    %503 = arith.truncf %498 : vector<8x128xf32> to vector<8x128xbf16>
    %cst_133 = arith.constant dense<0.000000e+00> : vector<8x512xf32>
    %504 = tpu.matmul %503, %19, %cst_133 {dimension_numbers = #tpu.dot_dimension_numbers<[1], [0], [0], [1], [0, 0, 1, 1], [], []>} : vector<8x128xbf16>, vector<128x512xbf16>, vector<8x512xf32> -> vector<8x512xf32>
    %505 = arith.addf %504, %24 : vector<8x512xf32>
    %506 = vector.extract_strided_slice %505 {offsets = [0, 0], sizes = [8, 128], strides = [1, 1]} : vector<8x512xf32> to vector<8x128xf32>
    %507 = arith.negf %506 : vector<8x128xf32>
    %508 = math.exp %507 : vector<8x128xf32>
    %cst_134 = arith.constant 1.000000e+00 : f32
    %509 = vector.broadcast %cst_134 : f32 to vector<8x128xf32>
    %510 = arith.addf %509, %508 : vector<8x128xf32>
    %511 = arith.divf %509, %510 : vector<8x128xf32>
    %512 = vector.extract_strided_slice %505 {offsets = [0, 128], sizes = [8, 128], strides = [1, 1]} : vector<8x512xf32> to vector<8x128xf32>
    %513 = arith.negf %512 : vector<8x128xf32>
    %514 = math.exp %513 : vector<8x128xf32>
    %cst_135 = arith.constant 1.000000e+00 : f32
    %515 = vector.broadcast %cst_135 : f32 to vector<8x128xf32>
    %516 = arith.addf %515, %514 : vector<8x128xf32>
    %517 = arith.divf %515, %516 : vector<8x128xf32>
    %518 = vector.extract_strided_slice %505 {offsets = [0, 256], sizes = [8, 128], strides = [1, 1]} : vector<8x512xf32> to vector<8x128xf32>
    %519 = math.tanh %518 : vector<8x128xf32>
    %520 = vector.extract_strided_slice %505 {offsets = [0, 384], sizes = [8, 128], strides = [1, 1]} : vector<8x512xf32> to vector<8x128xf32>
    %521 = arith.negf %520 : vector<8x128xf32>
    %522 = math.exp %521 : vector<8x128xf32>
    %cst_136 = arith.constant 1.000000e+00 : f32
    %523 = vector.broadcast %cst_136 : f32 to vector<8x128xf32>
    %524 = arith.addf %523, %522 : vector<8x128xf32>
    %525 = arith.divf %523, %524 : vector<8x128xf32>
    %526 = arith.mulf %517, %496 : vector<8x128xf32>
    %527 = arith.mulf %511, %519 : vector<8x128xf32>
    %528 = arith.addf %526, %527 : vector<8x128xf32>
    %529 = math.tanh %528 : vector<8x128xf32>
    %530 = arith.mulf %525, %529 : vector<8x128xf32>
    %c8_i32_137 = arith.constant 8 : i32
    %c0_138 = arith.constant 0 : index
    %c0_139 = arith.constant 0 : index
    %c0_140 = arith.constant 0 : index
    %531 = vector.load %arg13[%c0_138, %c0_139, %c0_140] : memref<8x8x128xf32, #tpu.memory_space<vmem>>, vector<8x8x128xf32>
    %532 = vector.shape_cast %531 : vector<8x8x128xf32> to vector<64x128xf32>
    %533 = arith.truncf %532 : vector<64x128xf32> to vector<64x128xbf16>
    %cst_141 = arith.constant dense<0.000000e+00> : vector<64x8xf32>
    %534 = tpu.matmul %533, %4, %cst_141 {dimension_numbers = #tpu.dot_dimension_numbers<[1], [0], [0], [1], [0, 0, 1, 1], [], []>} : vector<64x128xbf16>, vector<128x8xbf16>, vector<64x8xf32> -> vector<64x8xf32>
    %535 = vector.broadcast %7 : vector<1x8xf32> to vector<64x8xf32>
    %536 = arith.addf %534, %535 : vector<64x8xf32>
    %537 = vector.shape_cast %536 : vector<64x8xf32> to vector<8x8x8xf32>
    %c0_142 = arith.constant 0 : index
    %c0_143 = arith.constant 0 : index
    %c0_144 = arith.constant 0 : index
    %538 = vector.load %arg10[%c0_142, %c0_143, %c0_144] : memref<8x8x8xf32, #tpu.memory_space<vmem>>, vector<8x8x8xf32>
    tpu.vector_store %arg10[%c0_142, %c0_143, %c0_144], %537 {strides = array<i32>} : memref<8x8x8xf32, #tpu.memory_space<vmem>>, vector<8x8x8xf32>,
    return
  }
  func.func @transform_0(%arg0: i32) -> (i32, i32, i32) {
    %c0_i32 = arith.constant 0 : i32
    %c0_i32_0 = arith.constant 0 : i32
    %c0_i32_1 = arith.constant 0 : i32
    return %c0_i32, %arg0, %c0_i32_0 : i32, i32, i32
  }
  func.func @transform_1(%arg0: i32) -> (i32, i32) {
    %c0_i32 = arith.constant 0 : i32
    %c0_i32_0 = arith.constant 0 : i32
    %c0_i32_1 = arith.constant 0 : i32
    return %c0_i32, %c0_i32_0 : i32, i32
  }
  func.func @transform_2(%arg0: i32) -> (i32, i32) {
    %c0_i32 = arith.constant 0 : i32
    %c0_i32_0 = arith.constant 0 : i32
    %c0_i32_1 = arith.constant 0 : i32
    return %c0_i32, %c0_i32_0 : i32, i32
  }
  func.func @transform_3(%arg0: i32) -> (i32, i32) {
    %c0_i32 = arith.constant 0 : i32
    %c0_i32_0 = arith.constant 0 : i32
    %c0_i32_1 = arith.constant 0 : i32
    return %c0_i32, %c0_i32_0 : i32, i32
  }
  func.func @transform_4(%arg0: i32) -> (i32, i32) {
    %c0_i32 = arith.constant 0 : i32
    %c0_i32_0 = arith.constant 0 : i32
    %c0_i32_1 = arith.constant 0 : i32
    return %c0_i32, %c0_i32_0 : i32, i32
  }
  func.func @transform_5(%arg0: i32) -> (i32, i32) {
    %c0_i32 = arith.constant 0 : i32
    %c0_i32_0 = arith.constant 0 : i32
    %c0_i32_1 = arith.constant 0 : i32
    return %c0_i32, %c0_i32_0 : i32, i32
  }
  func.func @transform_6(%arg0: i32) -> (i32, i32) {
    %c0_i32 = arith.constant 0 : i32
    %c0_i32_0 = arith.constant 0 : i32
    %c0_i32_1 = arith.constant 0 : i32
    return %c0_i32, %c0_i32_0 : i32, i32
  }
  func.func @transform_7(%arg0: i32) -> (i32, i32) {
    %c0_i32 = arith.constant 0 : i32
    %c0_i32_0 = arith.constant 0 : i32
    %c0_i32_1 = arith.constant 0 : i32
    return %c0_i32, %c0_i32_0 : i32, i32
  }
  func.func @transform_8(%arg0: i32) -> (i32, i32) {
    %c0_i32 = arith.constant 0 : i32
    %c0_i32_0 = arith.constant 0 : i32
    %c0_i32_1 = arith.constant 0 : i32
    return %c0_i32, %c0_i32_0 : i32, i32
  }
  func.func @transform_9(%arg0: i32) -> (i32, i32, i32) {
    %c0_i32 = arith.constant 0 : i32
    %c0_i32_0 = arith.constant 0 : i32
    %c0_i32_1 = arith.constant 0 : i32
    return %c0_i32, %arg0, %c0_i32_0 : i32, i32, i32
  }
}

</mosaic_0001>

<bundles_post_ra>
// kernel: tpu_custom_call.1
= control target key start
LH: loop header
LB: loop body
LE: loop exit
PB: predicated region body
PF: predicated region fallthrough
CT: control target
= control target key end

     0   :  { %s5720_s0 = inlined_call_operand.vmem [shape: f32[8,16,8], index: 0, kind: input, shape index: {}]   ;;  %s5721_s1 = inlined_call_operand.vmem [shape: bf16[8,512], index: 1, kind: input, shape index: {}]   ;;  %s5722_s2 = inlined_call_operand.hbm [shape: bf16[128,512], index: 2, kind: input, shape index: {}]   ;;  %s5723_s3 = inlined_call_operand.vmem [shape: f32[1,512], index: 3, kind: input, shape index: {}]   ;;  %s5724_s4 = inlined_call_operand.vmem [shape: bf16[8,512], index: 4, kind: input, shape index: {}]   ;;  %s5725_s5 = inlined_call_operand.hbm [shape: bf16[128,512], index: 5, kind: input, shape index: {}]   ;;  %s5726_s6 = inlined_call_operand.vmem [shape: f32[1,512], index: 6, kind: input, shape index: {}]   ;;  %s5727_s7 = inlined_call_operand.vmem [shape: bf16[128,8], index: 7, kind: input, shape index: {}]   ;;  %s5728_s8 = inlined_call_operand.vmem [shape: f32[1,8], index: 8, kind: input, shape index: {}]   ;;  %s5729_s9 = inlined_call_operand.vmem [shape: f32[8,16,8], index: 9, kind: output, shape index: {}]  }
   0x1   :  { %5735 = sst [smem:[#allocation99_spill]] %s5722_s2 }
   0x2   :  { %14 = vsyncpa [#allocation7], 0 }
   0x3   :  { %15 = vsyncpa [#allocation9], 0  ;;  %s4191_s30 = smov 0   ;;  %s4193_s10 = smov 0  }
   0x4   :  { %s4195_s11 = smov 0  }
   0x5 LB: > { %s4207_s12 = sadd.s32 4294967295, %s4134_s11   ;;  %s4210_s13 = sadd.s32 1, %s4134_s11   ;;  %s4134_s11 = sphi %s4195_s11, %s5925_s11   ;;  %s4130_s10 = sphi %s4193_s10, %s5924_s10   ;;  %s4126_s30 = sphi %s4191_s30, %s5923_s30  }
   0x6   : > { %s25_s14 = ssub.s32 %s4134_s11, %s4210_s13  ;;  %s28_s15 = sadd.s32 1, %s4130_s10 }
   0x7   : > { %p26_p0 = scmp.eq.s32.totalorder %s25_s14, 0  ;;  %p35_p1 = scmp.ne.s32.totalorder %s4130_s10, %s4126_s30 }
   0x8   : > { %p36_p2 = scmp.eq.s32.totalorder %s4134_s11, 0  ;;  %p233_p3 = scmp.eq.s32.totalorder %s4207_s12, 1 }
   0x9   : > { %s4220_s16 = scalar_select %p26_p0, %s4130_s10, %s28_s15  }
   0xa   : > { %p4222_p4 = por %p36_p2, %p35_p1  ;;  %p4226_p5 = por %p233_p3, %p35_p1 }
   0xb   : > { %p3434_p6 = scmp.ge.s32.totalorder %s4134_s11, 1  ;;  %p246_p7 = scmp.lt.s32.totalorder %s4134_s11, 3 }
   0xc   : > { %p3762_p8 = scmp.eq.s32.totalorder %s4207_s12, 0  ;;  %s5739_s2 = sld [smem:[#allocation99_spill]] }
   0xd   : > { %p4233_p9 = pnand %p3434_p6, %p246_p7  ;;  %s4136_s23 = smov [#allocation6]  }
   0xe   : > { %s262_s24 = sshll.u32 %s4136_s23, 4  ;;  %s280_s27 = sshll.u32 %s5725_s5, 4  ;;  %s263_s24 = int_to_ptr.vmem [resolvable:$true] %s262_s24  ;;  %s281_s27 = int_to_ptr.hbm [resolvable:$true] %s280_s27 }
   0xf   : > { %p3755_p10 = pneg %p4233_p9  ;;  %s4137_s28 = smov 256  }
  0x10   : > { %s4138_s29 = smov 16   ;;  %s4139_s14 = smov [#allocation8]  }
  0x11   : > { %p3756_p11 = pnand %p3762_p8, %p3755_p10  ;;  %s282_s15 = sshll.u32 %s4139_s14, 4  ;;  %s283_s15 = int_to_ptr.vmem [resolvable:$true] %s282_s15 }
  0x12   : > { %s260_s22 = sshll.u32 %s5739_s2, 4  ;;  %p3437_p12 = scmp.ge.s32.totalorder %s4134_s11, 2  ;;  %s261_s22 = int_to_ptr.hbm [resolvable:$true] %s260_s22 }
  0x13   : > { %3758 = dma.hbm_to_vmem [thread:$0]  (!%p3756_p11), %s261_s22, 4096, %s263_s24, [#allocation7], %s4137_s28, %s4137_s28, %s4138_s29  }
  0x14   : > { %3761 = dma.hbm_to_vmem [thread:$0]  (!%p3756_p11), %s281_s27, 4096, %s283_s15, [#allocation9], %s4137_s28, %s4137_s28, %s4138_s29  }
  0x15   : > { %301 = sbr.rel (%p3437_p12) target bundleno = 38 (0x26), region = 48 }
  0x1a   : > { %304 = sbr.rel (!%p4222_p4) target bundleno = 38 (0x26), region = 52  ;;  %s306_s20 = sand.u32 (%p4222_p4), 1, %s4130_s10  }
  0x1b   : > { %s3439_s21 = sshll.u32 (%p4222_p4), %s4134_s11, 3  ;;  %s3438_s23 = sshll.u32 (%p4222_p4), %s306_s20, 6 }
  0x1c   : > { %s310_s2 = scalar_lea.vmem (%p4222_p4), %s5720_s0, %s3439_s21  ;;  %s308_s22 = scalar_lea.vmem (%p4222_p4), [#allocation5], %s3438_s23 }
  0x1d   : > { %v353_v0 = vld [vmem:[%s310_s2] sm:$0xff] (%p4222_p4)  ;;  %v355_v1 = vld [vmem:[%s310_s2 + $0x10] sm:$0xff] (%p4222_p4) }
  0x1e   : > { %v357_v2 = vld [vmem:[%s310_s2 + $0x20] sm:$0xff] (%p4222_p4)  ;;  %354 = vst [vmem:[%s308_s22] sm:$0xff] (%p4222_p4), %v353_v0  ;;  %v359_v3 = vld [vmem:[%s310_s2 + $0x30] sm:$0xff] (%p4222_p4) }
  0x1f   : > { %356 = vst [vmem:[%s308_s22 + $0x8] sm:$0xff] %v355_v1  ;;  %v361_v4 = vld [vmem:[%s310_s2 + $0x40] sm:$0xff]  ;;  %v363_v5 = vld [vmem:[%s310_s2 + $0x50] sm:$0xff] }
  0x20   : > { %358 = vst [vmem:[%s308_s22 + $0x10] sm:$0xff] %v357_v2  ;;  %v365_v6 = vld [vmem:[%s310_s2 + $0x60] sm:$0xff]  ;;  %v367_v7 = vld [vmem:[%s310_s2 + $0x70] sm:$0xff] }
  0x21   : > { %360 = vst [vmem:[%s308_s22 + $0x18] sm:$0xff] %v359_v3 }
  0x22   : > { %362 = vst [vmem:[%s308_s22 + $0x20] sm:$0xff] %v361_v4 }
  0x23   : > { %364 = vst [vmem:[%s308_s22 + $0x28] sm:$0xff] %v363_v5 }
  0x24   : > { %366 = vst [vmem:[%s308_s22 + $0x30] sm:$0xff] %v365_v6 }
  0x25   : > { %368 = vst [vmem:[%s308_s22 + $0x38] sm:$0xff] %v367_v7 }
  0x26 PF: > { %377 = sbr.rel (%p4233_p9) target bundleno = 3070 (0xbfe), region = 90 }
  0x2b   : > { %s380_s11 = sand.u32 1, %s4126_s30  }
  0x2c   : > { %s4258_s17 = sshll.u32 %s380_s11, 6 }
  0x2d   : > { %s4261_s24 = scalar_lea.vmem [#allocation5], %s4258_s17 }
  0x2e   : > { %4117 = dma.done.wait (%p3762_p8), [#allocation7], 4096  }
  0x2f   : > { %4119 = vsyncadd (%p3762_p8), [#allocation7], 4294963200 }
  0x30   : > { %4121 = dma.done.wait (%p3762_p8), [#allocation9], 4096  }
  0x31   : > { %4123 = vsyncadd (%p3762_p8), [#allocation9], 4294963200  ;;  %v425_v8 = vld [vmem:[%s5721_s1] sm:$0xff]  ;;  %v426_v9 = vld [vmem:[%s5721_s1 + $0x8] sm:$0xff]  ;;  %vm556_vm0 = vcmask 1043456   ;;  %vm543_vm1 = vcmask 64512  }
  0x32   : > { %v459_v10 = vld [vmem:[%s5724_s4] sm:$0xff]  ;;  %v535_v11 = vunpack.c.l.b16 %v425_v8  ;;  %v537_v12 = vunpack.c.l.b16 %v426_v9  ;;  %v513_v15 = vld [vmem:[%s4261_s24 + $0x8] sm:$0xff]  ;;  %v518_v16 = vld [vmem:[%s4261_s24 + $0x30] sm:$0xff]  ;;  %v536_v18 = vunpack.c.h.b16 %v425_v8  ;;  %v538_v19 = vunpack.c.h.b16 %v426_v9 }
  0x33   : > { %v823_v13 = vunpack.c.l.b16 %v459_v10  ;;  %v512_v14 = vld [vmem:[%s4261_s24] sm:$0xff]  ;;  %v519_v17 = vld [vmem:[%s4261_s24 + $0x38] sm:$0xff]  ;;  %v460_v23 = vld [vmem:[%s5724_s4 + $0x8] sm:$0xff]  ;;  %v824_v43 = vunpack.c.h.b16 %v459_v10  ;;  %vm1222_vm2 = vcmask 1040384   ;;  %vm1224_vm3 = vcmask 1042434  }
  0x34   : > { %v539_v20 = vpack.c.b16 %v535_v11, %v535_v11  ;;  %v541_v21 = vpack.c.b16 %v537_v12, %v537_v12  ;;  %v520_v24 = vpack.c.bf16 %v513_v15, %v512_v14  ;;  %v540_v25 = vpack.c.b16 %v536_v18, %v536_v18  ;;  %v4296_v33 = vld [vmem:[%s5727_s7] sm:$0xff]  ;;  %v514_v40 = vld [vmem:[%s4261_s24 + $0x10] sm:$0xff]  ;;  %v515_v41 = vld [vmem:[%s4261_s24 + $0x18] sm:$0xff] }
  0x35   : > { %v827_v22 = vpack.c.b16 %v823_v13, %v823_v13  ;;  %v542_v26 = vpack.c.b16 %v538_v19, %v538_v19  ;;  %v825_v27 = vunpack.c.l.b16 %v460_v23  ;;  %v4290_v31 = vpack.c.bf16 %v519_v17, %v518_v16  ;;  %v4312_v44 = vld [vmem:[%s5727_s7 + $0x8] sm:$0xff]  ;;  %v516_v47 = vld [vmem:[%s4261_s24 + $0x20] sm:$0xff]  ;;  %v4325_v50 = vld [vmem:[%s5727_s7 + $0x10] sm:$0xff] }
  0x36   : > { %v558_v28 = vsel %vm556_vm0, %v539_v20, 0  ;;  %v564_v29 = vsel %vm556_vm0, %v541_v21, 0  ;;  %v561_v32 = vsel %vm556_vm0, %v540_v25, 0  ;;  %v826_v35 = vunpack.c.h.b16 %v460_v23  ;;  %v517_v48 = vld [vmem:[%s4261_s24 + $0x28] sm:$0xff]  ;;  %v4335_v51 = vld [vmem:[%s5727_s7 + $0x18] sm:$0xff]  ;;  %v4346_v52 = vld [vmem:[%s5727_s7 + $0x20] sm:$0xff] }
  0x37   : > { %v856_v30 = vsel %vm556_vm0, %v827_v22, 0  ;;  %576 = vmatpush.bf16.msra.mxu1 %v558_v28  ;;  %3746 = vmatpush.bf16.msra.mxu3 %v558_v28  ;;  %v567_v34 = vsel %vm556_vm0, %v542_v26, 0  ;;  %v829_v36 = vpack.c.b16 %v825_v27, %v825_v27  ;;  %v521_v42 = vpack.c.bf16 %v515_v41, %v514_v40  ;;  %v4358_v53 = vld [vmem:[%s5727_s7 + $0x28] sm:$0xff]  ;;  %v3643_v54 = vld [vmem:[#allocation6 + $0xe0] sm:$0xf]  ;;  %v4384_v5 = vld [vmem:[%s5727_s7 + $0x30] sm:$0xff] }
  0x38   : > { %634 = vmatpush.bf16.msra.mxu2 %v564_v29  ;;  %874 = vmatpush.bf16.msra.mxu0 %v856_v30  ;;  %v830_v38 = vpack.c.b16 %v826_v35, %v826_v35  ;;  %v828_v45 = vpack.c.b16 %v824_v43, %v824_v43  ;;  %v522_v49 = vpack.c.bf16 %v517_v48, %v516_v47  ;;  %v3736_v55 = vld [vmem:[#allocation6 + $0xec] sm:$0xf0]  ;;  %v3734_v57 = vld [vmem:[#allocation6 + $0xe4] sm:$0xf]  ;;  %v3645_v58 = vld [vmem:[#allocation6 + $0xf0] sm:$0xf0] }
  0x39   : > { %v862_v37 = vsel %vm556_vm0, %v829_v36, 0  ;;  %v4363_v56 = vor.u32 %v3736_v55, %v3643_v54  ;;  %v3627_v59 = vld [vmem:[#allocation6 + $0xc0] sm:$0xf]  ;;  %v4369_v60 = vor.u32 %v3734_v57, %v3645_v58  ;;  %v3732_v61 = vld [vmem:[#allocation6 + $0xcc] sm:$0xf0]  ;;  %v4412_v21 = vld [vmem:[%s5727_s7 + $0x38] sm:$0xff] }
  0x3a   : > { %3445 = vmatmul.msk.bf16.vlgmr.msra.gmra.mxu1 %vm543_vm1, %v520_v24  ;;  %3448 = vmatmul.msk.bf16.vlgmr.msra.gmra.mxu3 %vm543_vm1, %v4290_v31  ;;  %v865_v39 = vsel %vm556_vm0, %v830_v38, 0  ;;  %v859_v46 = vsel %vm556_vm0, %v828_v45, 0  ;;  %v4372_v62 = vor.u32 %v3732_v61, %v3627_v59  ;;  %v3611_v63 = vld [vmem:[#allocation6 + $0xa0] sm:$0xf]  ;;  %v3728_v0 = vld [vmem:[#allocation6 + $0xac] sm:$0xf0] }
  0x3b   : > { %605 = vmatpush.bf16.msrb.mxu1 %v561_v32  ;;  %663 = vmatpush.bf16.msrb.mxu3 %v567_v34  ;;  %v4376_v1 = vor.u32 %v3728_v0, %v3611_v63  ;;  %v3595_v2 = vld [vmem:[#allocation6 + $0x80] sm:$0xf]  ;;  %v3724_v3 = vld [vmem:[#allocation6 + $0x8c] sm:$0xf0]  ;;  %v3730_v9 = vld [vmem:[#allocation6 + $0xc4] sm:$0xf] }
  0x3c   : > { %3453 = vmatmul.msk.bf16.vlgmr.msra.gmra.mxu2 %vm543_vm1, %v520_v24  ;;  %3493 = vmatmul.msk.bf16.vlgmr.msra.gmra.mxu0 %vm543_vm1, %v4296_v33  ;;  %v4379_v4 = vor.u32 %v3724_v3, %v3595_v2  ;;  %v3579_v6 = vld [vmem:[#allocation6 + $0x60] sm:$0xf]  ;;  %v3720_v7 = vld [vmem:[#allocation6 + $0x6c] sm:$0xf0]  ;;  %v3629_v10 = vld [vmem:[#allocation6 + $0xd0] sm:$0xf0] }
  0x3d   : > { %972 = vmatpush.bf16.msrb.mxu2 %v862_v37  ;;  %1170 = vmatpush.bf16.msrb.mxu0 %v856_v30  ;;  %v4391_v8 = vor.u32 %v3720_v7, %v3579_v6  ;;  %v4397_v11 = vor.u32 %v3730_v9, %v3629_v10  ;;  %v3563_v12 = vld [vmem:[#allocation6 + $0x40] sm:$0xf]  ;;  %v3716_v13 = vld [vmem:[#allocation6 + $0x4c] sm:$0xf0]  ;;  %v3726_v22 = vld [vmem:[#allocation6 + $0xa4] sm:$0xf] }
  0x3e   : > { %v4401_v14 = vor.u32 %v3716_v13, %v3563_v12  ;;  %v3547_v15 = vld [vmem:[#allocation6 + $0x20] sm:$0xf]  ;;  %v3712_v16 = vld [vmem:[#allocation6 + $0x2c] sm:$0xf0]  ;;  %v3613_v23 = vld [vmem:[#allocation6 + $0xb0] sm:$0xf0] }
  0x3f   : > { %1021 = vmatpush.bf16.msra.mxu3 %v865_v39  ;;  %923 = vmatpush.bf16.msra.mxu1 %v859_v46  ;;  %v4404_v17 = vor.u32 %v3712_v16, %v3547_v15  ;;  %v3531_v18 = vld [vmem:[#allocation6] sm:$0xf]  ;;  %v3708_v19 = vld [vmem:[#allocation6 + $0xc] sm:$0xf0]  ;;  %v3722_v30 = vld [vmem:[#allocation6 + $0x84] sm:$0xf] }
  0x40   : > { %v4407_v20 = vor.u32 %v3708_v19, %v3531_v18  ;;  %v511_v25 = vld [vmem:[%s5728_s8] sm:$0x1]  ;;  %v5730_v48 = vmov 0   ;;  %v3581_v54 = vld [vmem:[#allocation6 + $0x70] sm:$0xf0]  ;;  %vm1226_vm4 = vcmask 1041408  }
  0x41   : > { %1183 = vmatpush.bf16.msra.mxu2 %v859_v46  ;;  %1403 = vmatpush.bf16.msra.mxu0 %v4363_v56  ;;  %v4431_v27 = vpack.c.bf16 %v511_v25, %v511_v25  ;;  %v4438_v29 = vld [vmem:[%s5723_s3] sm:$0xf]  ;;  %v3735_v13 = vld [vmem:[#allocation6 + $0xec] sm:$0xf]  ;;  %v3653_v15 = vld [vmem:[#allocation6 + $0xf8] sm:$0xf0] }
  0x42   : > { %v4449_v32 = vperm.slane %v4438_v29, 0  ;;  %v4467_v40 = vperm.slane %v4438_v29, 2  ;;  %v4505_v0 = vperm.slane %v4438_v29, 3  ;;  %v3714_v16 = vld [vmem:[#allocation6 + $0x44] sm:$0xf]  ;;  %v4527_v19 = vor.u32 %v3735_v13, %v3653_v15  ;;  %s5678_s24 = scalar_lea.vmem [#allocation10], %s4258_s17 }
  0x43   : > { %v3565_v18 = vld [vmem:[#allocation6 + $0x50] sm:$0xf0]  ;;  %v3731_v25 = vld [vmem:[#allocation6 + $0xcc] sm:$0xf]  ;;  %v3605_v13 = vld [vmem:[#allocation6 + $0x98] sm:$0xf0] }
  0x44   : > { %5743 = vst [vmem:[#allocation16_spill] sm:$0xff] %v4467_v40  ;;  %s3703_s17 = sshll.u32 (%p4226_p5), %s4207_s12, 3 }
  0x45   : > { %1404 = vmatpush.bf16.msra.mxu0 %v4372_v62  ;;  %s3292_s27 = scalar_lea.vmem (%p4226_p5), %s5729_s9, %s3703_s17 }
  0x49   : > { %1405 = vmatpush.bf16.msra.mxu0 %v4376_v1 }
  0x4a   : > { %3446 = vmatmul.msk.bf16.gmra.mxu1 %vm543_vm1, %v521_v42  ;;  %3457 = vmatmul.msk.bf16.vlgmr.msrb.gmra.mxu3 %vm543_vm1, %v520_v24 }
  0x4b   : > { %1209 = vmatpush.bf16.msrb.mxu3 %v865_v39 }
  0x4c   : > { %3454 = vmatmul.msk.bf16.gmra.mxu2 %vm543_vm1, %v521_v42  ;;  %3494 = vmatmul.msk.bf16.gmra.mxu0 %vm543_vm1, %v4312_v44 }
  0x4d   : > { %1406 = vmatpush.bf16.msra.mxu0 %v4379_v4 }
  0x51   : > { %1407 = vmatpush.bf16.msra.mxu0 %v4391_v8 }
  0x55   : > { %1408 = vmatpush.bf16.msra.mxu0 %v4401_v14 }
  0x59   : > { %1409 = vmatpush.bf16.msra.mxu0 %v4404_v17 }
  0x5a   : > { %3447 = vmatmul.msk.bf16.gmra.mxu1 %vm543_vm1, %v522_v49  ;;  %3458 = vmatmul.msk.bf16.gmra.mxu3 %vm543_vm1, %v521_v42 }
  0x5c   : > { %3455 = vmatmul.msk.bf16.gmra.mxu2 %vm543_vm1, %v522_v49  ;;  %3495 = vmatmul.msk.bf16.gmra.mxu0 %vm543_vm1, %v4325_v50 }
  0x5d   : > { %1410 = vmatpush.bf16.msra.mxu0 %v4407_v20 }
  0x6a   : > { %3449 = vmatmul.msk.bf16.vlgmr.msrb.gmra.mxu1 %vm543_vm1, %v520_v24  ;;  %3459 = vmatmul.msk.bf16.gmra.mxu3 %vm543_vm1, %v522_v49  ;;  %v4423_v24 = vor.u32 %v3726_v22, %v3613_v23  ;;  %v4529_v22 = vor.u32 %v3714_v16, %v3565_v18 }
  0x6b   : > { %1416 = vmatpush.bf16.msrb.mxu1 %v4369_v60 }
  0x6c   : > { %3456 = vmatmul.msk.bf16.gmra.mxu2 %vm543_vm1, %v4290_v31  ;;  %3496 = vmatmul.msk.bf16.gmra.mxu0 %vm543_vm1, %v4335_v51 }
  0x6f   : > { %1417 = vmatpush.bf16.msrb.mxu1 %v4397_v11 }
  0x73   : > { %1418 = vmatpush.bf16.msrb.mxu1 %v4423_v24 }
  0x7a   : > { %3450 = vmatmul.msk.bf16.gmra.mxu1 %vm543_vm1, %v521_v42  ;;  %3460 = vmatmul.msk.bf16.gmra.mxu3 %vm543_vm1, %v4290_v31 }
  0x7c   : > { %3497 = vmatmul.msk.bf16.gmra.mxu0 %vm543_vm1, %v4346_v52  ;;  %3509 = vmatmul.msk.bf16.vlgmr.msrb.gmra.mxu2 %vm543_vm1, %v4296_v33 }
  0x7d   : > { %1196 = vmatpush.bf16.msrb.mxu2 %v862_v37 }
  0x8a   : > { %3451 = vmatmul.msk.bf16.gmra.mxu1 %vm543_vm1, %v522_v49  ;;  %3517 = vmatmul.msk.bf16.vlgmr.msra.gmra.mxu3 %vm543_vm1, %v4296_v33  ;;  %v3718_v49 = vld [vmem:[#allocation6 + $0x64] sm:$0xf] }
  0x8b   : > { %v4489_v55 = vor.u32 %v3718_v49, %v3581_v54  ;;  %1442 = vmatpush.bf16.msra.mxu3 %v4527_v19  ;;  %v3727_v49 = vld [vmem:[#allocation6 + $0xac] sm:$0xf]  ;;  %v3621_v54 = vld [vmem:[#allocation6 + $0xb8] sm:$0xf0] }
  0x8c   : > { %3498 = vmatmul.msk.bf16.gmra.mxu0 %vm543_vm1, %v4358_v53  ;;  %3510 = vmatmul.msk.bf16.gmra.mxu2 %vm543_vm1, %v4312_v44 }
  0x9a   : > { %3452 = vmatmul.msk.bf16.gmra.mxu1 %vm543_vm1, %v4290_v31  ;;  %3518 = vmatmul.msk.bf16.gmra.mxu3 %vm543_vm1, %v4312_v44  ;;  %v3597_v31 = vld [vmem:[#allocation6 + $0x90] sm:$0xf0] }
  0x9c   : > { %3499 = vmatmul.msk.bf16.gmra.mxu0 %vm543_vm1, %v4384_v5  ;;  %3511 = vmatmul.msk.bf16.gmra.mxu2 %vm543_vm1, %v4325_v50 }
  0xaa   : > { %3501 = vmatmul.msk.bf16.vlgmr.msra.gmra.mxu1 %vm543_vm1, %v4296_v33  ;;  %3519 = vmatmul.msk.bf16.gmra.mxu3 %vm543_vm1, %v4325_v50  ;;  %v4451_v33 = vor.u32 %v3722_v30, %v3597_v31  ;;  %v3637_v31 = vld [vmem:[#allocation6 + $0xd8] sm:$0xf0] }
  0xac   : > { %3500 = vmatmul.msk.bf16.gmra.mxu0 %vm543_vm1, %v4412_v21  ;;  %3512 = vmatmul.msk.bf16.gmra.mxu2 %vm543_vm1, %v4335_v51 }
  0xad   : > { %1419 = vmatpush.bf16.msrb.mxu1 %v4451_v33 }
  0xb1   : > { %1420 = vmatpush.bf16.msrb.mxu1 %v4489_v55 }
  0xb5   : > { %1421 = vmatpush.bf16.msrb.mxu1 %v4529_v22 }
  0xb7   : > { %v4429_v26 = vpop.f32.mrf.mxu1 }
  0xb9   : > { %v4433_v28 = vpop.f32.mrf.mxu0 }
  0xba   : > { %5740 = vst [vmem:[#allocation13_spill] sm:$0xff] %v4433_v28  ;;  %3502 = vmatmul.msk.bf16.gmra.mxu1 %vm543_vm1, %v4312_v44  ;;  %3520 = vmatmul.msk.bf16.gmra.mxu3 %vm543_vm1, %v4335_v51 }
  0xbc   : > { %3513 = vmatmul.msk.bf16.gmra.mxu2 %vm543_vm1, %v4346_v52  ;;  %3525 = vmatmul.msk.bf16.vlgmr.msrb.gmra.mxu0 %vm543_vm1, %v4431_v27 }
  0xbd   : > { %1528 = vmatpush.bf16.msrb.mxu0 %v4363_v56  ;;  %v593_v34 = vpop.f32.mrf.mxu3 }
  0xbe   : > { %v4455_v35 = vadd.f32 %v593_v34, %v4449_v32 }
  0xbf   : > { %v4457_v36 = vpop.f32.mrf.mxu2  ;;  %v580_v37 = vpop.f32.mrf.mxu1 }
  0xc0   : > { %5741 = vst [vmem:[#allocation14_spill] sm:$0xff] %v4455_v35  ;;  %v4461_v38 = vadd.f32 %v580_v37, %v4449_v32 }
  0xc1   : > { %v4463_v39 = vpop.f32.mrf.mxu0  ;;  %1529 = vmatpush.bf16.msrb.mxu0 %v4372_v62 }
  0xc2   : > { %5742 = vst [vmem:[#allocation15_spill] sm:$0xff] %v4463_v39 }
  0xc5   : > { %1530 = vmatpush.bf16.msrb.mxu0 %v4376_v1  ;;  %v595_v41 = vpop.f32.mrf.mxu3 }
  0xc6   : > { %v4471_v42 = vadd.f32 %v595_v41, %v4449_v32  ;;  %v4540_v41 = vor.u32 %v3731_v25, %v3637_v31  ;;  %v3719_v25 = vld [vmem:[#allocation6 + $0x6c] sm:$0xf]  ;;  %v3710_v31 = vld [vmem:[#allocation6 + $0x24] sm:$0xf] }
  0xc7   : > { %v638_v43 = vpop.f32.mrf.mxu2  ;;  %v583_v45 = vpop.f32.mrf.mxu1 }
  0xc8   : > { %5744 = vst [vmem:[#allocation17_spill] sm:$0xff] %v4471_v42  ;;  %v4474_v44 = vadd.f32 %v638_v43, %v4467_v40  ;;  %v4477_v46 = vadd.f32 %v583_v45, %v4449_v32  ;;  %1443 = vmatpush.bf16.msra.mxu3 %v4540_v41 }
  0xc9   : > { %v4479_v47 = vpop.f32.mrf.mxu0  ;;  %1531 = vmatpush.bf16.msrb.mxu0 %v4379_v4 }
  0xca   : > { %5745 = vst [vmem:[#allocation18_spill] sm:$0xff] %v4479_v47  ;;  %3503 = vmatmul.msk.bf16.gmra.mxu1 %vm543_vm1, %v4325_v50  ;;  %3521 = vmatmul.msk.bf16.gmra.mxu3 %vm543_vm1, %v4346_v52 }
  0xcc   : > { %3514 = vmatmul.msk.bf16.gmra.mxu2 %vm543_vm1, %v4358_v53  ;;  %1411 = vmatmul.bf16.vlgmr.msra.gmra.mxu0 %v5730_v48  ;;  %v3573_v48 = vld [vmem:[#allocation6 + $0x58] sm:$0xf0] }
  0xcd   : > { %1532 = vmatpush.bf16.msrb.mxu0 %v4391_v8  ;;  %v4492_v57 = vpop.f32.mrf.mxu3 }
  0xcf   : > { %v641_v58 = vpop.f32.mrf.mxu2  ;;  %v585_v59 = vpop.f32.mrf.mxu1 }
  0xd0   : > { %v4496_v50 = vadd.f32 %v641_v58, %v4467_v40  ;;  %v4499_v61 = vadd.f32 %v585_v59, %v4449_v32  ;;  %v4549_v58 = vor.u32 %v3727_v49, %v3621_v54 }
  0xd1   : > { %v4501_v63 = vpop.f32.mrf.mxu0  ;;  %1533 = vmatpush.bf16.msrb.mxu0 %v4401_v14 }
  0xd2   : > { %5746 = vst [vmem:[#allocation19_spill] sm:$0xff] %v4496_v50  ;;  %1444 = vmatpush.bf16.msra.mxu3 %v4549_v58 }
  0xd3   : > { %5747 = vst [vmem:[#allocation20_spill] sm:$0xff] %v4499_v61 }
  0xd4   : > { %5748 = vst [vmem:[#allocation21_spill] sm:$0xff] %v4501_v63 }
  0xd5   : > { %1534 = vmatpush.bf16.msrb.mxu0 %v4404_v17  ;;  %v667_v2 = vpop.f32.mrf.mxu3 }
  0xd6   : > { %v4509_v6 = vadd.f32 %v667_v2, %v4505_v0  ;;  %v3723_v2 = vld [vmem:[#allocation6 + $0x8c] sm:$0xf] }
  0xd7   : > { %v643_v3 = vpop.f32.mrf.mxu2  ;;  %v588_v9 = vpop.f32.mrf.mxu1  ;;  %v4561_v18 = vor.u32 %v3723_v2, %v3605_v13  ;;  %v3715_v2 = vld [vmem:[#allocation6 + $0x4c] sm:$0xf] }
  0xd8   : > { %v4512_v7 = vadd.f32 %v643_v3, %v4467_v40  ;;  %v4515_v10 = vadd.f32 %v588_v9, %v4449_v32 }
  0xd9   : > { %v4517_v12 = vpop.f32.mrf.mxu0  ;;  %1535 = vmatpush.bf16.msrb.mxu0 %v4407_v20  ;;  %1445 = vmatpush.bf16.msra.mxu3 %v4561_v18 }
  0xda   : > { %5749 = vst [vmem:[#allocation22_spill] sm:$0xff] %v4512_v7  ;;  %3504 = vmatmul.msk.bf16.gmra.mxu1 %vm543_vm1, %v4335_v51  ;;  %3522 = vmatmul.msk.bf16.gmra.mxu3 %vm543_vm1, %v4358_v53 }
  0xdb   : > { %5750 = vst [vmem:[#allocation23_spill] sm:$0xff] %v4515_v10 }
  0xdc   : > { %5751 = vst [vmem:[#allocation24_spill] sm:$0xff] %v4517_v12  ;;  %3515 = vmatmul.msk.bf16.gmra.mxu2 %vm543_vm1, %v4384_v5  ;;  %v3733_v12 = vld [vmem:[#allocation6 + $0xd4] sm:$0xf0] }
  0xdd   : > { %1653 = vmatpush.bf16.msra.mxu0 %v4363_v56  ;;  %v670_v23 = vpop.f32.mrf.mxu3 }
  0xde   : > { %v4534_v30 = vadd.f32 %v670_v23, %v4505_v0 }
  0xdf   : > { %v646_v51 = vpop.f32.mrf.mxu2  ;;  %v590_v37 = vpop.f32.mrf.mxu1 }
  0xe0   : > { %v4538_v34 = vadd.f32 %v646_v51, %v4467_v40  ;;  %v4543_v43 = vadd.f32 %v590_v37, %v4449_v32  ;;  %v3589_v51 = vld [vmem:[#allocation6 + $0x78] sm:$0xf0]  ;;  %v3549_v37 = vld [vmem:[#allocation6 + $0x30] sm:$0xf0] }
  0xe1   : > { %1654 = vmatpush.bf16.msra.mxu0 %v4372_v62  ;;  %v4545_v45 = vpop.f32.mrf.mxu0  ;;  %v4573_v49 = vor.u32 %v3719_v25, %v3589_v51  ;;  %v4575_v54 = vor.u32 %v3710_v31, %v3549_v37  ;;  %v4589_v31 = vor.u32 %v3715_v2, %v3573_v48  ;;  %v3707_v48 = vld [vmem:[#allocation6 + $0xc] sm:$0xf] }
  0xe2   : > { %5752 = vst [vmem:[#allocation25_spill] sm:$0xff] %v4538_v34 }
  0xe3   : > { %5753 = vst [vmem:[#allocation26_spill] sm:$0xff] %v4543_v43  ;;  %1446 = vmatpush.bf16.msra.mxu3 %v4573_v49  ;;  %1422 = vmatpush.bf16.msrb.mxu1 %v4575_v54 }
  0xe4   : > { %5754 = vst [vmem:[#allocation27_spill] sm:$0xff] %v4545_v45  ;;  %v3635_v45 = vld [vmem:[#allocation6 + $0xc8] sm:$0xf] }
  0xe5   : > { %1655 = vmatpush.bf16.msra.mxu0 %v4376_v1  ;;  %v672_v59 = vpop.f32.mrf.mxu3 }
  0xe6   : > { %v4554_v9 = vadd.f32 %v672_v59, %v4505_v0 }
  0xe7   : > { %v648_v3 = vpop.f32.mrf.mxu2  ;;  %v4559_v16 = vpop.f32.mrf.mxu1  ;;  %1447 = vmatpush.bf16.msra.mxu3 %v4589_v31 }
  0xe8   : > { %5755 = vst [vmem:[#allocation28_spill] sm:$0xff] %v4554_v9  ;;  %v4557_v15 = vadd.f32 %v648_v3, %v4467_v40 }
  0xe9   : > { %1656 = vmatpush.bf16.msra.mxu0 %v4379_v4  ;;  %v4563_v23 = vpop.f32.mrf.mxu0 }
  0xea   : > { %5756 = vst [vmem:[#allocation29_spill] sm:$0xff] %v4557_v15  ;;  %3505 = vmatmul.msk.bf16.gmra.mxu1 %vm543_vm1, %v4346_v52  ;;  %3523 = vmatmul.msk.bf16.gmra.mxu3 %vm543_vm1, %v4384_v5  ;;  %v4580_v52 = vperm.slane %v4438_v29, 1  ;;  %v3711_v29 = vld [vmem:[#allocation6 + $0x2c] sm:$0xf]  ;;  %v3721_v15 = vld [vmem:[#allocation6 + $0x74] sm:$0xf0] }
  0xeb   : > { %5757 = vst [vmem:[#allocation30_spill] sm:$0xff] %v4563_v23 }
  0xec   : > { %3516 = vmatmul.msk.bf16.gmra.mxu2 %vm543_vm1, %v4412_v21 }
  0xed   : > { %1657 = vmatpush.bf16.msra.mxu0 %v4391_v8  ;;  %v675_v59 = vpop.f32.mrf.mxu3 }
  0xee   : > { %v4583_v13 = vadd.f32 %v675_v59, %v4505_v0  ;;  %v3557_v59 = vld [vmem:[#allocation6 + $0x38] sm:$0xf0] }
  0xef   : > { %v651_v3 = vpop.f32.mrf.mxu2  ;;  %v609_v51 = vpop.f32.mrf.mxu1  ;;  %v4598_v35 = vor.u32 %v3711_v29, %v3557_v59 }
  0xf0   : > { %5758 = vst [vmem:[#allocation31_spill] sm:$0xff] %v4583_v13  ;;  %v4587_v25 = vadd.f32 %v651_v3, %v4467_v40  ;;  %v4592_v37 = vadd.f32 %v609_v51, %v4580_v52  ;;  %v3651_v3 = vld [vmem:[#allocation6 + $0xe8] sm:$0xf]  ;;  %v3541_v51 = vld [vmem:[#allocation6 + $0x18] sm:$0xf0] }
  0xf1   : > { %1658 = vmatpush.bf16.msra.mxu0 %v4401_v14  ;;  %v4594_v42 = vpop.f32.mrf.mxu0  ;;  %1448 = vmatpush.bf16.msra.mxu3 %v4598_v35 }
  0xf2   : > { %5759 = vst [vmem:[#allocation32_spill] sm:$0xff] %v4587_v25  ;;  %v3737_v25 = vld [vmem:[#allocation6 + $0xf4] sm:$0xf0] }
  0xf3   : > { %5760 = vst [vmem:[#allocation33_spill] sm:$0xff] %v4594_v42  ;;  %v4606_v42 = vor.u32 %v3707_v48, %v3541_v51  ;;  %v4613_v59 = vor.u32 %v3737_v25, %v3651_v3  ;;  %v3533_v48 = vld [vmem:[#allocation6 + $0x10] sm:$0xf0]  ;;  %v4625_v25 = vor.u32 %v3733_v12, %v3635_v45  ;;  %v3619_v51 = vld [vmem:[#allocation6 + $0xa8] sm:$0xf] }
  0xf4   : > { %v3603_v45 = vld [vmem:[#allocation6 + $0x88] sm:$0xf] }
  0xf5   : > { %1659 = vmatpush.bf16.msra.mxu0 %v4404_v17  ;;  %v4600_v39 = vpop.f32.mrf.mxu3  ;;  %1449 = vmatpush.bf16.msra.mxu3 %v4606_v42 }
  0xf6   : > { %5761 = vst [vmem:[#allocation34_spill] sm:$0xff] %v4600_v39 }
  0xf7   : > { %v4604_v2 = vpop.f32.mrf.mxu2  ;;  %v612_v28 = vpop.f32.mrf.mxu1 }
  0xf8   : > { %5762 = vst [vmem:[#allocation35_spill] sm:$0xff] %v4604_v2  ;;  %v4609_v23 = vadd.f32 %v612_v28, %v4580_v52  ;;  %v3706_v2 = vld [vmem:[#allocation6 + $0x4] sm:$0xf] }
  0xf9   : > { %1660 = vmatpush.bf16.msra.mxu0 %v4407_v20  ;;  %v4611_v29 = vpop.f32.mrf.mxu0  ;;  %v4622_v28 = vor.u32 %v3706_v2, %v3533_v48  ;;  %v3725_v48 = vld [vmem:[#allocation6 + $0x94] sm:$0xf0] }
  0xfa   : > { %5763 = vst [vmem:[#allocation36_spill] sm:$0xff] %v4611_v29  ;;  %3506 = vmatmul.msk.bf16.gmra.mxu1 %vm543_vm1, %v4358_v53  ;;  %3524 = vmatmul.msk.bf16.gmra.mxu3 %vm543_vm1, %v4412_v21  ;;  %v3729_v29 = vld [vmem:[#allocation6 + $0xb4] sm:$0xf0] }
  0xfb   : > { %1423 = vmatpush.bf16.msrb.mxu1 %v4622_v28  ;;  %v4639_v12 = vor.u32 %v3729_v29, %v3619_v51 }
  0xfc   : > { %3526 = vmatmul.msk.bf16.vlgmr.msra.gmra.mxu2 %vm543_vm1, %v4431_v27 }
  0xfd   : > { %1429 = vmatpush.bf16.msra.mxu2 %v4613_v59  ;;  %v680_v3 = vpop.f32.mrf.mxu3 }
  0xfe   : > { %v4629_v53 = vadd.f32 %v680_v3, %v4505_v0  ;;  %v4643_v3 = vor.u32 %v3725_v48, %v3603_v45  ;;  %v3571_v45 = vld [vmem:[#allocation6 + $0x48] sm:$0xf]  ;;  %v3717_v48 = vld [vmem:[#allocation6 + $0x54] sm:$0xf0] }
  0xff   : > { %v4631_v63 = vpop.f32.mrf.mxu2  ;;  %1541 = vmatpush.bf16.msra.mxu1 %v4369_v60  ;;  %v4634_v47 = vpop.f32.mrf.mxu1 }
 0x100   : > { %5764 = vst [vmem:[#allocation37_spill] sm:$0xff] %v4629_v53 }
 0x101   : > { %5765 = vst [vmem:[#allocation38_spill] sm:$0xff] %v4631_v63  ;;  %v4636_v2 = vpop.f32.mrf.mxu0  ;;  %1430 = vmatpush.bf16.msra.mxu2 %v4625_v25  ;;  %v3587_v63 = vld [vmem:[#allocation6 + $0x68] sm:$0xf] }
 0x102   : > { %5766 = vst [vmem:[#allocation39_spill] sm:$0xff] %v4634_v47  ;;  %v4656_v43 = vor.u32 %v3721_v15, %v3587_v63  ;;  %v3555_v15 = vld [vmem:[#allocation6 + $0x28] sm:$0xf] }
 0x103   : > { %5767 = vst [vmem:[#allocation40_spill] sm:$0xff] %v4636_v2  ;;  %1542 = vmatpush.bf16.msra.mxu1 %v4397_v11 }
 0x105   : > { %1431 = vmatpush.bf16.msra.mxu2 %v4639_v12  ;;  %v4645_v53 = vpop.f32.mrf.mxu3 }
 0x106   : > { %5768 = vst [vmem:[#allocation41_spill] sm:$0xff] %v4645_v53  ;;  %v3713_v53 = vld [vmem:[#allocation6 + $0x34] sm:$0xf0] }
 0x107   : > { %v4647_v39 = vpop.f32.mrf.mxu2  ;;  %1543 = vmatpush.bf16.msra.mxu1 %v4423_v24  ;;  %v617_v2 = vpop.f32.mrf.mxu1 }
 0x108   : > { %5769 = vst [vmem:[#allocation42_spill] sm:$0xff] %v4647_v39  ;;  %v4651_v29 = vadd.f32 %v617_v2, %v4580_v52  ;;  %v4666_v2 = vor.u32 %v3717_v48, %v3571_v45  ;;  %v3539_v45 = vld [vmem:[#allocation6 + $0x8] sm:$0xf]  ;;  %v3709_v48 = vld [vmem:[#allocation6 + $0x14] sm:$0xf0] }
 0x109   : > { %v4653_v51 = vpop.f32.mrf.mxu0  ;;  %1432 = vmatpush.bf16.msra.mxu2 %v4643_v3 }
 0x10a   : > { %5770 = vst [vmem:[#allocation43_spill] sm:$0xff] %v4651_v29  ;;  %3507 = vmatmul.msk.bf16.gmra.mxu1 %vm543_vm1, %v4384_v5  ;;  %3528 = vmatmul.msk.bf16.vlgmr.msrb.gmra.mxu3 %vm543_vm1, %v4431_v27 }
 0x10b   : > { %5771 = vst [vmem:[#allocation44_spill] sm:$0xff] %v4653_v51  ;;  %1567 = vmatpush.bf16.msrb.mxu3 %v4527_v19  ;;  %1544 = vmatpush.bf16.msra.mxu1 %v4451_v33 }
 0x10c   : > { %3527 = vmatmul.msk.bf16.vlgmr.msrb.gmra.mxu2 %vm543_vm1, %v4431_v27  ;;  %v4679_v27 = vor.u32 %v3713_v53, %v3555_v15 }
 0x10d   : > { %1433 = vmatpush.bf16.msra.mxu2 %v4656_v43  ;;  %v4669_v63 = vpop.f32.mrf.mxu3 }
 0x10e   : > { %5772 = vst [vmem:[#allocation45_spill] sm:$0xff] %v4669_v63  ;;  %v4684_v63 = vor.u32 %v3709_v48, %v3539_v45  ;;  %v5780_v45 = vmov 0  }
 0x10f   : > { %v4671_v39 = vpop.f32.mrf.mxu2  ;;  %v4673_v5 = vpop.f32.mrf.mxu1  ;;  %1568 = vmatpush.bf16.msrb.mxu3 %v4540_v41  ;;  %1545 = vmatpush.bf16.msra.mxu1 %v4489_v55 }
 0x110   : > { %5773 = vst [vmem:[#allocation46_spill] sm:$0xff] %v4671_v39 }
 0x111   : > { %5774 = vst [vmem:[#allocation47_spill] sm:$0xff] %v4673_v5  ;;  %v4676_v51 = vpop.f32.mrf.mxu0  ;;  %1434 = vmatpush.bf16.msra.mxu2 %v4666_v2 }
 0x112   : > { %5775 = vst [vmem:[#allocation48_spill] sm:$0xff] %v4676_v51 }
 0x113   : > { %1569 = vmatpush.bf16.msrb.mxu3 %v4549_v58  ;;  %1546 = vmatpush.bf16.msra.mxu1 %v4529_v22 }
 0x115   : > { %1435 = vmatpush.bf16.msra.mxu2 %v4679_v27  ;;  %v4687_v39 = vpop.f32.mrf.mxu3 }
 0x116   : > { %5776 = vst [vmem:[#allocation49_spill] sm:$0xff] %v4687_v39 }
 0x117   : > { %v4689_v5 = vpop.f32.mrf.mxu2  ;;  %v622_v51 = vpop.f32.mrf.mxu1  ;;  %1570 = vmatpush.bf16.msrb.mxu3 %v4561_v18  ;;  %1547 = vmatpush.bf16.msra.mxu1 %v4575_v54 }
 0x118   : > { %5777 = vst [vmem:[#allocation50_spill] sm:$0xff] %v4689_v5  ;;  %v4693_v53 = vadd.f32 %v622_v51, %v4580_v52 }
 0x119   : > { %v4695_v15 = vpop.f32.mrf.mxu0  ;;  %1436 = vmatpush.bf16.msra.mxu2 %v4684_v63 }
 0x11a   : > { %5778 = vst [vmem:[#allocation51_spill] sm:$0xff] %v4693_v53  ;;  %3508 = vmatmul.msk.bf16.gmra.mxu1 %vm543_vm1, %v4412_v21  ;;  %1450 = vmatmul.bf16.vlgmr.msra.gmra.mxu3 %v5780_v45 }
 0x11b   : > { %5779 = vst [vmem:[#allocation52_spill] sm:$0xff] %v4695_v15  ;;  %1571 = vmatpush.bf16.msrb.mxu3 %v4573_v49  ;;  %1548 = vmatpush.bf16.msra.mxu1 %v4622_v28 }
 0x11c   : > { %1437 = vmatmul.bf16.vlgmr.msra.gmra.mxu2 %v5780_v45 }
 0x11d   : > { %1554 = vmatpush.bf16.msrb.mxu2 %v4613_v59  ;;  %v4706_v51 = vpop.f32.mrf.mxu3 }
 0x11e   : > { %5781 = vst [vmem:[#allocation53_spill] sm:$0xff] %v4706_v51 }
 0x11f   : > { %v4709_v48 = vpop.f32.mrf.mxu2  ;;  %v4711_v53 = vpop.f32.mrf.mxu1  ;;  %1572 = vmatpush.bf16.msrb.mxu3 %v4589_v31 }
 0x120   : > { %5782 = vst [vmem:[#allocation54_spill] sm:$0xff] %v4709_v48 }
 0x121   : > { %1555 = vmatpush.bf16.msrb.mxu2 %v4625_v25  ;;  %5783 = vst [vmem:[#allocation55_spill] sm:$0xff] %v4711_v53  ;;  %v4714_v39 = vpop.f32.mrf.mxu0 }
 0x122   : > { %5784 = vst [vmem:[#allocation56_spill] sm:$0xff] %v4714_v39 }
 0x123   : > { %1573 = vmatpush.bf16.msrb.mxu3 %v4598_v35 }
 0x125   : > { %1556 = vmatpush.bf16.msrb.mxu2 %v4639_v12  ;;  %v4718_v21 = vpop.f32.mrf.mxu3 }
 0x126   : > { %5785 = vst [vmem:[#allocation57_spill] sm:$0xff] %v4718_v21 }
 0x127   : > { %v4721_v5 = vpop.f32.mrf.mxu2  ;;  %v4723_v51 = vpop.f32.mrf.mxu1  ;;  %1574 = vmatpush.bf16.msrb.mxu3 %v4606_v42 }
 0x128   : > { %5786 = vst [vmem:[#allocation58_spill] sm:$0xff] %v4721_v5 }
 0x129   : > { %1557 = vmatpush.bf16.msrb.mxu2 %v4643_v3  ;;  %5787 = vst [vmem:[#allocation59_spill] sm:$0xff] %v4723_v51  ;;  %v4726_v48 = vpop.f32.mrf.mxu0 }
 0x12a   : > { %5788 = vst [vmem:[#allocation60_spill] sm:$0xff] %v4726_v48  ;;  %1424 = vmatmul.bf16.vlgmr.msrb.gmra.mxu1 %v5780_v45 }
 0x12b   : > { %1692 = vmatpush.bf16.msra.mxu3 %v4527_v19  ;;  %1666 = vmatpush.bf16.msrb.mxu1 %v4369_v60 }
 0x12d   : > { %1558 = vmatpush.bf16.msrb.mxu2 %v4656_v43  ;;  %v4733_v53 = vpop.f32.mrf.mxu3 }
 0x12e   : > { %5789 = vst [vmem:[#allocation61_spill] sm:$0xff] %v4733_v53 }
 0x12f   : > { %1693 = vmatpush.bf16.msra.mxu3 %v4540_v41  ;;  %v4736_v21 = vpop.f32.mrf.mxu2  ;;  %v4738_v51 = vpop.f32.mrf.mxu1  ;;  %1667 = vmatpush.bf16.msrb.mxu1 %v4397_v11 }
 0x130   : > { %5790 = vst [vmem:[#allocation62_spill] sm:$0xff] %v4736_v21 }
 0x131   : > { %1559 = vmatpush.bf16.msrb.mxu2 %v4666_v2  ;;  %5791 = vst [vmem:[#allocation63_spill] sm:$0xff] %v4738_v51  ;;  %v4741_v5 = vpop.f32.mrf.mxu0 }
 0x132   : > { %5792 = vst [vmem:[#allocation64_spill] sm:$0xff] %v4741_v5 }
 0x133   : > { %1694 = vmatpush.bf16.msra.mxu3 %v4549_v58  ;;  %1668 = vmatpush.bf16.msrb.mxu1 %v4423_v24 }
 0x135   : > { %1560 = vmatpush.bf16.msrb.mxu2 %v4679_v27  ;;  %v4747_v45 = vpop.f32.mrf.mxu3 }
 0x136   : > { %5793 = vst [vmem:[#allocation65_spill] sm:$0xff] %v4747_v45 }
 0x137   : > { %1695 = vmatpush.bf16.msra.mxu3 %v4561_v18  ;;  %v4750_v53 = vpop.f32.mrf.mxu2  ;;  %v4753_v51 = vpop.f32.mrf.mxu1  ;;  %1669 = vmatpush.bf16.msrb.mxu1 %v4451_v33 }
 0x138   : > { %5794 = vst [vmem:[#allocation66_spill] sm:$0xff] %v4750_v53 }
 0x139   : > { %1561 = vmatpush.bf16.msrb.mxu2 %v4684_v63  ;;  %5795 = vst [vmem:[#allocation67_spill] sm:$0xff] %v4753_v51  ;;  %v4756_v21 = vpop.f32.mrf.mxu0 }
 0x13b   : > { %1696 = vmatpush.bf16.msra.mxu3 %v4573_v49  ;;  %1670 = vmatpush.bf16.msrb.mxu1 %v4489_v55 }
 0x13d   : > { %1679 = vmatpush.bf16.msra.mxu2 %v4613_v59  ;;  %v4762_v45 = vpop.f32.mrf.mxu3 }
 0x13e   : > { %5796 = vst [vmem:[#allocation68_spill] sm:$0xff] %v4762_v45 }
 0x13f   : > { %1697 = vmatpush.bf16.msra.mxu3 %v4589_v31  ;;  %v4764_v39 = vpop.f32.mrf.mxu2  ;;  %v4767_v53 = vpop.f32.mrf.mxu1  ;;  %1671 = vmatpush.bf16.msrb.mxu1 %v4529_v22 }
 0x140   : > { %5797 = vst [vmem:[#allocation69_spill] sm:$0xff] %v4764_v39 }
 0x141   : > { %1680 = vmatpush.bf16.msra.mxu2 %v4625_v25  ;;  %5798 = vst [vmem:[#allocation70_spill] sm:$0xff] %v4767_v53  ;;  %v1174_v51 = vpop.f32.mrf.mxu0  ;;  %v579_v53 = vadd.f32 %v4429_v26, %v4449_v32 }
 0x143   : > { %1698 = vmatpush.bf16.msra.mxu3 %v4598_v35  ;;  %1672 = vmatpush.bf16.msrb.mxu1 %v4575_v54 }
 0x145   : > { %1681 = vmatpush.bf16.msra.mxu2 %v4639_v12  ;;  %v4774_v15 = vpop.f32.mrf.mxu3 }
 0x146   : > { %5799 = vst [vmem:[#allocation71_spill] sm:$0xff] %v4774_v15 }
 0x147   : > { %1699 = vmatpush.bf16.msra.mxu3 %v4606_v42  ;;  %v4776_v45 = vpop.f32.mrf.mxu2  ;;  %v4781_v39 = vpop.f32.mrf.mxu1  ;;  %1673 = vmatpush.bf16.msrb.mxu1 %v4622_v28 }
 0x148   : > { %5800 = vst [vmem:[#allocation72_spill] sm:$0xff] %v4776_v45 }
 0x149   : > { %1682 = vmatpush.bf16.msra.mxu2 %v4643_v3  ;;  %5801 = vst [vmem:[#allocation73_spill] sm:$0xff] %v4781_v39  ;;  %v1412_v51 = vpop.f32.mrf.mxu0 }
 0x14a   : > { %v1455_v5 = vadd.f32 %v1412_v51, %v579_v53 }
 0x14d   : > { %1683 = vmatpush.bf16.msra.mxu2 %v4656_v43  ;;  %v4785_v48 = vpop.f32.mrf.mxu3 }
 0x14e   : > { %5802 = vst [vmem:[#allocation74_spill] sm:$0xff] %v4785_v48 }
 0x14f   : > { %v4787_v34 = vpop.f32.mrf.mxu2  ;;  %v4790_v15 = vpop.f32.mrf.mxu1 }
 0x150   : > { %5803 = vst [vmem:[#allocation75_spill] sm:$0xff] %v4787_v34 }
 0x151   : > { %1684 = vmatpush.bf16.msra.mxu2 %v4666_v2  ;;  %5804 = vst [vmem:[#allocation76_spill] sm:$0xff] %v4790_v15  ;;  %v1414_v45 = vpop.f32.mrf.mxu0 }
 0x155   : > { %1685 = vmatpush.bf16.msra.mxu2 %v4679_v27  ;;  %v4793_v26 = vpop.f32.mrf.mxu3 }
 0x156   : > { %5805 = vst [vmem:[#allocation77_spill] sm:$0xff] %v4793_v26 }
 0x157   : > { %v4795_v32 = vpop.f32.mrf.mxu2  ;;  %v4797_v39 = vpop.f32.mrf.mxu1 }
 0x158   : > { %5806 = vst [vmem:[#allocation78_spill] sm:$0xff] %v4795_v32 }
 0x159   : > { %1686 = vmatpush.bf16.msra.mxu2 %v4684_v63  ;;  %5807 = vst [vmem:[#allocation79_spill] sm:$0xff] %v4797_v39 }
 0x15d   : > { %v4799_v53 = vpop.f32.mrf.mxu3 }
 0x15e   : > { %5808 = vst [vmem:[#allocation80_spill] sm:$0xff] %v4799_v53 }
 0x15f   : > { %v4801_v51 = vpop.f32.mrf.mxu2  ;;  %v4803_v48 = vpop.f32.mrf.mxu1 }
 0x160   : > { %5809 = vst [vmem:[#allocation81_spill] sm:$0xff] %v4801_v51  ;;  %v3657_v51 = vmul.f32 -1.442695, %v1455_v5 }
 0x161   : > { %5810 = vst [vmem:[#allocation82_spill] sm:$0xff] %v4803_v48 }
 0x162   : > { %3796 = vpow2.f32 %v3657_v51 }
 0x165   : > { %v4805_v34 = vpop.f32.mrf.mxu3 }
 0x166   : > { %5811 = vst [vmem:[#allocation83_spill] sm:$0xff] %v4805_v34 }
 0x167   : > { %v4807_v13 = vpop.f32.mrf.mxu2  ;;  %v4809_v15 = vpop.f32.mrf.mxu1 }
 0x168   : > { %5812 = vst [vmem:[#allocation84_spill] sm:$0xff] %v4807_v13 }
 0x169   : > { %5813 = vst [vmem:[#allocation85_spill] sm:$0xff] %v4809_v15  ;;  %v3797_v15 = vpop.eup %3796 }
 0x16d   : > { %v4811_v45 = vpop.f32.mrf.mxu3 }
 0x16e   : > { %5814 = vst [vmem:[#allocation86_spill] sm:$0xff] %v4811_v45 }
 0x16f   : > { %v4813_v29 = vpop.f32.mrf.mxu2  ;;  %v4815_v26 = vpop.f32.mrf.mxu1 }
 0x170   : > { %5815 = vst [vmem:[#allocation87_spill] sm:$0xff] %v4813_v29  ;;  %v1462_v29 = vadd.f32 1.0, %v3797_v15 }
 0x171   : > { %5816 = vst [vmem:[#allocation88_spill] sm:$0xff] %v4815_v26 }
 0x172   : > { %3798 = vrcp.f32 %v1462_v29  ;;  %vm1468_vm6 = vweird.f32 %v1462_v29 }
 0x175   : > { %v4817_v32 = vpop.f32.mrf.mxu3 }
 0x176   : > { %5817 = vst [vmem:[#allocation89_spill] sm:$0xff] %v4817_v32 }
 0x177   : > { %v4819_v39 = vpop.f32.mrf.mxu2  ;;  %v4821_v53 = vpop.f32.mrf.mxu1 }
 0x178   : > { %5818 = vst [vmem:[#allocation90_spill] sm:$0xff] %v4819_v39 }
 0x179   : > { %5819 = vst [vmem:[#allocation91_spill] sm:$0xff] %v4821_v53 }
 0x17d   : > { %v4823_v48 = vpop.f32.mrf.mxu3 }
 0x17e   : > { %5820 = vst [vmem:[#allocation92_spill] sm:$0xff] %v4823_v48 }
 0x17f   : > { %v1185_v34 = vpop.f32.mrf.mxu2  ;;  %v4825_v13 = vpop.f32.mrf.mxu1 }
 0x180   : > { %5821 = vst [vmem:[#allocation93_spill] sm:$0xff] %v4825_v13  ;;  %v1219_v26 = vrot.slane %v1185_v34, 7  ;;  %v3799_v13 = vpop.eup %3798 }
 0x181   : > { %v1464_v15 = vmul.f32 %v3799_v13, %v1462_v29  ;;  %vm1469_vm5 = vweird.f32 %v3799_v13 }
 0x182   : > { %v1223_v5 = vsel %vm1222_vm2, %v4756_v21, %v1219_v26  ;;  %vm1470_vm7 = vmor %vm1468_vm6, %vm1469_vm5 }
 0x183   : > { %v1465_v34 = vsub.f32 1.0, %v1464_v15 }
 0x185   : > { %v4827_v10 = vpop.f32.mrf.mxu3  ;;  %v1466_v47 = vmul.f32 %v3799_v13, %v1465_v34 }
 0x186   : > { %5822 = vst [vmem:[#allocation94_spill] sm:$0xff] %v4827_v10 }
 0x187   : > { %v1187_v45 = vpop.f32.mrf.mxu2  ;;  %v4829_v7 = vpop.f32.mrf.mxu1 }
 0x188   : > { %5823 = vst [vmem:[#allocation95_spill] sm:$0xff] %v4829_v7 }
 0x18d   : > { %v1211_v32 = vpop.f32.mrf.mxu3 }
 0x18e   : > { %v1221_v53 = vrot.slane %v1211_v32, 5  ;;  %v637_v32 = vadd.f32 %v4457_v36, %v4467_v40 }
 0x18f   : > { %v1198_v39 = vpop.f32.mrf.mxu2  ;;  %v4832_v48 = vpop.f32.mrf.mxu1 }
 0x190   : > { %v1220_v51 = vrot.slane %v1198_v39, 6  ;;  %5824 = vst [vmem:[#allocation96_spill] sm:$0xff] %v4832_v48  ;;  %v666_v39 = vadd.f32 %v4492_v57, %v4505_v0  ;;  %v608_v57 = vadd.f32 %v4559_v16, %v4580_v52 }
 0x192   : > { %v1225_v9 = vsel %vm1224_vm3, %v1220_v51, %v1221_v53 }
 0x193   : > { %v4834_v10 = vsel %vm1226_vm4, %v1223_v5, %v1225_v9  ;;  %v1467_v9 = vadd.f32 %v3799_v13, %v1466_v47  ;;  %v1474_v5 = vand.u32 2147483648, %v1462_v29 }
 0x194   : > { %5825 = vst [vmem:[#allocation97_spill] sm:$0xff] %v4834_v10 }
 0x195   : > { %v1213_v45 = vpop.f32.mrf.mxu3  ;;  %v1471_v15 = vsel %vm1470_vm7, %v3799_v13, %v1467_v9 }
 0x196   : > { %v1475_v45 = vor.u32 1.1754944e-38, %v1474_v5 }
 0x197   : > { %v1200_v7 = vpop.f32.mrf.mxu2  ;;  %v4836_v61 = vpop.f32.mrf.mxu1 }
 0x198   : > { %5826 = vst [vmem:[#allocation98_spill] sm:$0xff] %v4836_v61  ;;  %v1472_v7 = vand.u32 2147483647, %v1462_v29 }
 0x19a   : > { %vm1473_vm8 = vcmp.eq.f32.partialorder %v1472_v7, 8.507059e+37 }
 0x19d   : > { %v1451_v21 = vpop.f32.mrf.mxu3 }
 0x19e   : > { %v1458_v50 = vadd.f32 %v1451_v21, %v666_v39  ;;  %v1476_v39 = vsel %vm1473_vm8, %v1475_v45, %v1471_v15 }
 0x19f   : > { %v1438_v26 = vpop.f32.mrf.mxu2  ;;  %v4842_v53 = vpop.f32.mrf.mxu1 }
 0x1a0   : > { %v1457_v48 = vadd.f32 %v1438_v26, %v637_v32  ;;  %v3659_v51 = vmul.f32 -1.442695, %v1458_v50 }
 0x1a2   : > { %3800 = vtanh.f32 %v1457_v48 }
 0x1a3   : > { %3802 = vpow2.f32 %v3659_v51 }
 0x1a5   : > { %v1453_v36 = vpop.f32.mrf.mxu3 }
 0x1a7   : > { %v1440_v34 = vpop.f32.mrf.mxu2  ;;  %v1425_v21 = vpop.f32.mrf.mxu1 }
 0x1a8   : > { %v3801_v32 = vpop.eup %3800  ;;  %v1456_v26 = vadd.f32 %v1425_v21, %v608_v57 }
 0x1a9   : > { %v1518_v47 = vmul.f32 %v3801_v32, %v1476_v39  ;;  %v3803_v48 = vpop.eup %3802 }
 0x1aa   : > { %v3658_v10 = vmul.f32 -1.442695, %v1456_v26  ;;  %v1501_v40 = vadd.f32 1.0, %v3803_v48 }
 0x1ac   : > { %3804 = vpow2.f32 %v3658_v10  ;;  %vm1507_vm14 = vweird.f32 %v1501_v40 }
 0x1ad   : > { %3806 = vrcp.f32 %v1501_v40 }
 0x1af   : > { %v1427_v29 = vpop.f32.mrf.mxu1 }
 0x1b2   : > { %v3805_v50 = vpop.eup %3804 }
 0x1b3   : > { %v1481_v13 = vadd.f32 1.0, %v3805_v50  ;;  %v3807_v9 = vpop.eup %3806  ;;  %v1513_v50 = vand.u32 2147483648, %v1501_v40 }
 0x1b4   : > { %v1503_v7 = vmul.f32 %v3807_v9, %v1501_v40  ;;  %vm1508_vm13 = vweird.f32 %v3807_v9 }
 0x1b5   : > { %3808 = vrcp.f32 %v1481_v13  ;;  %v1493_v34 = vand.u32 2147483648, %v1481_v13  ;;  %v1491_v51 = vand.u32 2147483647, %v1481_v13  ;;  %vm1487_vm10 = vweird.f32 %v1481_v13  ;;  %vm1509_vm15 = vmor %vm1507_vm14, %vm1508_vm13 }
 0x1b6   : > { %v1504_v45 = vsub.f32 1.0, %v1503_v7 }
 0x1b7   : > { %v1494_v10 = vor.u32 1.1754944e-38, %v1493_v34  ;;  %vm1492_vm12 = vcmp.eq.f32.partialorder %v1491_v51, 8.507059e+37 }
 0x1b8   : > { %v1505_v21 = vmul.f32 %v3807_v9, %v1504_v45 }
 0x1ba   : > { %v1506_v29 = vadd.f32 %v3807_v9, %v1505_v21 }
 0x1bb   : > { %v3809_v5 = vpop.eup %3808 }
 0x1bc   : > { %v1483_v16 = vmul.f32 %v3809_v5, %v1481_v13  ;;  %vm1488_vm9 = vweird.f32 %v3809_v5  ;;  %v1510_v7 = vsel %vm1509_vm15, %v3807_v9, %v1506_v29 }
 0x1bd   : > { %vm1489_vm11 = vmor %vm1487_vm10, %vm1488_vm9 }
 0x1be   : > { %v1484_v36 = vsub.f32 1.0, %v1483_v16  ;;  %v1511_v16 = vand.u32 2147483647, %v1501_v40 }
 0x1c0   : > { %v1485_v15 = vmul.f32 %v3809_v5, %v1484_v36  ;;  %v1514_v36 = vor.u32 1.1754944e-38, %v1513_v50  ;;  %vm1512_vm0 = vcmp.eq.f32.partialorder %v1511_v16, 8.507059e+37 }
 0x1c2   : > { %v1486_v57 = vadd.f32 %v3809_v5, %v1485_v15  ;;  %v1515_v34 = vsel %vm1512_vm0, %v1514_v36, %v1510_v7 }
 0x1c4   : > { %v1490_v32 = vsel %vm1489_vm11, %v3809_v5, %v1486_v57 }
 0x1c5   : > { %v1495_v39 = vsel %vm1492_vm12, %v1494_v10, %v1490_v32 }
 0x1c6   : > { %v1517_v26 = vmul.f32 0.0, %v1495_v39 }
 0x1c8   : > { %v4846_v48 = vadd.f32 %v1518_v47, %v1517_v26 }
 0x1ca   : > { %3810 = vtanh.f32 %v4846_v48 }
 0x1d0   : > { %v3811_v13 = vpop.eup %3810 }
 0x1d1   : > { %v1521_v5 = vmul.f32 %v3811_v13, %v1515_v34 }
 0x1d3   : > { %v1527_v15 = vpack.c.bf16 %v1521_v5, %v1521_v5 }
 0x1d5   : > { %1536 = vmatmul.bf16.vlgmr.msrb.gmra.mxu0 %v1527_v15  ;;  %1549 = vmatmul.bf16.vlgmr.msra.gmra.mxu1 %v1527_v15 }
 0x1d6   : > { %1562 = vmatmul.bf16.vlgmr.msrb.gmra.mxu2 %v1527_v15  ;;  %1575 = vmatmul.bf16.vlgmr.msrb.gmra.mxu3 %v1527_v15 }
 0x1d7   : > { %1778 = vmatpush.bf16.msrb.mxu0 %v4363_v56  ;;  %1791 = vmatpush.bf16.msra.mxu1 %v4369_v60 }
 0x1d8   : > { %1804 = vmatpush.bf16.msrb.mxu2 %v4613_v59  ;;  %1817 = vmatpush.bf16.msrb.mxu3 %v4527_v19 }
 0x1db   : > { %1779 = vmatpush.bf16.msrb.mxu0 %v4372_v62  ;;  %1792 = vmatpush.bf16.msra.mxu1 %v4397_v11 }
 0x1dc   : > { %1805 = vmatpush.bf16.msrb.mxu2 %v4625_v25  ;;  %1818 = vmatpush.bf16.msrb.mxu3 %v4540_v41 }
 0x1df   : > { %1780 = vmatpush.bf16.msrb.mxu0 %v4376_v1  ;;  %1793 = vmatpush.bf16.msra.mxu1 %v4423_v24 }
 0x1e0   : > { %1806 = vmatpush.bf16.msrb.mxu2 %v4639_v12  ;;  %1819 = vmatpush.bf16.msrb.mxu3 %v4549_v58 }
 0x1e3   : > { %1781 = vmatpush.bf16.msrb.mxu0 %v4379_v4  ;;  %1794 = vmatpush.bf16.msra.mxu1 %v4451_v33 }
 0x1e4   : > { %1807 = vmatpush.bf16.msrb.mxu2 %v4643_v3  ;;  %1820 = vmatpush.bf16.msrb.mxu3 %v4561_v18 }
 0x1e7   : > { %1782 = vmatpush.bf16.msrb.mxu0 %v4391_v8  ;;  %1795 = vmatpush.bf16.msra.mxu1 %v4489_v55 }
 0x1e8   : > { %1808 = vmatpush.bf16.msrb.mxu2 %v4656_v43  ;;  %1821 = vmatpush.bf16.msrb.mxu3 %v4573_v49 }
 0x1eb   : > { %1783 = vmatpush.bf16.msrb.mxu0 %v4401_v14  ;;  %1796 = vmatpush.bf16.msra.mxu1 %v4529_v22 }
 0x1ec   : > { %1809 = vmatpush.bf16.msrb.mxu2 %v4666_v2  ;;  %1822 = vmatpush.bf16.msrb.mxu3 %v4589_v31 }
 0x1ef   : > { %1784 = vmatpush.bf16.msrb.mxu0 %v4404_v17  ;;  %1797 = vmatpush.bf16.msra.mxu1 %v4575_v54 }
 0x1f0   : > { %1810 = vmatpush.bf16.msrb.mxu2 %v4679_v27  ;;  %1823 = vmatpush.bf16.msrb.mxu3 %v4598_v35 }
 0x1f3   : > { %1785 = vmatpush.bf16.msrb.mxu0 %v4407_v20  ;;  %1798 = vmatpush.bf16.msra.mxu1 %v4622_v28 }
 0x1f4   : > { %1811 = vmatpush.bf16.msrb.mxu2 %v4684_v63  ;;  %1824 = vmatpush.bf16.msrb.mxu3 %v4606_v42 }
 0x252   : > { %v1537_v40 = vpop.f32.mrf.mxu0  ;;  %v1550_v47 = vpop.f32.mrf.mxu1 }
 0x253   : > { %v1580_v9 = vadd.f32 %v1537_v40, %v4461_v38  ;;  %v1581_v51 = vadd.f32 %v1550_v47, %v4592_v37 }
 0x255   : > { %v3660_v45 = vmul.f32 -1.442695, %v1580_v9  ;;  %v3661_v57 = vmul.f32 -1.442695, %v1581_v51 }
 0x257   : > { %3812 = vpow2.f32 %v3660_v45 }
 0x258   : > { %3814 = vpow2.f32 %v3661_v57 }
 0x259   : > { %v1563_v10 = vpop.f32.mrf.mxu2  ;;  %v1576_v32 = vpop.f32.mrf.mxu3 }
 0x25a   : > { %v1583_v39 = vadd.f32 %v1576_v32, %v4509_v6  ;;  %v1539_v21 = vpop.f32.mrf.mxu0  ;;  %v1552_v26 = vpop.f32.mrf.mxu1  ;;  %v1582_v15 = vadd.f32 %v1563_v10, %v4474_v44 }
 0x25c   : > { %v3662_v29 = vmul.f32 -1.442695, %v1583_v39 }
 0x25d   : > { %v3813_v50 = vpop.eup %3812 }
 0x25e   : > { %v3815_v16 = vpop.eup %3814  ;;  %v1587_v7 = vadd.f32 1.0, %v3813_v50  ;;  %3816 = vpow2.f32 %v3662_v29 }
 0x25f   : > { %v1606_v36 = vadd.f32 1.0, %v3815_v16 }
 0x260   : > { %3818 = vrcp.f32 %v1587_v7  ;;  %v1599_v45 = vand.u32 2147483648, %v1587_v7  ;;  %v1597_v39 = vand.u32 2147483647, %v1587_v7  ;;  %vm1593_vm4 = vweird.f32 %v1587_v7 }
 0x261   : > { %3820 = vrcp.f32 %v1606_v36  ;;  %v1565_v38 = vpop.f32.mrf.mxu2  ;;  %v1578_v37 = vpop.f32.mrf.mxu3  ;;  %v1618_v57 = vand.u32 2147483648, %v1606_v36  ;;  %v1616_v26 = vand.u32 2147483647, %v1606_v36  ;;  %vm1612_vm5 = vweird.f32 %v1606_v36 }
 0x262   : > { %v1600_v44 = vor.u32 1.1754944e-38, %v1599_v45  ;;  %vm1598_vm8 = vcmp.eq.f32.partialorder %v1597_v39, 8.507059e+37 }
 0x263   : > { %v1619_v38 = vor.u32 1.1754944e-38, %v1618_v57  ;;  %vm1617_vm9 = vcmp.eq.f32.partialorder %v1616_v26, 8.507059e+37 }
 0x264   : > { %v3817_v13 = vpop.eup %3816 }
 0x265   : > { %v1626_v34 = vadd.f32 1.0, %v3817_v13 }
 0x266   : > { %v3819_v5 = vpop.eup %3818 }
 0x267   : > { %v3821_v40 = vpop.eup %3820  ;;  %v1589_v47 = vmul.f32 %v3819_v5, %v1587_v7  ;;  %3822 = vrcp.f32 %v1626_v34  ;;  %vm1594_vm2 = vweird.f32 %v3819_v5  ;;  %v1638_v45 = vand.u32 2147483648, %v1626_v34 }
 0x268   : > { %v1608_v6 = vmul.f32 %v3821_v40, %v1606_v36  ;;  %3824 = vtanh.f32 %v1582_v15  ;;  %vm1613_vm3 = vweird.f32 %v3821_v40  ;;  %vm1595_vm6 = vmor %vm1593_vm4, %vm1594_vm2  ;;  %vm1632_vm11 = vweird.f32 %v1626_v34 }
 0x269   : > { %v1590_v9 = vsub.f32 1.0, %v1589_v47  ;;  %vm1614_vm7 = vmor %vm1612_vm5, %vm1613_vm3  ;;  %v1639_v39 = vor.u32 1.1754944e-38, %v1638_v45 }
 0x26a   : > { %v1609_v51 = vsub.f32 1.0, %v1608_v6 }
 0x26b   : > { %v1591_v32 = vmul.f32 %v3819_v5, %v1590_v9 }
 0x26c   : > { %v1610_v21 = vmul.f32 %v3821_v40, %v1609_v51 }
 0x26d   : > { %v3823_v29 = vpop.eup %3822  ;;  %v1592_v50 = vadd.f32 %v3819_v5, %v1591_v32 }
 0x26e   : > { %v1611_v10 = vadd.f32 %v3821_v40, %v1610_v21  ;;  %v1628_v16 = vmul.f32 %v3823_v29, %v1626_v34  ;;  %v3825_v13 = vpop.eup %3824  ;;  %vm1633_vm10 = vweird.f32 %v3823_v29 }
 0x26f   : > { %v1596_v37 = vsel %vm1595_vm6, %v3819_v5, %v1592_v50  ;;  %v1636_v5 = vand.u32 2147483647, %v1626_v34  ;;  %vm1634_vm12 = vmor %vm1632_vm11, %vm1633_vm10 }
 0x270   : > { %v1601_v15 = vsel %vm1598_vm8, %v1600_v44, %v1596_v37  ;;  %v1615_v47 = vsel %vm1614_vm7, %v3821_v40, %v1611_v10  ;;  %v1629_v6 = vsub.f32 1.0, %v1628_v16 }
 0x271   : > { %v1620_v9 = vsel %vm1617_vm9, %v1619_v38, %v1615_v47  ;;  %v1643_v51 = vmul.f32 %v3825_v13, %v1601_v15  ;;  %vm1637_vm13 = vcmp.eq.f32.partialorder %v1636_v5, 8.507059e+37 }
 0x272   : > { %v1642_v61 = vmul.f32 %v1620_v9, %v4846_v48  ;;  %v1630_v32 = vmul.f32 %v3823_v29, %v1629_v6 }
 0x274   : > { %v4886_v7 = vadd.f32 %v1643_v51, %v1642_v61  ;;  %v1631_v36 = vadd.f32 %v3823_v29, %v1630_v32 }
 0x276   : > { %3826 = vtanh.f32 %v4886_v7  ;;  %v1635_v57 = vsel %vm1634_vm12, %v3823_v29, %v1631_v36 }
 0x277   : > { %v1640_v21 = vsel %vm1637_vm13, %v1639_v39, %v1635_v57  ;;  %v5827_v57 = vld [vmem:[#allocation19_spill] sm:$0xff] }
 0x27c   : > { %v3827_v40 = vpop.eup %3826 }
 0x27d   : > { %v1646_v26 = vmul.f32 %v3827_v40, %v1640_v21 }
 0x27f   : > { %v1652_v50 = vpack.c.bf16 %v1646_v26, %v1646_v26 }
 0x281   : > { %1661 = vmatmul.bf16.vlgmr.msra.gmra.mxu0 %v1652_v50  ;;  %1674 = vmatmul.bf16.vlgmr.msrb.gmra.mxu1 %v1652_v50 }
 0x282   : > { %1687 = vmatmul.bf16.vlgmr.msra.gmra.mxu2 %v1652_v50  ;;  %1700 = vmatmul.bf16.vlgmr.msra.gmra.mxu3 %v1652_v50 }
 0x283   : > { %1903 = vmatpush.bf16.msra.mxu0 %v4363_v56  ;;  %1916 = vmatpush.bf16.msrb.mxu1 %v4369_v60 }
 0x284   : > { %1929 = vmatpush.bf16.msra.mxu2 %v4613_v59  ;;  %1942 = vmatpush.bf16.msra.mxu3 %v4527_v19 }
 0x287   : > { %1904 = vmatpush.bf16.msra.mxu0 %v4372_v62  ;;  %1917 = vmatpush.bf16.msrb.mxu1 %v4397_v11 }
 0x288   : > { %1930 = vmatpush.bf16.msra.mxu2 %v4625_v25  ;;  %1943 = vmatpush.bf16.msra.mxu3 %v4540_v41 }
 0x28b   : > { %1905 = vmatpush.bf16.msra.mxu0 %v4376_v1  ;;  %1918 = vmatpush.bf16.msrb.mxu1 %v4423_v24 }
 0x28c   : > { %1931 = vmatpush.bf16.msra.mxu2 %v4639_v12  ;;  %1944 = vmatpush.bf16.msra.mxu3 %v4549_v58 }
 0x28f   : > { %1906 = vmatpush.bf16.msra.mxu0 %v4379_v4  ;;  %1919 = vmatpush.bf16.msrb.mxu1 %v4451_v33 }
 0x290   : > { %1932 = vmatpush.bf16.msra.mxu2 %v4643_v3  ;;  %1945 = vmatpush.bf16.msra.mxu3 %v4561_v18 }
 0x293   : > { %1907 = vmatpush.bf16.msra.mxu0 %v4391_v8  ;;  %1920 = vmatpush.bf16.msrb.mxu1 %v4489_v55 }
 0x294   : > { %1933 = vmatpush.bf16.msra.mxu2 %v4656_v43  ;;  %1946 = vmatpush.bf16.msra.mxu3 %v4573_v49 }
 0x297   : > { %1908 = vmatpush.bf16.msra.mxu0 %v4401_v14  ;;  %1921 = vmatpush.bf16.msrb.mxu1 %v4529_v22 }
 0x298   : > { %1934 = vmatpush.bf16.msra.mxu2 %v4666_v2  ;;  %1947 = vmatpush.bf16.msra.mxu3 %v4589_v31 }
 0x29b   : > { %1909 = vmatpush.bf16.msra.mxu0 %v4404_v17  ;;  %1922 = vmatpush.bf16.msrb.mxu1 %v4575_v54 }
 0x29c   : > { %1935 = vmatpush.bf16.msra.mxu2 %v4679_v27  ;;  %1948 = vmatpush.bf16.msra.mxu3 %v4598_v35 }
 0x29f   : > { %1910 = vmatpush.bf16.msra.mxu0 %v4407_v20  ;;  %1923 = vmatpush.bf16.msrb.mxu1 %v4622_v28 }
 0x2a0   : > { %1936 = vmatpush.bf16.msra.mxu2 %v4684_v63  ;;  %1949 = vmatpush.bf16.msra.mxu3 %v4606_v42 }
 0x2fe   : > { %v1662_v61 = vpop.f32.mrf.mxu0  ;;  %v1675_v48 = vpop.f32.mrf.mxu1 }
 0x2ff   : > { %v1705_v34 = vadd.f32 %v1662_v61, %v4477_v46  ;;  %v1706_v29 = vadd.f32 %v1675_v48, %v4609_v23 }
 0x301   : > { %v3663_v44 = vmul.f32 -1.442695, %v1705_v34  ;;  %v3664_v10 = vmul.f32 -1.442695, %v1706_v29 }
 0x303   : > { %3828 = vpow2.f32 %v3663_v44 }
 0x304   : > { %3830 = vpow2.f32 %v3664_v10 }
 0x305   : > { %v1688_v16 = vpop.f32.mrf.mxu2  ;;  %v1701_v38 = vpop.f32.mrf.mxu3 }
 0x306   : > { %v1708_v37 = vadd.f32 %v1701_v38, %v4534_v30  ;;  %v1664_v13 = vpop.f32.mrf.mxu0  ;;  %v1677_v15 = vpop.f32.mrf.mxu1  ;;  %v1707_v39 = vadd.f32 %v1688_v16, %v5827_v57 }
 0x308   : > { %v3665_v47 = vmul.f32 -1.442695, %v1708_v37 }
 0x309   : > { %v3829_v6 = vpop.eup %3828 }
 0x30a   : > { %v3831_v9 = vpop.eup %3830  ;;  %v1712_v51 = vadd.f32 1.0, %v3829_v6  ;;  %3832 = vpow2.f32 %v3665_v47 }
 0x30b   : > { %v1731_v32 = vadd.f32 1.0, %v3831_v9 }
 0x30c   : > { %3834 = vrcp.f32 %v1712_v51  ;;  %v1724_v61 = vand.u32 2147483648, %v1712_v51  ;;  %v1722_v29 = vand.u32 2147483647, %v1712_v51  ;;  %vm1718_vm0 = vweird.f32 %v1712_v51 }
 0x30d   : > { %3836 = vrcp.f32 %v1731_v32  ;;  %v1690_v46 = vpop.f32.mrf.mxu2  ;;  %v1703_v23 = vpop.f32.mrf.mxu3  ;;  %v1743_v48 = vand.u32 2147483648, %v1731_v32  ;;  %v1741_v10 = vand.u32 2147483647, %v1731_v32  ;;  %vm1737_vm2 = vweird.f32 %v1731_v32 }
 0x30e   : > { %v1725_v16 = vor.u32 1.1754944e-38, %v1724_v61  ;;  %vm1723_vm5 = vcmp.eq.f32.partialorder %v1722_v29, 8.507059e+37 }
 0x30f   : > { %v1744_v47 = vor.u32 1.1754944e-38, %v1743_v48  ;;  %vm1742_vm6 = vcmp.eq.f32.partialorder %v1741_v10, 8.507059e+37 }
 0x310   : > { %v3833_v36 = vpop.eup %3832 }
 0x311   : > { %v1751_v45 = vadd.f32 1.0, %v3833_v36 }
 0x312   : > { %v3835_v5 = vpop.eup %3834 }
 0x313   : > { %v3837_v40 = vpop.eup %3836  ;;  %v1714_v21 = vmul.f32 %v3835_v5, %v1712_v51  ;;  %3838 = vrcp.f32 %v1751_v45  ;;  %vm1719_vm14 = vweird.f32 %v3835_v5  ;;  %vm1757_vm8 = vweird.f32 %v1751_v45 }
 0x314   : > { %v1733_v30 = vmul.f32 %v3837_v40, %v1731_v32  ;;  %3840 = vtanh.f32 %v1707_v39  ;;  %vm1738_vm15 = vweird.f32 %v3837_v40  ;;  %vm1720_vm3 = vmor %vm1718_vm0, %vm1719_vm14 }
 0x315   : > { %v1715_v26 = vsub.f32 1.0, %v1714_v21  ;;  %vm1739_vm4 = vmor %vm1737_vm2, %vm1738_vm15 }
 0x316   : > { %v1734_v50 = vsub.f32 1.0, %v1733_v30 }
 0x317   : > { %v1716_v34 = vmul.f32 %v3835_v5, %v1715_v26  ;;  %v1763_v26 = vand.u32 2147483648, %v1751_v45 }
 0x318   : > { %v1735_v44 = vmul.f32 %v3837_v40, %v1734_v50 }
 0x319   : > { %v3839_v38 = vpop.eup %3838  ;;  %v1717_v37 = vadd.f32 %v3835_v5, %v1716_v34  ;;  %v1764_v61 = vor.u32 1.1754944e-38, %v1763_v26 }
 0x31a   : > { %v1736_v13 = vadd.f32 %v3837_v40, %v1735_v44  ;;  %v1753_v15 = vmul.f32 %v3839_v38, %v1751_v45  ;;  %v3841_v9 = vpop.eup %3840  ;;  %vm1758_vm7 = vweird.f32 %v3839_v38 }
 0x31b   : > { %v1721_v6 = vsel %vm1720_vm3, %v3835_v5, %v1717_v37  ;;  %v1761_v5 = vand.u32 2147483647, %v1751_v45  ;;  %vm1759_vm9 = vmor %vm1757_vm8, %vm1758_vm7 }
 0x31c   : > { %v1726_v46 = vsel %vm1723_vm5, %v1725_v16, %v1721_v6  ;;  %v1740_v23 = vsel %vm1739_vm4, %v3837_v40, %v1736_v13  ;;  %v1754_v36 = vsub.f32 1.0, %v1753_v15 }
 0x31d   : > { %v1745_v57 = vsel %vm1742_vm6, %v1744_v47, %v1740_v23  ;;  %v1768_v39 = vmul.f32 %v3841_v9, %v1726_v46  ;;  %vm1762_vm10 = vcmp.eq.f32.partialorder %v1761_v5, 8.507059e+37  ;;  %v5830_v9 = vld [vmem:[#allocation28_spill] sm:$0xff] }
 0x31e   : > { %v1767_v21 = vmul.f32 %v1745_v57, %v4886_v7  ;;  %v1755_v30 = vmul.f32 %v3839_v38, %v1754_v36  ;;  %v5828_v7 = vld [vmem:[#allocation39_spill] sm:$0xff] }
 0x31f   : > { %v615_v45 = vadd.f32 %v5828_v7, %v4580_v52 }
 0x320   : > { %v4926_v51 = vadd.f32 %v1768_v39, %v1767_v21  ;;  %v1756_v32 = vadd.f32 %v3839_v38, %v1755_v30 }
 0x322   : > { %3842 = vtanh.f32 %v4926_v51  ;;  %v1760_v50 = vsel %vm1759_vm9, %v3839_v38, %v1756_v32  ;;  %v5829_v38 = vld [vmem:[#allocation20_spill] sm:$0xff] }
 0x323   : > { %v1765_v48 = vsel %vm1762_vm10, %v1764_v61, %v1760_v50 }
 0x328   : > { %v3843_v40 = vpop.eup %3842 }
 0x329   : > { %v1771_v34 = vmul.f32 %v3843_v40, %v1765_v48  ;;  %v5831_v48 = vld [vmem:[#allocation22_spill] sm:$0xff] }
 0x32b   : > { %v1777_v29 = vpack.c.bf16 %v1771_v34, %v1771_v34 }
 0x32d   : > { %1786 = vmatmul.bf16.vlgmr.msrb.gmra.mxu0 %v1777_v29  ;;  %1799 = vmatmul.bf16.vlgmr.msra.gmra.mxu1 %v1777_v29 }
 0x32e   : > { %1812 = vmatmul.bf16.vlgmr.msrb.gmra.mxu2 %v1777_v29  ;;  %1825 = vmatmul.bf16.vlgmr.msrb.gmra.mxu3 %v1777_v29 }
 0x32f   : > { %2028 = vmatpush.bf16.msrb.mxu0 %v4363_v56  ;;  %2041 = vmatpush.bf16.msra.mxu1 %v4369_v60 }
 0x330   : > { %2054 = vmatpush.bf16.msrb.mxu2 %v4613_v59  ;;  %2067 = vmatpush.bf16.msrb.mxu3 %v4527_v19 }
 0x333   : > { %2029 = vmatpush.bf16.msrb.mxu0 %v4372_v62  ;;  %2042 = vmatpush.bf16.msra.mxu1 %v4397_v11 }
 0x334   : > { %2055 = vmatpush.bf16.msrb.mxu2 %v4625_v25  ;;  %2068 = vmatpush.bf16.msrb.mxu3 %v4540_v41 }
 0x337   : > { %2030 = vmatpush.bf16.msrb.mxu0 %v4376_v1  ;;  %2043 = vmatpush.bf16.msra.mxu1 %v4423_v24 }
 0x338   : > { %2056 = vmatpush.bf16.msrb.mxu2 %v4639_v12  ;;  %2069 = vmatpush.bf16.msrb.mxu3 %v4549_v58 }
 0x33b   : > { %2031 = vmatpush.bf16.msrb.mxu0 %v4379_v4  ;;  %2044 = vmatpush.bf16.msra.mxu1 %v4451_v33 }
 0x33c   : > { %2057 = vmatpush.bf16.msrb.mxu2 %v4643_v3  ;;  %2070 = vmatpush.bf16.msrb.mxu3 %v4561_v18 }
 0x33f   : > { %2032 = vmatpush.bf16.msrb.mxu0 %v4391_v8  ;;  %2045 = vmatpush.bf16.msra.mxu1 %v4489_v55 }
 0x340   : > { %2058 = vmatpush.bf16.msrb.mxu2 %v4656_v43  ;;  %2071 = vmatpush.bf16.msrb.mxu3 %v4573_v49 }
 0x343   : > { %2033 = vmatpush.bf16.msrb.mxu0 %v4401_v14  ;;  %2046 = vmatpush.bf16.msra.mxu1 %v4529_v22 }
 0x344   : > { %2059 = vmatpush.bf16.msrb.mxu2 %v4666_v2  ;;  %2072 = vmatpush.bf16.msrb.mxu3 %v4589_v31 }
 0x347   : > { %2034 = vmatpush.bf16.msrb.mxu0 %v4404_v17  ;;  %2047 = vmatpush.bf16.msra.mxu1 %v4575_v54 }
 0x348   : > { %2060 = vmatpush.bf16.msrb.mxu2 %v4679_v27  ;;  %2073 = vmatpush.bf16.msrb.mxu3 %v4598_v35 }
 0x34b   : > { %2035 = vmatpush.bf16.msrb.mxu0 %v4407_v20  ;;  %2048 = vmatpush.bf16.msra.mxu1 %v4622_v28 }
 0x34c   : > { %2061 = vmatpush.bf16.msrb.mxu2 %v4684_v63  ;;  %2074 = vmatpush.bf16.msrb.mxu3 %v4606_v42 }
 0x3aa   : > { %v1787_v44 = vpop.f32.mrf.mxu0  ;;  %v1800_v10 = vpop.f32.mrf.mxu1 }
 0x3ab   : > { %v1830_v37 = vadd.f32 %v1787_v44, %v5829_v38  ;;  %v1831_v16 = vadd.f32 %v1800_v10, %v615_v45 }
 0x3ad   : > { %v3666_v13 = vmul.f32 -1.442695, %v1830_v37  ;;  %v3667_v15 = vmul.f32 -1.442695, %v1831_v16 }
 0x3af   : > { %3844 = vpow2.f32 %v3666_v13 }
 0x3b0   : > { %3846 = vpow2.f32 %v3667_v15 }
 0x3b1   : > { %v1813_v47 = vpop.f32.mrf.mxu2  ;;  %v1826_v6 = vpop.f32.mrf.mxu3 }
 0x3b2   : > { %v1833_v46 = vadd.f32 %v1826_v6, %v5830_v9  ;;  %v1789_v23 = vpop.f32.mrf.mxu0  ;;  %v1802_v36 = vpop.f32.mrf.mxu1  ;;  %v1832_v34 = vadd.f32 %v1813_v47, %v5831_v48 }
 0x3b4   : > { %v3668_v57 = vmul.f32 -1.442695, %v1833_v46 }
 0x3b5   : > { %v3845_v39 = vpop.eup %3844 }
 0x3b6   : > { %v3847_v21 = vpop.eup %3846  ;;  %v1837_v30 = vadd.f32 1.0, %v3845_v39  ;;  %3848 = vpow2.f32 %v3668_v57 }
 0x3b7   : > { %v1856_v32 = vadd.f32 1.0, %v3847_v21 }
 0x3b8   : > { %3850 = vrcp.f32 %v1837_v30  ;;  %v1849_v38 = vand.u32 2147483648, %v1837_v30  ;;  %v1847_v13 = vand.u32 2147483647, %v1837_v30  ;;  %vm1843_vm13 = vweird.f32 %v1837_v30 }
 0x3b9   : > { %3852 = vrcp.f32 %v1856_v32  ;;  %v1815_v26 = vpop.f32.mrf.mxu2  ;;  %v1828_v5 = vpop.f32.mrf.mxu3  ;;  %v1868_v37 = vand.u32 2147483648, %v1856_v32  ;;  %v1866_v6 = vand.u32 2147483647, %v1856_v32  ;;  %vm1862_vm14 = vweird.f32 %v1856_v32 }
 0x3ba   : > { %v1850_v47 = vor.u32 1.1754944e-38, %v1849_v38  ;;  %vm1848_vm2 = vcmp.eq.f32.partialorder %v1847_v13, 8.507059e+37 }
 0x3bb   : > { %v1869_v57 = vor.u32 1.1754944e-38, %v1868_v37  ;;  %vm1867_vm3 = vcmp.eq.f32.partialorder %v1866_v6, 8.507059e+37 }
 0x3bc   : > { %v3849_v50 = vpop.eup %3848 }
 0x3bd   : > { %v1876_v61 = vadd.f32 1.0, %v3849_v50 }
 0x3be   : > { %v3851_v40 = vpop.eup %3850 }
 0x3bf   : > { %v3853_v29 = vpop.eup %3852  ;;  %v1839_v7 = vmul.f32 %v3851_v40, %v1837_v30  ;;  %3854 = vrcp.f32 %v1876_v61  ;;  %vm1844_vm11 = vweird.f32 %v3851_v40  ;;  %vm1882_vm5 = vweird.f32 %v1876_v61 }
 0x3c0   : > { %v1858_v45 = vmul.f32 %v3853_v29, %v1856_v32  ;;  %3856 = vtanh.f32 %v1832_v34  ;;  %vm1863_vm12 = vweird.f32 %v3853_v29  ;;  %vm1845_vm15 = vmor %vm1843_vm13, %vm1844_vm11 }
 0x3c1   : > { %v1840_v44 = vsub.f32 1.0, %v1839_v7  ;;  %vm1864_vm0 = vmor %vm1862_vm14, %vm1863_vm12 }
 0x3c2   : > { %v1859_v10 = vsub.f32 1.0, %v1858_v45 }
 0x3c3   : > { %v1841_v16 = vmul.f32 %v3851_v40, %v1840_v44  ;;  %v1888_v44 = vand.u32 2147483648, %v1876_v61 }
 0x3c4   : > { %v1860_v15 = vmul.f32 %v3853_v29, %v1859_v10 }
 0x3c5   : > { %v3855_v9 = vpop.eup %3854  ;;  %v1842_v46 = vadd.f32 %v3851_v40, %v1841_v16  ;;  %v1889_v38 = vor.u32 1.1754944e-38, %v1888_v44 }
 0x3c6   : > { %v1861_v23 = vadd.f32 %v3853_v29, %v1860_v15  ;;  %v1878_v36 = vmul.f32 %v3855_v9, %v1876_v61  ;;  %v3857_v21 = vpop.eup %3856  ;;  %vm1883_vm4 = vweird.f32 %v3855_v9  ;;  %v5832_v15 = vld [vmem:[#allocation23_spill] sm:$0xff] }
 0x3c7   : > { %v1846_v39 = vsel %vm1845_vm15, %v3851_v40, %v1842_v46  ;;  %v1886_v40 = vand.u32 2147483647, %v1876_v61  ;;  %vm1884_vm6 = vmor %vm1882_vm5, %vm1883_vm4 }
 0x3c8   : > { %v1851_v26 = vsel %vm1848_vm2, %v1850_v47, %v1846_v39  ;;  %v1865_v5 = vsel %vm1864_vm0, %v3853_v29, %v1861_v23  ;;  %v1879_v50 = vsub.f32 1.0, %v1878_v36  ;;  %v5834_v39 = vld [vmem:[#allocation31_spill] sm:$0xff] }
 0x3c9   : > { %v1870_v48 = vsel %vm1867_vm3, %v1869_v57, %v1865_v5  ;;  %v1893_v34 = vmul.f32 %v3857_v21, %v1851_v26  ;;  %vm1887_vm7 = vcmp.eq.f32.partialorder %v1886_v40, 8.507059e+37 }
 0x3ca   : > { %v1892_v7 = vmul.f32 %v1870_v48, %v4926_v51  ;;  %v1880_v45 = vmul.f32 %v3855_v9, %v1879_v50 }
 0x3cc   : > { %v4967_v30 = vadd.f32 %v1893_v34, %v1892_v7  ;;  %v1881_v32 = vadd.f32 %v3855_v9, %v1880_v45 }
 0x3ce   : > { %3858 = vtanh.f32 %v4967_v30  ;;  %v1885_v10 = vsel %vm1884_vm6, %v3855_v9, %v1881_v32  ;;  %v5833_v9 = vld [vmem:[#allocation43_spill] sm:$0xff] }
 0x3cf   : > { %v1890_v37 = vsel %vm1887_vm7, %v1889_v38, %v1885_v10 }
 0x3d4   : > { %v3859_v29 = vpop.eup %3858 }
 0x3d5   : > { %v1896_v16 = vmul.f32 %v3859_v29, %v1890_v37  ;;  %v5835_v29 = vld [vmem:[#allocation25_spill] sm:$0xff] }
 0x3d7   : > { %v1902_v13 = vpack.c.bf16 %v1896_v16, %v1896_v16 }
 0x3d9   : > { %1911 = vmatmul.bf16.vlgmr.msra.gmra.mxu0 %v1902_v13  ;;  %1924 = vmatmul.bf16.vlgmr.msrb.gmra.mxu1 %v1902_v13 }
 0x3da   : > { %1937 = vmatmul.bf16.vlgmr.msra.gmra.mxu2 %v1902_v13  ;;  %1950 = vmatmul.bf16.vlgmr.msra.gmra.mxu3 %v1902_v13 }
 0x3db   : > { %2153 = vmatpush.bf16.msra.mxu0 %v4363_v56  ;;  %2166 = vmatpush.bf16.msrb.mxu1 %v4369_v60 }
 0x3dc   : > { %2179 = vmatpush.bf16.msra.mxu2 %v4613_v59  ;;  %2192 = vmatpush.bf16.msra.mxu3 %v4527_v19 }
 0x3df   : > { %2154 = vmatpush.bf16.msra.mxu0 %v4372_v62  ;;  %2167 = vmatpush.bf16.msrb.mxu1 %v4397_v11 }
 0x3e0   : > { %2180 = vmatpush.bf16.msra.mxu2 %v4625_v25  ;;  %2193 = vmatpush.bf16.msra.mxu3 %v4540_v41 }
 0x3e3   : > { %2155 = vmatpush.bf16.msra.mxu0 %v4376_v1  ;;  %2168 = vmatpush.bf16.msrb.mxu1 %v4423_v24 }
 0x3e4   : > { %2181 = vmatpush.bf16.msra.mxu2 %v4639_v12  ;;  %2194 = vmatpush.bf16.msra.mxu3 %v4549_v58 }
 0x3e7   : > { %2156 = vmatpush.bf16.msra.mxu0 %v4379_v4  ;;  %2169 = vmatpush.bf16.msrb.mxu1 %v4451_v33 }
 0x3e8   : > { %2182 = vmatpush.bf16.msra.mxu2 %v4643_v3  ;;  %2195 = vmatpush.bf16.msra.mxu3 %v4561_v18 }
 0x3eb   : > { %2157 = vmatpush.bf16.msra.mxu0 %v4391_v8  ;;  %2170 = vmatpush.bf16.msrb.mxu1 %v4489_v55 }
 0x3ec   : > { %2183 = vmatpush.bf16.msra.mxu2 %v4656_v43  ;;  %2196 = vmatpush.bf16.msra.mxu3 %v4573_v49 }
 0x3ef   : > { %2158 = vmatpush.bf16.msra.mxu0 %v4401_v14  ;;  %2171 = vmatpush.bf16.msrb.mxu1 %v4529_v22 }
 0x3f0   : > { %2184 = vmatpush.bf16.msra.mxu2 %v4666_v2  ;;  %2197 = vmatpush.bf16.msra.mxu3 %v4589_v31 }
 0x3f3   : > { %2159 = vmatpush.bf16.msra.mxu0 %v4404_v17  ;;  %2172 = vmatpush.bf16.msrb.mxu1 %v4575_v54 }
 0x3f4   : > { %2185 = vmatpush.bf16.msra.mxu2 %v4679_v27  ;;  %2198 = vmatpush.bf16.msra.mxu3 %v4598_v35 }
 0x3f7   : > { %2160 = vmatpush.bf16.msra.mxu0 %v4407_v20  ;;  %2173 = vmatpush.bf16.msrb.mxu1 %v4622_v28 }
 0x3f8   : > { %2186 = vmatpush.bf16.msra.mxu2 %v4684_v63  ;;  %2199 = vmatpush.bf16.msra.mxu3 %v4606_v42 }
 0x456   : > { %v1912_v51 = vpop.f32.mrf.mxu0  ;;  %v1925_v61 = vpop.f32.mrf.mxu1 }
 0x457   : > { %v1955_v6 = vadd.f32 %v1912_v51, %v5832_v15  ;;  %v1956_v46 = vadd.f32 %v1925_v61, %v5833_v9 }
 0x459   : > { %v3669_v47 = vmul.f32 -1.442695, %v1955_v6  ;;  %v3670_v23 = vmul.f32 -1.442695, %v1956_v46 }
 0x45b   : > { %3860 = vpow2.f32 %v3669_v47 }
 0x45c   : > { %3862 = vpow2.f32 %v3670_v23 }
 0x45d   : > { %v1938_v36 = vpop.f32.mrf.mxu2  ;;  %v1951_v57 = vpop.f32.mrf.mxu3 }
 0x45e   : > { %v1958_v21 = vadd.f32 %v1951_v57, %v5834_v39  ;;  %v1914_v26 = vpop.f32.mrf.mxu0  ;;  %v1927_v5 = vpop.f32.mrf.mxu1  ;;  %v1957_v37 = vadd.f32 %v1938_v36, %v5835_v29 }
 0x460   : > { %v3671_v50 = vmul.f32 -1.442695, %v1958_v21 }
 0x461   : > { %v3861_v48 = vpop.eup %3860 }
 0x462   : > { %v3863_v34 = vpop.eup %3862  ;;  %v1962_v7 = vadd.f32 1.0, %v3861_v48  ;;  %3864 = vpow2.f32 %v3671_v50 }
 0x463   : > { %v1981_v45 = vadd.f32 1.0, %v3863_v34 }
 0x464   : > { %3866 = vrcp.f32 %v1962_v7  ;;  %v1974_v6 = vand.u32 2147483648, %v1962_v7  ;;  %v1972_v47 = vand.u32 2147483647, %v1962_v7  ;;  %vm1968_vm10 = vweird.f32 %v1962_v7 }
 0x465   : > { %3868 = vrcp.f32 %v1981_v45  ;;  %v1940_v32 = vpop.f32.mrf.mxu2  ;;  %v1953_v44 = vpop.f32.mrf.mxu3  ;;  %v1993_v9 = vand.u32 2147483648, %v1981_v45  ;;  %v1991_v57 = vand.u32 2147483647, %v1981_v45  ;;  %vm1987_vm11 = vweird.f32 %v1981_v45 }
 0x466   : > { %v1975_v36 = vor.u32 1.1754944e-38, %v1974_v6  ;;  %vm1973_vm14 = vcmp.eq.f32.partialorder %v1972_v47, 8.507059e+37 }
 0x467   : > { %v1994_v50 = vor.u32 1.1754944e-38, %v1993_v9  ;;  %vm1992_vm15 = vcmp.eq.f32.partialorder %v1991_v57, 8.507059e+37 }
 0x468   : > { %v3865_v40 = vpop.eup %3864 }
 0x469   : > { %v2001_v10 = vadd.f32 1.0, %v3865_v40 }
 0x46a   : > { %v3867_v38 = vpop.eup %3866 }
 0x46b   : > { %v3869_v16 = vpop.eup %3868  ;;  %v1964_v13 = vmul.f32 %v3867_v38, %v1962_v7  ;;  %3870 = vrcp.f32 %v2001_v10  ;;  %vm1969_vm8 = vweird.f32 %v3867_v38  ;;  %vm2007_vm2 = vweird.f32 %v2001_v10 }
 0x46c   : > { %v1983_v51 = vmul.f32 %v3869_v16, %v1981_v45  ;;  %3872 = vtanh.f32 %v1957_v37  ;;  %vm1988_vm9 = vweird.f32 %v3869_v16  ;;  %vm1970_vm12 = vmor %vm1968_vm10, %vm1969_vm8 }
 0x46d   : > { %v1965_v61 = vsub.f32 1.0, %v1964_v13  ;;  %vm1989_vm13 = vmor %vm1987_vm11, %vm1988_vm9 }
 0x46e   : > { %v1984_v15 = vsub.f32 1.0, %v1983_v51 }
 0x46f   : > { %v1966_v46 = vmul.f32 %v3867_v38, %v1965_v61  ;;  %v2013_v61 = vand.u32 2147483648, %v2001_v10 }
 0x470   : > { %v1985_v23 = vmul.f32 %v3869_v16, %v1984_v15 }
 0x471   : > { %v3871_v39 = vpop.eup %3870  ;;  %v1967_v21 = vadd.f32 %v3867_v38, %v1966_v46  ;;  %v2014_v6 = vor.u32 1.1754944e-38, %v2013_v61 }
 0x472   : > { %v1986_v26 = vadd.f32 %v3869_v16, %v1985_v23  ;;  %v2003_v5 = vmul.f32 %v3871_v39, %v2001_v10  ;;  %v3873_v34 = vpop.eup %3872  ;;  %vm2008_vm0 = vweird.f32 %v3871_v39 }
 0x473   : > { %v1971_v48 = vsel %vm1970_vm12, %v3867_v38, %v1967_v21  ;;  %v2011_v38 = vand.u32 2147483647, %v2001_v10  ;;  %vm2009_vm3 = vmor %vm2007_vm2, %vm2008_vm0 }
 0x474   : > { %v1976_v32 = vsel %vm1973_vm14, %v1975_v36, %v1971_v48  ;;  %v1990_v44 = vsel %vm1989_vm13, %v3869_v16, %v1986_v26  ;;  %v2004_v40 = vsub.f32 1.0, %v2003_v5  ;;  %v5062_v26 = vld [vmem:[#allocation8 + $0x40] sm:$0xff]  ;;  %v5064_v5 = vld [vmem:[#allocation8 + $0x50] sm:$0xff] }
 0x475   : > { %v1995_v29 = vsel %vm1992_vm15, %v1994_v50, %v1990_v44  ;;  %v2018_v37 = vmul.f32 %v3873_v34, %v1976_v32  ;;  %vm2012_vm4 = vcmp.eq.f32.partialorder %v2011_v38, 8.507059e+37  ;;  %v5071_v38 = vld [vmem:[#allocation8 + $0x60] sm:$0xff] }
 0x476   : > { %v2017_v13 = vmul.f32 %v1995_v29, %v4967_v30  ;;  %v2005_v51 = vmul.f32 %v3871_v39, %v2004_v40 }
 0x478   : > { %v5007_v7 = vadd.f32 %v2018_v37, %v2017_v13  ;;  %v2006_v45 = vadd.f32 %v3871_v39, %v2005_v51  ;;  %v733_v51 = vunpack.c.l.bf16 %v5062_v26 }
 0x47a   : > { %3874 = vtanh.f32 %v5007_v7  ;;  %v2010_v15 = vsel %vm2009_vm3, %v3871_v39, %v2006_v45  ;;  %v5059_v39 = vld [vmem:[#allocation8 + $0x30] sm:$0xff]  ;;  %v737_v45 = vunpack.c.l.bf16 %v5064_v5 }
 0x47b   : > { %v2015_v9 = vsel %vm2012_vm4, %v2014_v6, %v2010_v15  ;;  %v729_v40 = vunpack.c.l.bf16 %v5059_v39 }
 0x480   : > { %v3875_v16 = vpop.eup %3874 }
 0x481   : > { %v2021_v46 = vmul.f32 %v3875_v16, %v2015_v9  ;;  %v5840_v9 = vld [vmem:[#allocation18_spill] sm:$0xff] }
 0x483   : > { %v2027_v47 = vpack.c.bf16 %v2021_v46, %v2021_v46 }
 0x485   : > { %2036 = vmatmul.bf16.vlgmr.msrb.gmra.mxu0 %v2027_v47  ;;  %2049 = vmatmul.bf16.vlgmr.msra.gmra.mxu1 %v2027_v47 }
 0x486   : > { %2062 = vmatmul.bf16.vlgmr.msrb.gmra.mxu2 %v2027_v47  ;;  %2075 = vmatmul.bf16.vlgmr.msrb.gmra.mxu3 %v2027_v47  ;;  %v5078_v47 = vld [vmem:[#allocation8 + $0x70] sm:$0xff] }
 0x487   : > { %2278 = vmatpush.bf16.msrb.mxu0 %v4363_v56  ;;  %2291 = vmatpush.bf16.msra.mxu1 %v4369_v60  ;;  %v5836_v56 = vld [vmem:[#allocation47_spill] sm:$0xff] }
 0x488   : > { %2304 = vmatpush.bf16.msrb.mxu2 %v4613_v59  ;;  %2317 = vmatpush.bf16.msrb.mxu3 %v4527_v19  ;;  %v620_v60 = vadd.f32 %v5836_v56, %v4580_v52 }
 0x48b   : > { %2279 = vmatpush.bf16.msrb.mxu0 %v4372_v62  ;;  %2292 = vmatpush.bf16.msra.mxu1 %v4397_v11 }
 0x48c   : > { %2305 = vmatpush.bf16.msrb.mxu2 %v4625_v25  ;;  %2318 = vmatpush.bf16.msrb.mxu3 %v4540_v41  ;;  %v5049_v25 = vld [vmem:[#allocation8] sm:$0xff] }
 0x48f   : > { %2280 = vmatpush.bf16.msrb.mxu0 %v4376_v1  ;;  %2293 = vmatpush.bf16.msra.mxu1 %v4423_v24  ;;  %v5838_v24 = vld [vmem:[#allocation34_spill] sm:$0xff] }
 0x490   : > { %2306 = vmatpush.bf16.msrb.mxu2 %v4639_v12  ;;  %2319 = vmatpush.bf16.msrb.mxu3 %v4549_v58  ;;  %v5051_v12 = vld [vmem:[#allocation8 + $0x10] sm:$0xff] }
 0x493   : > { %2281 = vmatpush.bf16.msrb.mxu0 %v4379_v4  ;;  %2294 = vmatpush.bf16.msra.mxu1 %v4451_v33  ;;  %v5837_v4 = vld [vmem:[#allocation26_spill] sm:$0xff] }
 0x494   : > { %2307 = vmatpush.bf16.msrb.mxu2 %v4643_v3  ;;  %2320 = vmatpush.bf16.msrb.mxu3 %v4561_v18  ;;  %v5839_v3 = vld [vmem:[#allocation29_spill] sm:$0xff] }
 0x497   : > { %2282 = vmatpush.bf16.msrb.mxu0 %v4391_v8  ;;  %2295 = vmatpush.bf16.msra.mxu1 %v4489_v55 }
 0x498   : > { %2308 = vmatpush.bf16.msrb.mxu2 %v4656_v43  ;;  %2321 = vmatpush.bf16.msrb.mxu3 %v4573_v49 }
 0x49b   : > { %2283 = vmatpush.bf16.msrb.mxu0 %v4401_v14  ;;  %2296 = vmatpush.bf16.msra.mxu1 %v4529_v22 }
 0x49c   : > { %2309 = vmatpush.bf16.msrb.mxu2 %v4666_v2  ;;  %2322 = vmatpush.bf16.msrb.mxu3 %v4589_v31 }
 0x49f   : > { %2284 = vmatpush.bf16.msrb.mxu0 %v4404_v17  ;;  %2297 = vmatpush.bf16.msra.mxu1 %v4575_v54 }
 0x4a0   : > { %2310 = vmatpush.bf16.msrb.mxu2 %v4679_v27  ;;  %2323 = vmatpush.bf16.msrb.mxu3 %v4598_v35  ;;  %v5054_v27 = vld [vmem:[#allocation8 + $0x20] sm:$0xff] }
 0x4a1   : > { %v725_v36 = vunpack.c.l.bf16 %v5054_v27 }
 0x4a3   : > { %2285 = vmatpush.bf16.msrb.mxu0 %v4407_v20  ;;  %2298 = vmatpush.bf16.msra.mxu1 %v4622_v28  ;;  %v678_v20 = vadd.f32 %v5838_v24, %v4505_v0  ;;  %v5076_v46 = vadd.f32 %v5840_v9, %v725_v36  ;;  %v492_v9 = vld [vmem:[#allocation8 + $0xf8] sm:$0xff] }
 0x4a4   : > { %2311 = vmatpush.bf16.msrb.mxu2 %v4684_v63  ;;  %2324 = vmatpush.bf16.msrb.mxu3 %v4606_v42 }
 0x502   : > { %v2037_v62 = vpop.f32.mrf.mxu0  ;;  %v2050_v1 = vpop.f32.mrf.mxu1 }
 0x503   : > { %v2080_v8 = vadd.f32 %v2037_v62, %v5837_v4  ;;  %v2081_v11 = vadd.f32 %v2050_v1, %v620_v60  ;;  %v5085_v4 = vld [vmem:[#allocation8 + $0x80] sm:$0xff] }
 0x505   : > { %v3672_v14 = vmul.f32 -1.442695, %v2080_v8  ;;  %v3673_v17 = vmul.f32 -1.442695, %v2081_v11  ;;  %v5087_v8 = vld [vmem:[#allocation8 + $0xe0] sm:$0xff]  ;;  %v5089_v11 = vld [vmem:[#allocation8 + $0xf0] sm:$0xff] }
 0x507   : > { %3876 = vpow2.f32 %v3672_v14 }
 0x508   : > { %3878 = vpow2.f32 %v3673_v17 }
 0x509   : > { %v2063_v33 = vpop.f32.mrf.mxu2  ;;  %v2076_v35 = vpop.f32.mrf.mxu3 }
 0x50a   : > { %v2083_v55 = vadd.f32 %v2076_v35, %v678_v20  ;;  %v2039_v19 = vpop.f32.mrf.mxu0  ;;  %v2052_v42 = vpop.f32.mrf.mxu1  ;;  %v2082_v2 = vadd.f32 %v2063_v33, %v5839_v3  ;;  %v5843_v20 = vld [vmem:[#allocation21_spill] sm:$0xff]  ;;  %v741_v35 = vunpack.c.l.bf16 %v5071_v38 }
 0x50b   : > { %v5094_v33 = vadd.f32 %v5843_v20, %v729_v40  ;;  %v5099_v19 = vld [vmem:[#allocation8 + $0xa0] sm:$0xff]  ;;  %v5101_v42 = vld [vmem:[#allocation8 + $0xb0] sm:$0xff]  ;;  %v5853_v20 = vld [vmem:[#allocation48_spill] sm:$0xff] }
 0x50c   : > { %v3674_v22 = vmul.f32 -1.442695, %v2083_v55  ;;  %v5097_v55 = vld [vmem:[#allocation8 + $0x90] sm:$0xff]  ;;  %v757_v36 = vunpack.c.l.bf16 %v5099_v19  ;;  %v5847_v40 = vld [vmem:[#allocation33_spill] sm:$0xff] }
 0x50d   : > { %v3877_v41 = vpop.eup %3876 }
 0x50e   : > { %v3879_v43 = vpop.eup %3878  ;;  %v2087_v58 = vadd.f32 1.0, %v3877_v41  ;;  %3880 = vpow2.f32 %v3674_v22 }
 0x50f   : > { %v2106_v18 = vadd.f32 1.0, %v3879_v43  ;;  %v5844_v43 = vld [vmem:[#allocation24_spill] sm:$0xff] }
 0x510   : > { %3882 = vrcp.f32 %v2087_v58  ;;  %v2099_v48 = vand.u32 2147483648, %v2087_v58  ;;  %v2097_v44 = vand.u32 2147483647, %v2087_v58  ;;  %vm2093_vm7 = vweird.f32 %v2087_v58 }
 0x511   : > { %3884 = vrcp.f32 %v2106_v18  ;;  %v2065_v49 = vpop.f32.mrf.mxu2  ;;  %v2078_v54 = vpop.f32.mrf.mxu3  ;;  %v2118_v34 = vand.u32 2147483648, %v2106_v18  ;;  %v2116_v37 = vand.u32 2147483647, %v2106_v18  ;;  %vm2112_vm8 = vweird.f32 %v2106_v18 }
 0x512   : > { %v2100_v15 = vor.u32 1.1754944e-38, %v2099_v48  ;;  %vm2098_vm11 = vcmp.eq.f32.partialorder %v2097_v44, 8.507059e+37  ;;  %v5107_v49 = vld [vmem:[#allocation8 + $0xc0] sm:$0xff]  ;;  %v5846_v48 = vld [vmem:[#allocation30_spill] sm:$0xff] }
 0x513   : > { %v2119_v60 = vor.u32 1.1754944e-38, %v2118_v34  ;;  %vm2117_vm12 = vcmp.eq.f32.partialorder %v2116_v37, 8.507059e+37  ;;  %v5125_v34 = vadd.f32 %v5846_v48, %v741_v35 }
 0x514   : > { %v3881_v31 = vpop.eup %3880 }
 0x515   : > { %v5047_v59 = vadd.f32 1.0, %v3881_v31 }
 0x516   : > { %v3883_v28 = vpop.eup %3882 }
 0x517   : > { %v3885_v63 = vpop.eup %3884  ;;  %v2089_v30 = vmul.f32 %v3883_v28, %v2087_v58  ;;  %3886 = vrcp.f32 %v5047_v59  ;;  %vm2094_vm5 = vweird.f32 %v3883_v28  ;;  %v5104_v58 = vadd.f32 %v5844_v43, %v733_v51  ;;  %v490_v51 = vld [vmem:[#allocation8 + $0xe8] sm:$0xff] }
 0x518   : > { %v2108_v10 = vmul.f32 %v3885_v63, %v2106_v18  ;;  %3888 = vtanh.f32 %v2082_v2  ;;  %vm2113_vm6 = vweird.f32 %v3885_v63  ;;  %vm2095_vm9 = vmor %vm2093_vm7, %vm2094_vm5  ;;  %v745_v18 = vunpack.c.l.bf16 %v5078_v47  ;;  %v486_v43 = vld [vmem:[#allocation8 + $0xc8] sm:$0xff] }
 0x519   : > { %v2090_v21 = vsub.f32 1.0, %v2089_v30  ;;  %vm5081_vm10 = vmor %vm2112_vm8, %vm2113_vm6  ;;  %v749_v2 = vunpack.c.l.bf16 %v5085_v4  ;;  %v773_v30 = vunpack.c.l.bf16 %v5087_v8  ;;  %vm2132_vm14 = vweird.f32 %v5047_v59 }
 0x51a   : > { %v2109_v50 = vsub.f32 1.0, %v2108_v10  ;;  %v777_v10 = vunpack.c.l.bf16 %v5089_v11  ;;  %v2136_v56 = vand.u32 2147483647, %v5047_v59 }
 0x51b   : > { %v2091_v32 = vmul.f32 %v3883_v28, %v2090_v21  ;;  %v753_v21 = vunpack.c.l.bf16 %v5097_v55 }
 0x51c   : > { %v2110_v29 = vmul.f32 %v3885_v63, %v2109_v50  ;;  %v761_v50 = vunpack.c.l.bf16 %v5101_v42  ;;  %vm2137_vm0 = vcmp.eq.f32.partialorder %v2136_v56, 8.507059e+37  ;;  %v5861_v56 = vld [vmem:[#allocation94_spill] sm:$0xff] }
 0x51d   : > { %v5067_v13 = vpop.eup %3886  ;;  %v2092_v61 = vadd.f32 %v3883_v28, %v2091_v32  ;;  %v765_v32 = vunpack.c.l.bf16 %v5107_v49 }
 0x51e   : > { %v2111_v6 = vadd.f32 %v3885_v63, %v2110_v29  ;;  %v2128_v16 = vmul.f32 %v5067_v13, %v5047_v59  ;;  %v3889_v1 = vpop.eup %3888  ;;  %vm2133_vm13 = vweird.f32 %v5067_v13  ;;  %v5131_v29 = vadd.f32 %v5847_v40, %v745_v18  ;;  %v488_v18 = vld [vmem:[#allocation8 + $0xd8] sm:$0xff] }
 0x51f   : > { %v2096_v62 = vsel %vm2095_vm9, %v3883_v28, %v2092_v61  ;;  %v5845_v28 = vld [vmem:[#allocation27_spill] sm:$0xff]  ;;  %v5848_v61 = vld [vmem:[#allocation60_spill] sm:$0xff]  ;;  %v5150_v35 = vadd.f32 %v5853_v20, %v761_v50  ;;  %vm5154_vm15 = vmor %vm2132_vm14, %vm2133_vm13  ;;  %v774_v40 = vunpack.c.h.bf16 %v5087_v8  ;;  %v772_v20 = vunpack.c.h.bf16 %v488_v18 }
 0x520   : > { %v2101_v14 = vsel %vm2098_vm11, %v2100_v15, %v2096_v62  ;;  %v2115_v17 = vsel %vm5081_vm10, %v3885_v63, %v2111_v6  ;;  %v2129_v24 = vsub.f32 1.0, %v2128_v16  ;;  %v5112_v3 = vadd.f32 %v5845_v28, %v737_v45  ;;  %v5115_v63 = vld [vmem:[#allocation8 + $0xd0] sm:$0xff]  ;;  %v5849_v6 = vld [vmem:[#allocation64_spill] sm:$0xff] }
 0x521   : > { %v2120_v22 = vsel %vm2117_vm12, %v2119_v60, %v2115_v17  ;;  %v2143_v41 = vmul.f32 %v3889_v1, %v2101_v14  ;;  %v769_v37 = vunpack.c.l.bf16 %v5115_v63  ;;  %v2138_v45 = vand.u32 2147483648, %v5047_v59  ;;  %v5850_v60 = vld [vmem:[#allocation36_spill] sm:$0xff] }
 0x522   : > { %v2142_v54 = vmul.f32 %v2120_v22, %v5007_v7  ;;  %v2130_v31 = vmul.f32 %v5067_v13, %v2129_v24  ;;  %v1119_v15 = vadd.f32 %v5848_v61, %v773_v30  ;;  %v1123_v16 = vadd.f32 %v5849_v6, %v777_v10  ;;  %v5851_v1 = vld [vmem:[#allocation40_spill] sm:$0xff]  ;;  %v482_v61 = vld [vmem:[#allocation8 + $0xa8] sm:$0xff] }
 0x523   : > { %v5141_v62 = vadd.f32 %v5850_v60, %v749_v2  ;;  %v5144_v14 = vadd.f32 %v5851_v1, %v753_v21  ;;  %v5852_v17 = vld [vmem:[#allocation44_spill] sm:$0xff]  ;;  %v779_v2 = vunpack.c.l.bf16 %v492_v9  ;;  %v776_v30 = vunpack.c.h.bf16 %v490_v51 }
 0x524   : > { %v5122_v7 = vadd.f32 %v2143_v41, %v2142_v54  ;;  %v2131_v44 = vadd.f32 %v5067_v13, %v2130_v31  ;;  %v5147_v24 = vadd.f32 %v5852_v17, %v757_v36  ;;  %v5856_v41 = vld [vmem:[#allocation52_spill] sm:$0xff]  ;;  %v775_v54 = vunpack.c.l.bf16 %v490_v51 }
 0x525   : > { %v1111_v59 = vadd.f32 %v5856_v41, %v765_v32  ;;  %v778_v31 = vunpack.c.h.bf16 %v5089_v11  ;;  %v780_v10 = vunpack.c.h.bf16 %v492_v9  ;;  %v2139_v21 = vor.u32 1.1754944e-38, %v2138_v45  ;;  %v5857_v36 = vld [vmem:[#allocation56_spill] sm:$0xff]  ;;  %v5858_v45 = vld [vmem:[#allocation87_spill] sm:$0xff] }
 0x526   : > { %3890 = vtanh.f32 %v5122_v7  ;;  %v2135_v28 = vsel %vm5154_vm15, %v5067_v13, %v2131_v44  ;;  %v1115_v50 = vadd.f32 %v5857_v36, %v769_v37  ;;  %v5164_v48 = vpack.c.bf16 %v1123_v16, %v1119_v15  ;;  %v484_v17 = vld [vmem:[#allocation8 + $0xb8] sm:$0xff]  ;;  %v5859_v15 = vld [vmem:[#allocation90_spill] sm:$0xff] }
 0x527   : > { %v767_v6 = vunpack.c.l.bf16 %v486_v43  ;;  %v771_v60 = vunpack.c.l.bf16 %v488_v18  ;;  %v768_v11 = vunpack.c.h.bf16 %v486_v43  ;;  %v2140_v1 = vsel %vm2137_vm0, %v2139_v21, %v2135_v28  ;;  %v5860_v9 = vld [vmem:[#allocation92_spill] sm:$0xff]  ;;  %v5862_v43 = vld [vmem:[#allocation98_spill] sm:$0xff] }
 0x528   : > { %v770_v13 = vunpack.c.h.bf16 %v5115_v63  ;;  %v1124_v44 = vadd.f32 %v4842_v53, %v778_v31  ;;  %v1121_v37 = vadd.f32 %v5858_v45, %v775_v54  ;;  %v1125_v16 = vadd.f32 %v5859_v15, %v779_v2  ;;  %v478_v18 = vld [vmem:[#allocation8 + $0x88] sm:$0xff]  ;;  %v5863_v63 = vld [vmem:[#allocation81_spill] sm:$0xff]  ;;  %v5864_v31 = vld [vmem:[#allocation84_spill] sm:$0xff] }
 0x529   : > { %v1122_v8 = vadd.f32 %v5860_v9, %v776_v30  ;;  %v1126_v22 = vadd.f32 %v5861_v56, %v780_v10  ;;  %v759_v41 = vunpack.c.l.bf16 %v482_v61  ;;  %v766_v36 = vunpack.c.h.bf16 %v5107_v49  ;;  %v480_v54 = vld [vmem:[#allocation8 + $0x98] sm:$0xff] }
 0x52a   : > { %v1120_v28 = vadd.f32 %v5862_v43, %v774_v40  ;;  %v763_v57 = vunpack.c.l.bf16 %v484_v17  ;;  %v1113_v23 = vadd.f32 %v5863_v63, %v767_v6  ;;  %v760_v53 = vunpack.c.h.bf16 %v482_v61  ;;  %v5866_v45 = vld [vmem:[#allocation96_spill] sm:$0xff] }
 0x52b   : > { %v762_v30 = vunpack.c.h.bf16 %v5101_v42  ;;  %v1116_v10 = vadd.f32 %v5866_v45, %v770_v13  ;;  %v764_v49 = vunpack.c.h.bf16 %v484_v17  ;;  %v5182_v40 = vpack.c.bf16 %v1125_v16, %v1121_v37  ;;  %v474_v17 = vld [vmem:[#allocation8 + $0x68] sm:$0xff]  ;;  %v5869_v37 = vld [vmem:[#allocation75_spill] sm:$0xff] }
 0x52c   : > { %v3891_v32 = vpop.eup %3890  ;;  %v5180_v15 = vpack.c.bf16 %v1124_v44, %v1120_v28  ;;  %v5185_v6 = vpack.c.bf16 %v1126_v22, %v1122_v8  ;;  %v5187_v61 = vpack.c.bf16 %v1115_v50, %v1111_v59  ;;  %v758_v42 = vunpack.c.h.bf16 %v5099_v19  ;;  %v476_v59 = vld [vmem:[#allocation8 + $0x78] sm:$0xff]  ;;  %v5870_v50 = vld [vmem:[#allocation78_spill] sm:$0xff]  ;;  %v5871_v22 = vld [vmem:[#allocation93_spill] sm:$0xff] }
 0x52d   : > { %v2146_v51 = vmul.f32 %v3891_v32, %v2140_v1  ;;  %v1117_v32 = vadd.f32 %v5864_v31, %v771_v60  ;;  %v5865_v1 = vld [vmem:[#allocation86_spill] sm:$0xff]  ;;  %v751_v60 = vunpack.c.l.bf16 %v478_v18  ;;  %v755_v44 = vunpack.c.l.bf16 %v480_v54  ;;  %v5872_v28 = vld [vmem:[#allocation80_spill] sm:$0xff] }
 0x52e   : > { %v1114_v2 = vadd.f32 %v5865_v1, %v768_v11  ;;  %v5868_v11 = vld [vmem:[#allocation95_spill] sm:$0xff]  ;;  %v1105_v16 = vadd.f32 %v5869_v37, %v759_v41  ;;  %v756_v8 = vunpack.c.h.bf16 %v480_v54  ;;  %v1109_v56 = vadd.f32 %v5870_v50, %v763_v57 }
 0x52f   : > { %v2152_v21 = vpack.c.bf16 %v2146_v51, %v2146_v51  ;;  %v5867_v51 = vld [vmem:[#allocation89_spill] sm:$0xff]  ;;  %v1112_v13 = vadd.f32 %v5868_v11, %v766_v36  ;;  %v754_v19 = vunpack.c.h.bf16 %v5097_v55  ;;  %v1108_v36 = vadd.f32 %v5871_v22, %v762_v30  ;;  %v5873_v41 = vld [vmem:[#allocation83_spill] sm:$0xff]  ;;  %v5878_v11 = vld [vmem:[#allocation74_spill] sm:$0xff] }
 0x530   : > { %v1118_v9 = vadd.f32 %v5867_v51, %v772_v20  ;;  %v752_v20 = vunpack.c.h.bf16 %v478_v18  ;;  %v5202_v63 = vpack.c.bf16 %v1117_v32, %v1113_v23  ;;  %v1110_v18 = vadd.f32 %v5873_v41, %v764_v49  ;;  %v5874_v55 = vld [vmem:[#allocation91_spill] sm:$0xff]  ;;  %v5875_v32 = vld [vmem:[#allocation69_spill] sm:$0xff]  ;;  %v5877_v51 = vld [vmem:[#allocation88_spill] sm:$0xff] }
 0x531   : > { %2161 = vmatmul.bf16.vlgmr.msra.gmra.mxu0 %v2152_v21  ;;  %2174 = vmatmul.bf16.vlgmr.msrb.gmra.mxu1 %v2152_v21  ;;  %v5199_v43 = vpack.c.bf16 %v1116_v10, %v1112_v13  ;;  %v5209_v54 = vpack.c.bf16 %v5150_v35, %v5147_v24  ;;  %v743_v1 = vunpack.c.l.bf16 %v474_v17  ;;  %v750_v57 = vunpack.c.h.bf16 %v5085_v4  ;;  %v472_v24 = vld [vmem:[#allocation8 + $0x58] sm:$0xff]  ;;  %v5883_v41 = vld [vmem:[#allocation82_spill] sm:$0xff] }
 0x532   : > { %2187 = vmatmul.bf16.vlgmr.msra.gmra.mxu2 %v2152_v21  ;;  %2200 = vmatmul.bf16.vlgmr.msra.gmra.mxu3 %v2152_v21  ;;  %v1106_v21 = vadd.f32 %v5872_v28, %v760_v53  ;;  %v5205_v31 = vpack.c.bf16 %v1118_v9, %v1114_v2  ;;  %v1104_v45 = vadd.f32 %v5874_v55, %v758_v42  ;;  %v470_v53 = vld [vmem:[#allocation8 + $0x48] sm:$0xff]  ;;  %v747_v23 = vunpack.c.l.bf16 %v476_v59  ;;  %v5876_v35 = vld [vmem:[#allocation72_spill] sm:$0xff] }
 0x533   : > { %2400 = vmatpush.bf16.msra.mxu0 %v5164_v48  ;;  %2413 = vmatpush.bf16.msrb.mxu1 %v5180_v15  ;;  %v1097_v30 = vadd.f32 %v5875_v32, %v751_v60  ;;  %v744_v10 = vunpack.c.h.bf16 %v474_v17  ;;  %v748_v2 = vunpack.c.h.bf16 %v476_v59  ;;  %v1101_v49 = vadd.f32 %v5876_v35, %v755_v44  ;;  %v5879_v60 = vld [vmem:[#allocation77_spill] sm:$0xff]  ;;  %v5884_v55 = vld [vmem:[#allocation68_spill] sm:$0xff] }
 0x534   : > { %2426 = vmatpush.bf16.msra.mxu2 %v5182_v40  ;;  %2439 = vmatpush.bf16.msra.mxu3 %v5185_v6  ;;  %v746_v4 = vunpack.c.h.bf16 %v5078_v47  ;;  %v1100_v9 = vadd.f32 %v5877_v51, %v754_v19  ;;  %v5221_v42 = vpack.c.bf16 %v1108_v36, %v1104_v45  ;;  %v1098_v13 = vadd.f32 %v5878_v11, %v752_v20  ;;  %v5880_v47 = vld [vmem:[#allocation85_spill] sm:$0xff]  ;;  %v466_v20 = vld [vmem:[#allocation8 + $0x28] sm:$0xff] }
 0x535   : > { %v5224_v37 = vpack.c.bf16 %v1109_v56, %v1105_v16  ;;  %v1102_v17 = vadd.f32 %v5879_v60, %v756_v8  ;;  %v5227_v59 = vpack.c.bf16 %v1110_v18, %v1106_v21  ;;  %v5231_v50 = vpack.c.bf16 %v5144_v14, %v5141_v62  ;;  %v5881_v56 = vld [vmem:[#allocation62_spill] sm:$0xff]  ;;  %v468_v62 = vld [vmem:[#allocation8 + $0x38] sm:$0xff] }
 0x536   : > { %v735_v22 = vunpack.c.l.bf16 %v470_v53  ;;  %v742_v44 = vunpack.c.h.bf16 %v5071_v38  ;;  %v1096_v28 = vadd.f32 %v5880_v47, %v750_v57  ;;  %v739_v16 = vunpack.c.l.bf16 %v472_v24  ;;  %v5882_v14 = vld [vmem:[#allocation66_spill] sm:$0xff]  ;;  %v5889_v60 = vld [vmem:[#allocation76_spill] sm:$0xff]  ;;  %v5890_v47 = vld [vmem:[#allocation61_spill] sm:$0xff] }
 0x537   : > { %2401 = vmatpush.bf16.msra.mxu0 %v5187_v61  ;;  %2414 = vmatpush.bf16.msrb.mxu1 %v5199_v43  ;;  %v1089_v19 = vadd.f32 %v5881_v56, %v743_v1  ;;  %v736_v8 = vunpack.c.h.bf16 %v470_v53  ;;  %v740_v36 = vunpack.c.h.bf16 %v472_v24  ;;  %v1093_v21 = vadd.f32 %v5882_v14, %v747_v23  ;;  %v5885_v1 = vld [vmem:[#allocation71_spill] sm:$0xff] }
 0x538   : > { %2427 = vmatpush.bf16.msra.mxu2 %v5202_v63  ;;  %2440 = vmatpush.bf16.msra.mxu3 %v5205_v31  ;;  %v738_v38 = vunpack.c.h.bf16 %v5064_v5  ;;  %v1092_v18 = vadd.f32 %v5883_v41, %v746_v4  ;;  %v5243_v57 = vpack.c.bf16 %v1100_v9, %v1096_v28  ;;  %v1090_v45 = vadd.f32 %v5884_v55, %v744_v10  ;;  %v5886_v5 = vld [vmem:[#allocation79_spill] sm:$0xff]  ;;  %v462_v10 = vld [vmem:[#allocation8 + $0x8] sm:$0xff] }
 0x539   : > { %v5246_v32 = vpack.c.bf16 %v1101_v49, %v1097_v30  ;;  %v1094_v53 = vadd.f32 %v5885_v1, %v748_v2  ;;  %v5249_v24 = vpack.c.bf16 %v1102_v17, %v1098_v13  ;;  %v5253_v35 = vpack.c.bf16 %v5131_v29, %v5125_v34  ;;  %v5887_v49 = vld [vmem:[#allocation54_spill] sm:$0xff]  ;;  %v464_v34 = vld [vmem:[#allocation8 + $0x18] sm:$0xff] }
 0x53a   : > { %v727_v51 = vunpack.c.l.bf16 %v466_v20  ;;  %v734_v23 = vunpack.c.h.bf16 %v5062_v26  ;;  %v1088_v11 = vadd.f32 %v5886_v5, %v742_v44  ;;  %v731_v30 = vunpack.c.l.bf16 %v468_v62  ;;  %v5888_v29 = vld [vmem:[#allocation58_spill] sm:$0xff] }
 0x53b   : > { %2402 = vmatpush.bf16.msra.mxu0 %v5209_v54  ;;  %2415 = vmatpush.bf16.msrb.mxu1 %v5221_v42  ;;  %v1081_v4 = vadd.f32 %v5887_v49, %v735_v22  ;;  %v728_v2 = vunpack.c.h.bf16 %v466_v20  ;;  %v732_v9 = vunpack.c.h.bf16 %v468_v62  ;;  %v1085_v13 = vadd.f32 %v5888_v29, %v739_v16  ;;  %v5891_v22 = vld [vmem:[#allocation65_spill] sm:$0xff] }
 0x53c   : > { %2428 = vmatpush.bf16.msra.mxu2 %v5224_v37  ;;  %2441 = vmatpush.bf16.msra.mxu3 %v5227_v59  ;;  %v730_v26 = vunpack.c.h.bf16 %v5059_v39  ;;  %v1084_v17 = vadd.f32 %v5889_v60, %v738_v38  ;;  %v5265_v44 = vpack.c.bf16 %v1092_v18, %v1088_v11  ;;  %v1082_v28 = vadd.f32 %v5890_v47, %v736_v8  ;;  %v5892_v39 = vld [vmem:[#allocation73_spill] sm:$0xff] }
 0x53d   : > { %v5268_v56 = vpack.c.bf16 %v1093_v21, %v1089_v19  ;;  %v1086_v20 = vadd.f32 %v5891_v22, %v740_v36  ;;  %v5271_v62 = vpack.c.bf16 %v1094_v53, %v1090_v45  ;;  %v5275_v14 = vpack.c.bf16 %v5112_v3, %v5104_v58  ;;  %v5893_v19 = vld [vmem:[#allocation46_spill] sm:$0xff]  ;;  %v5896_v53 = vld [vmem:[#allocation53_spill] sm:$0xff] }
 0x53e   : > { %v719_v41 = vunpack.c.l.bf16 %v462_v10  ;;  %v726_v16 = vunpack.c.h.bf16 %v5054_v27  ;;  %v1080_v55 = vadd.f32 %v5892_v39, %v734_v23  ;;  %v723_v8 = vunpack.c.l.bf16 %v464_v34  ;;  %v5894_v58 = vld [vmem:[#allocation50_spill] sm:$0xff]  ;;  %v5897_v11 = vld [vmem:[#allocation57_spill] sm:$0xff] }
 0x53f   : > { %2403 = vmatpush.bf16.msra.mxu0 %v5231_v50  ;;  %2416 = vmatpush.bf16.msrb.mxu1 %v5243_v57  ;;  %v1073_v21 = vadd.f32 %v5893_v19, %v727_v51  ;;  %v720_v38 = vunpack.c.h.bf16 %v462_v10  ;;  %v724_v36 = vunpack.c.h.bf16 %v464_v34  ;;  %v1077_v3 = vadd.f32 %v5894_v58, %v731_v30  ;;  %v5895_v27 = vld [vmem:[#allocation70_spill] sm:$0xff]  ;;  %v5898_v34 = vld [vmem:[#allocation67_spill] sm:$0xff]  ;;  %v5906_v39 = vld [vmem:[#allocation45_spill] sm:$0xff] }
 0x540   : > { %2429 = vmatpush.bf16.msra.mxu2 %v5246_v32  ;;  %2442 = vmatpush.bf16.msra.mxu3 %v5249_v24  ;;  %v722_v18 = vunpack.c.h.bf16 %v5051_v12  ;;  %v1076_v45 = vadd.f32 %v5895_v27, %v730_v26  ;;  %v5287_v1 = vpack.c.bf16 %v1084_v17, %v1080_v55  ;;  %v1074_v23 = vadd.f32 %v5896_v53, %v728_v2  ;;  %v5900_v26 = vld [vmem:[#allocation13_spill] sm:$0xff]  ;;  %v5903_v17 = vld [vmem:[#allocation38_spill] sm:$0xff]  ;;  %v5910_v53 = vld [vmem:[#allocation51_spill] sm:$0xff] }
 0x541   : > { %v5290_v5 = vpack.c.bf16 %v1085_v13, %v1081_v4  ;;  %v1078_v51 = vadd.f32 %v5897_v11, %v732_v9  ;;  %v5293_v10 = vpack.c.bf16 %v1086_v20, %v1082_v28  ;;  %v718_v49 = vunpack.c.h.bf16 %v5049_v25  ;;  %v5902_v4 = vld [vmem:[#allocation15_spill] sm:$0xff]  ;;  %v5904_v28 = vld [vmem:[#allocation42_spill] sm:$0xff]  ;;  %v5907_v19 = vld [vmem:[#allocation49_spill] sm:$0xff] }
 0x542   : > { %v1072_v29 = vadd.f32 %v5898_v34, %v726_v16  ;;  %v5899_v30 = vunpack.c.l.bf16 %v5049_v25  ;;  %v5901_v2 = vunpack.c.l.bf16 %v5051_v12  ;;  %v5307_v9 = vpack.c.bf16 %v5094_v33, %v5076_v46  ;;  %v5905_v20 = vld [vmem:[#allocation63_spill] sm:$0xff] }
 0x543   : > { %2404 = vmatpush.bf16.msra.mxu0 %v5253_v35  ;;  %2417 = vmatpush.bf16.msrb.mxu1 %v5265_v44  ;;  %v1065_v47 = vadd.f32 %v5903_v17, %v719_v41  ;;  %v1069_v22 = vadd.f32 %v5904_v28, %v723_v8  ;;  %v1068_v25 = vadd.f32 %v5905_v20, %v722_v18  ;;  %v5908_v33 = vld [vmem:[#allocation59_spill] sm:$0xff]  ;;  %v5909_v18 = vld [vmem:[#allocation14_spill] sm:$0xff] }
 0x544   : > { %2430 = vmatpush.bf16.msra.mxu2 %v5268_v56  ;;  %2443 = vmatpush.bf16.msra.mxu3 %v5271_v62  ;;  %v1063_v60 = vadd.f32 %v5900_v26, %v5899_v30  ;;  %v1067_v13 = vadd.f32 %v5902_v4, %v5901_v2  ;;  %v5314_v16 = vpack.c.bf16 %v1076_v45, %v1072_v29  ;;  %v5911_v29 = vld [vmem:[#allocation37_spill] sm:$0xff] }
 0x545   : > { %v1066_v12 = vadd.f32 %v5906_v39, %v720_v38  ;;  %v5317_v55 = vpack.c.bf16 %v1077_v3, %v1073_v21  ;;  %v1070_v58 = vadd.f32 %v5907_v19, %v724_v36  ;;  %v5320_v46 = vpack.c.bf16 %v1078_v51, %v1074_v23 }
 0x546   : > { %v1064_v27 = vadd.f32 %v5908_v33, %v718_v49  ;;  %v5327_v41 = vpack.c.bf16 %v1067_v13, %v1063_v60  ;;  %v5331_v21 = vpack.c.bf16 %v1069_v22, %v1065_v47 }
 0x547   : > { %2405 = vmatpush.bf16.msra.mxu0 %v5275_v14  ;;  %2418 = vmatpush.bf16.msrb.mxu1 %v5287_v1  ;;  %v5333_v38 = vpack.c.bf16 %v1070_v58, %v1066_v12  ;;  %v5912_v12 = vld [vmem:[#allocation32_spill] sm:$0xff] }
 0x548   : > { %2431 = vmatpush.bf16.msra.mxu2 %v5290_v5  ;;  %2444 = vmatpush.bf16.msra.mxu3 %v5293_v10  ;;  %v5329_v8 = vpack.c.bf16 %v1068_v25, %v1064_v27 }
 0x54b   : > { %2406 = vmatpush.bf16.msra.mxu0 %v5307_v9  ;;  %2419 = vmatpush.bf16.msrb.mxu1 %v5314_v16 }
 0x54c   : > { %2432 = vmatpush.bf16.msra.mxu2 %v5317_v55  ;;  %2445 = vmatpush.bf16.msra.mxu3 %v5320_v46 }
 0x54f   : > { %2407 = vmatpush.bf16.msra.mxu0 %v5327_v41  ;;  %2420 = vmatpush.bf16.msrb.mxu1 %v5329_v8 }
 0x550   : > { %2433 = vmatpush.bf16.msra.mxu2 %v5331_v21  ;;  %2446 = vmatpush.bf16.msra.mxu3 %v5333_v38 }
 0x5ae   : > { %v2162_v36 = vpop.f32.mrf.mxu0  ;;  %v2175_v3 = vpop.f32.mrf.mxu1 }
 0x5af   : > { %v2205_v45 = vadd.f32 %v2162_v36, %v5909_v18  ;;  %v2206_v23 = vadd.f32 %v2175_v3, %v5910_v53 }
 0x5b1   : > { %v3675_v11 = vmul.f32 -1.442695, %v2205_v45  ;;  %v3676_v51 = vmul.f32 -1.442695, %v2206_v23 }
 0x5b3   : > { %3892 = vpow2.f32 %v3675_v11 }
 0x5b4   : > { %3894 = vpow2.f32 %v3676_v51 }
 0x5b5   : > { %v2188_v49 = vpop.f32.mrf.mxu2  ;;  %v2201_v34 = vpop.f32.mrf.mxu3 }
 0x5b6   : > { %v2208_v30 = vadd.f32 %v2201_v34, %v5911_v29  ;;  %v2164_v26 = vpop.f32.mrf.mxu0  ;;  %v2177_v60 = vpop.f32.mrf.mxu1  ;;  %v2207_v19 = vadd.f32 %v2188_v49, %v5912_v12 }
 0x5b8   : > { %v3677_v2 = vmul.f32 -1.442695, %v2208_v30 }
 0x5b9   : > { %v3893_v4 = vpop.eup %3892 }
 0x5ba   : > { %v3895_v13 = vpop.eup %3894  ;;  %v2212_v17 = vadd.f32 1.0, %v3893_v4  ;;  %3896 = vpow2.f32 %v3677_v2 }
 0x5bb   : > { %v2231_v47 = vadd.f32 1.0, %v3895_v13 }
 0x5bc   : > { %3898 = vrcp.f32 %v2212_v17  ;;  %v2224_v18 = vand.u32 2147483648, %v2212_v17  ;;  %v2222_v23 = vand.u32 2147483647, %v2212_v17  ;;  %vm2218_vm4 = vweird.f32 %v2212_v17 }
 0x5bd   : > { %3900 = vrcp.f32 %v2231_v47  ;;  %v2190_v28 = vpop.f32.mrf.mxu2  ;;  %v2203_v22 = vpop.f32.mrf.mxu3  ;;  %v2243_v45 = vand.u32 2147483648, %v2231_v47  ;;  %v2241_v51 = vand.u32 2147483647, %v2231_v47  ;;  %vm2237_vm5 = vweird.f32 %v2231_v47 }
 0x5be   : > { %v2225_v49 = vor.u32 1.1754944e-38, %v2224_v18  ;;  %vm2223_vm8 = vcmp.eq.f32.partialorder %v2222_v23, 8.507059e+37 }
 0x5bf   : > { %v2244_v60 = vor.u32 1.1754944e-38, %v2243_v45  ;;  %vm2242_vm9 = vcmp.eq.f32.partialorder %v2241_v51, 8.507059e+37  ;;  %v5914_v51 = vld [vmem:[#allocation17_spill] sm:$0xff] }
 0x5c0   : > { %v3897_v20 = vpop.eup %3896 }
 0x5c1   : > { %v2251_v25 = vadd.f32 1.0, %v3897_v20 }
 0x5c2   : > { %v3899_v39 = vpop.eup %3898 }
 0x5c3   : > { %v3901_v58 = vpop.eup %3900  ;;  %v2214_v33 = vmul.f32 %v3899_v39, %v2212_v17  ;;  %3902 = vrcp.f32 %v2251_v25  ;;  %vm2219_vm2 = vweird.f32 %v3899_v39  ;;  %vm2257_vm11 = vweird.f32 %v2251_v25 }
 0x5c4   : > { %v2233_v27 = vmul.f32 %v3901_v58, %v2231_v47  ;;  %3904 = vtanh.f32 %v2207_v19  ;;  %vm2238_vm3 = vweird.f32 %v3901_v58  ;;  %vm2220_vm6 = vmor %vm2218_vm4, %vm2219_vm2 }
 0x5c5   : > { %v2215_v36 = vsub.f32 1.0, %v2214_v33  ;;  %vm2239_vm7 = vmor %vm2237_vm5, %vm2238_vm3 }
 0x5c6   : > { %v2234_v3 = vsub.f32 1.0, %v2233_v27  ;;  %v2263_v27 = vand.u32 2147483648, %v2251_v25 }
 0x5c7   : > { %v2216_v53 = vmul.f32 %v3899_v39, %v2215_v36 }
 0x5c8   : > { %v2235_v11 = vmul.f32 %v3901_v58, %v2234_v3  ;;  %v2264_v3 = vor.u32 1.1754944e-38, %v2263_v27 }
 0x5c9   : > { %v3903_v34 = vpop.eup %3902  ;;  %v2217_v29 = vadd.f32 %v3899_v39, %v2216_v53 }
 0x5ca   : > { %v2236_v30 = vadd.f32 %v3901_v58, %v2235_v11  ;;  %v2253_v26 = vmul.f32 %v3903_v34, %v2251_v25  ;;  %v3905_v4 = vpop.eup %3904  ;;  %vm2258_vm10 = vweird.f32 %v3903_v34 }
 0x5cb   : > { %v2221_v2 = vsel %vm2220_vm6, %v3899_v39, %v2217_v29  ;;  %v2261_v39 = vand.u32 2147483647, %v2251_v25  ;;  %vm2259_vm12 = vmor %vm2257_vm11, %vm2258_vm10 }
 0x5cc   : > { %v2226_v13 = vsel %vm2223_vm8, %v2225_v49, %v2221_v2  ;;  %v2240_v28 = vsel %vm2239_vm7, %v3901_v58, %v2236_v30  ;;  %v2254_v22 = vsub.f32 1.0, %v2253_v26  ;;  %v5915_v26 = vld [vmem:[#allocation41_spill] sm:$0xff] }
 0x5cd   : > { %v2245_v20 = vsel %vm2242_vm9, %v2244_v60, %v2240_v28  ;;  %v2268_v12 = vmul.f32 %v3905_v4, %v2226_v13  ;;  %vm2262_vm13 = vcmp.eq.f32.partialorder %v2261_v39, 8.507059e+37  ;;  %v683_v60 = vadd.f32 %v5915_v26, %v4505_v0 }
 0x5ce   : > { %v2267_v19 = vmul.f32 %v2245_v20, %v5122_v7  ;;  %v2255_v33 = vmul.f32 %v3903_v34, %v2254_v22  ;;  %v5913_v7 = vld [vmem:[#allocation55_spill] sm:$0xff] }
 0x5cf   : > { %v625_v25 = vadd.f32 %v5913_v7, %v4580_v52 }
 0x5d0   : > { %v5344_v17 = vadd.f32 %v2268_v12, %v2267_v19  ;;  %v2256_v47 = vadd.f32 %v3903_v34, %v2255_v33 }
 0x5d2   : > { %3906 = vtanh.f32 %v5344_v17  ;;  %v2260_v36 = vsel %vm2259_vm12, %v3903_v34, %v2256_v47 }
 0x5d3   : > { %v2265_v18 = vsel %vm2262_vm13, %v2264_v3, %v2260_v36  ;;  %v5916_v36 = vld [vmem:[#allocation16_spill] sm:$0xff]  ;;  %v5917_v3 = vld [vmem:[#allocation35_spill] sm:$0xff] }
 0x5d4   : > { %v654_v0 = vadd.f32 %v5917_v3, %v5916_v36 }
 0x5d8   : > { %v3907_v58 = vpop.eup %3906 }
 0x5d9   : > { %v2271_v45 = vmul.f32 %v3907_v58, %v2265_v18 }
 0x5db   : > { %v2277_v53 = vpack.c.bf16 %v2271_v45, %v2271_v45 }
 0x5dd   : > { %2286 = vmatmul.bf16.vlgmr.msrb.gmra.mxu0 %v2277_v53  ;;  %2299 = vmatmul.bf16.vlgmr.msra.gmra.mxu1 %v2277_v53 }
 0x5de   : > { %2312 = vmatmul.bf16.vlgmr.msrb.gmra.mxu2 %v2277_v53  ;;  %2325 = vmatmul.bf16.vlgmr.msrb.gmra.mxu3 %v2277_v53 }
 0x5df   : > { %2518 = vmatpush.bf16.msrb.mxu0 %v5164_v48  ;;  %2531 = vmatpush.bf16.msra.mxu1 %v5180_v15 }
 0x5e0   : > { %2544 = vmatpush.bf16.msrb.mxu2 %v5182_v40  ;;  %2557 = vmatpush.bf16.msrb.mxu3 %v5185_v6 }
 0x5e3   : > { %2519 = vmatpush.bf16.msrb.mxu0 %v5187_v61  ;;  %2532 = vmatpush.bf16.msra.mxu1 %v5199_v43 }
 0x5e4   : > { %2545 = vmatpush.bf16.msrb.mxu2 %v5202_v63  ;;  %2558 = vmatpush.bf16.msrb.mxu3 %v5205_v31 }
 0x5e7   : > { %2520 = vmatpush.bf16.msrb.mxu0 %v5209_v54  ;;  %2533 = vmatpush.bf16.msra.mxu1 %v5221_v42 }
 0x5e8   : > { %2546 = vmatpush.bf16.msrb.mxu2 %v5224_v37  ;;  %2559 = vmatpush.bf16.msrb.mxu3 %v5227_v59 }
 0x5eb   : > { %2521 = vmatpush.bf16.msrb.mxu0 %v5231_v50  ;;  %2534 = vmatpush.bf16.msra.mxu1 %v5243_v57 }
 0x5ec   : > { %2547 = vmatpush.bf16.msrb.mxu2 %v5246_v32  ;;  %2560 = vmatpush.bf16.msrb.mxu3 %v5249_v24 }
 0x5ef   : > { %2522 = vmatpush.bf16.msrb.mxu0 %v5253_v35  ;;  %2535 = vmatpush.bf16.msra.mxu1 %v5265_v44 }
 0x5f0   : > { %2548 = vmatpush.bf16.msrb.mxu2 %v5268_v56  ;;  %2561 = vmatpush.bf16.msrb.mxu3 %v5271_v62 }
 0x5f3   : > { %2523 = vmatpush.bf16.msrb.mxu0 %v5275_v14  ;;  %2536 = vmatpush.bf16.msra.mxu1 %v5287_v1 }
 0x5f4   : > { %2549 = vmatpush.bf16.msrb.mxu2 %v5290_v5  ;;  %2562 = vmatpush.bf16.msrb.mxu3 %v5293_v10 }
 0x5f7   : > { %2524 = vmatpush.bf16.msrb.mxu0 %v5307_v9  ;;  %2537 = vmatpush.bf16.msra.mxu1 %v5314_v16 }
 0x5f8   : > { %2550 = vmatpush.bf16.msrb.mxu2 %v5317_v55  ;;  %2563 = vmatpush.bf16.msrb.mxu3 %v5320_v46 }
 0x5fb   : > { %2525 = vmatpush.bf16.msrb.mxu0 %v5327_v41  ;;  %2538 = vmatpush.bf16.msra.mxu1 %v5329_v8 }
 0x5fc   : > { %2551 = vmatpush.bf16.msrb.mxu2 %v5331_v21  ;;  %2564 = vmatpush.bf16.msrb.mxu3 %v5333_v38 }
 0x65a   : > { %v2287_v23 = vpop.f32.mrf.mxu0  ;;  %v2300_v11 = vpop.f32.mrf.mxu1 }
 0x65b   : > { %v2330_v34 = vadd.f32 %v2287_v23, %v5914_v51  ;;  %v2331_v29 = vadd.f32 %v2300_v11, %v625_v25 }
 0x65d   : > { %v3678_v49 = vmul.f32 -1.442695, %v2330_v34  ;;  %v3679_v30 = vmul.f32 -1.442695, %v2331_v29 }
 0x65f   : > { %3908 = vpow2.f32 %v3678_v49 }
 0x660   : > { %3910 = vpow2.f32 %v3679_v30 }
 0x661   : > { %v2313_v2 = vpop.f32.mrf.mxu2  ;;  %v2326_v4 = vpop.f32.mrf.mxu3 }
 0x662   : > { %v2333_v13 = vadd.f32 %v2326_v4, %v683_v60  ;;  %v2289_v28 = vpop.f32.mrf.mxu0  ;;  %v2302_v22 = vpop.f32.mrf.mxu1  ;;  %v2332_v45 = vadd.f32 %v2313_v2, %v654_v0 }
 0x664   : > { %v3680_v20 = vmul.f32 -1.442695, %v2333_v13 }
 0x665   : > { %v3909_v12 = vpop.eup %3908 }
 0x666   : > { %v3911_v52 = vpop.eup %3910  ;;  %v2337_v19 = vadd.f32 1.0, %v3909_v12  ;;  %3912 = vpow2.f32 %v3680_v20 }
 0x667   : > { %v2356_v33 = vadd.f32 1.0, %v3911_v52 }
 0x668   : > { %3914 = vrcp.f32 %v2337_v19  ;;  %v2349_v51 = vand.u32 2147483648, %v2337_v19  ;;  %v2347_v49 = vand.u32 2147483647, %v2337_v19  ;;  %vm2343_vm0 = vweird.f32 %v2337_v19 }
 0x669   : > { %3916 = vrcp.f32 %v2356_v33  ;;  %v2315_v47 = vpop.f32.mrf.mxu2  ;;  %v2328_v27 = vpop.f32.mrf.mxu3  ;;  %v2368_v34 = vand.u32 2147483648, %v2356_v33  ;;  %v2366_v26 = vand.u32 2147483647, %v2356_v33  ;;  %vm2362_vm2 = vweird.f32 %v2356_v33 }
 0x66a   : > { %v2350_v2 = vor.u32 1.1754944e-38, %v2349_v51  ;;  %vm2348_vm5 = vcmp.eq.f32.partialorder %v2347_v49, 8.507059e+37  ;;  %v5919_v51 = vld [vmem:[#allocation97_spill] sm:$0xff] }
 0x66b   : > { %v2369_v22 = vor.u32 1.1754944e-38, %v2368_v34  ;;  %vm2367_vm6 = vcmp.eq.f32.partialorder %v2366_v26, 8.507059e+37 }
 0x66c   : > { %v3913_v39 = vpop.eup %3912 }
 0x66d   : > { %v2376_v58 = vadd.f32 1.0, %v3913_v39 }
 0x66e   : > { %v3915_v18 = vpop.eup %3914 }
 0x66f   : > { %v3917_v53 = vpop.eup %3916  ;;  %v2339_v7 = vmul.f32 %v3915_v18, %v2337_v19  ;;  %3918 = vrcp.f32 %v2376_v58  ;;  %vm2344_vm14 = vweird.f32 %v3915_v18  ;;  %vm2382_vm8 = vweird.f32 %v2376_v58 }
 0x670   : > { %v2358_v25 = vmul.f32 %v3917_v53, %v2356_v33  ;;  %3920 = vtanh.f32 %v2332_v45  ;;  %vm2363_vm15 = vweird.f32 %v3917_v53  ;;  %vm2345_vm3 = vmor %vm2343_vm0, %vm2344_vm14  ;;  %v2388_v45 = vand.u32 2147483648, %v2376_v58 }
 0x671   : > { %v2340_v23 = vsub.f32 1.0, %v2339_v7  ;;  %vm2364_vm4 = vmor %vm2362_vm2, %vm2363_vm15 }
 0x672   : > { %v2359_v11 = vsub.f32 1.0, %v2358_v25  ;;  %v2389_v25 = vor.u32 1.1754944e-38, %v2388_v45 }
 0x673   : > { %v2341_v29 = vmul.f32 %v3915_v18, %v2340_v23 }
 0x674   : > { %v2360_v30 = vmul.f32 %v3917_v53, %v2359_v11 }
 0x675   : > { %v3919_v60 = vpop.eup %3918  ;;  %v2342_v4 = vadd.f32 %v3915_v18, %v2341_v29 }
 0x676   : > { %v2361_v13 = vadd.f32 %v3917_v53, %v2360_v30  ;;  %v2378_v28 = vmul.f32 %v3919_v60, %v2376_v58  ;;  %v3921_v12 = vpop.eup %3920  ;;  %vm2383_vm7 = vweird.f32 %v3919_v60 }
 0x677   : > { %v2346_v20 = vsel %vm2345_vm3, %v3915_v18, %v2342_v4  ;;  %v2386_v18 = vand.u32 2147483647, %v2376_v58  ;;  %vm2384_vm9 = vmor %vm2382_vm8, %vm2383_vm7  ;;  %v510_v58 = vld [vmem:[%s5726_s6] sm:$0xf] }
 0x678   : > { %v2351_v52 = vsel %vm2348_vm5, %v2350_v2, %v2346_v20  ;;  %v2365_v47 = vsel %vm2364_vm4, %v3917_v53, %v2361_v13  ;;  %v2379_v27 = vsub.f32 1.0, %v2378_v28  ;;  %v1229_v34 = vadd.f32 %v5919_v51, %v510_v58 }
 0x679   : > { %v2370_v39 = vsel %vm2367_vm6, %v2369_v22, %v2365_v47  ;;  %v2393_v36 = vmul.f32 %v3921_v12, %v2351_v52  ;;  %vm2387_vm10 = vcmp.eq.f32.partialorder %v2386_v18, 8.507059e+37 }
 0x67a   : > { %v2392_v3 = vmul.f32 %v2370_v39, %v5344_v17  ;;  %v2380_v0 = vmul.f32 %v3919_v60, %v2379_v27  ;;  %v5430_v29 = vperm.slane %v1229_v34, 0  ;;  %v5432_v49 = vperm.slane %v1229_v34, 1 }
 0x67b   : > { %v5436_v28 = vperm.slane %v1229_v34, 3 }
 0x67c   : > { %v5387_v19 = vadd.f32 %v2393_v36, %v2392_v3  ;;  %v2381_v33 = vadd.f32 %v3919_v60, %v2380_v0 }
 0x67e   : > { %3922 = vtanh.f32 %v5387_v19  ;;  %v2385_v7 = vsel %vm2384_vm9, %v3919_v60, %v2381_v33 }
 0x67f   : > { %v2390_v23 = vsel %vm2387_vm10, %v2389_v25, %v2385_v7  ;;  %v5439_v7 = vperm.slane %v1229_v34, 2 }
 0x684   : > { %v3923_v53 = vpop.eup %3922 }
 0x685   : > { %v5390_v11 = vmul.f32 %v3923_v53, %v2390_v23 }
 0x687   : > { %5918 = vst [vmem:[#allocation19_spill] sm:$0xff] %v5390_v11  ;;  %v2399_v17 = vpack.c.bf16 %v5390_v11, %v5390_v11 }
 0x689   : > { %2408 = vmatmul.bf16.vlgmr.msra.gmra.mxu0 %v2399_v17  ;;  %2421 = vmatmul.bf16.vlgmr.msrb.gmra.mxu1 %v2399_v17 }
 0x68a   : > { %2434 = vmatmul.bf16.vlgmr.msra.gmra.mxu2 %v2399_v17  ;;  %2447 = vmatmul.bf16.vlgmr.msra.gmra.mxu3 %v2399_v17 }
 0x68b   : > { %2636 = vmatpush.bf16.msra.mxu0 %v5164_v48  ;;  %2649 = vmatpush.bf16.msrb.mxu1 %v5180_v15 }
 0x68c   : > { %2662 = vmatpush.bf16.msra.mxu2 %v5182_v40  ;;  %2675 = vmatpush.bf16.msra.mxu3 %v5185_v6 }
 0x68f   : > { %2637 = vmatpush.bf16.msra.mxu0 %v5187_v61  ;;  %2650 = vmatpush.bf16.msrb.mxu1 %v5199_v43 }
 0x690   : > { %2663 = vmatpush.bf16.msra.mxu2 %v5202_v63  ;;  %2676 = vmatpush.bf16.msra.mxu3 %v5205_v31 }
 0x693   : > { %2638 = vmatpush.bf16.msra.mxu0 %v5209_v54  ;;  %2651 = vmatpush.bf16.msrb.mxu1 %v5221_v42 }
 0x694   : > { %2664 = vmatpush.bf16.msra.mxu2 %v5224_v37  ;;  %2677 = vmatpush.bf16.msra.mxu3 %v5227_v59 }
 0x697   : > { %2639 = vmatpush.bf16.msra.mxu0 %v5231_v50  ;;  %2652 = vmatpush.bf16.msrb.mxu1 %v5243_v57 }
 0x698   : > { %2665 = vmatpush.bf16.msra.mxu2 %v5246_v32  ;;  %2678 = vmatpush.bf16.msra.mxu3 %v5249_v24 }
 0x69b   : > { %2640 = vmatpush.bf16.msra.mxu0 %v5253_v35  ;;  %2653 = vmatpush.bf16.msrb.mxu1 %v5265_v44 }
 0x69c   : > { %2666 = vmatpush.bf16.msra.mxu2 %v5268_v56  ;;  %2679 = vmatpush.bf16.msra.mxu3 %v5271_v62 }
 0x69f   : > { %2641 = vmatpush.bf16.msra.mxu0 %v5275_v14  ;;  %2654 = vmatpush.bf16.msrb.mxu1 %v5287_v1 }
 0x6a0   : > { %2667 = vmatpush.bf16.msra.mxu2 %v5290_v5  ;;  %2680 = vmatpush.bf16.msra.mxu3 %v5293_v10 }
 0x6a3   : > { %2642 = vmatpush.bf16.msra.mxu0 %v5307_v9  ;;  %2655 = vmatpush.bf16.msrb.mxu1 %v5314_v16 }
 0x6a4   : > { %2668 = vmatpush.bf16.msra.mxu2 %v5317_v55  ;;  %2681 = vmatpush.bf16.msra.mxu3 %v5320_v46 }
 0x6a7   : > { %2643 = vmatpush.bf16.msra.mxu0 %v5327_v41  ;;  %2656 = vmatpush.bf16.msrb.mxu1 %v5329_v8 }
 0x6a8   : > { %2669 = vmatpush.bf16.msra.mxu2 %v5331_v21  ;;  %2682 = vmatpush.bf16.msra.mxu3 %v5333_v38 }
 0x706   : > { %v2409_v30 = vpop.f32.mrf.mxu0  ;;  %v2422_v26 = vpop.f32.mrf.mxu1 }
 0x707   : > { %v2410_v60 = vadd.f32 %v2409_v30, %v5430_v29  ;;  %v2423_v4 = vadd.f32 %v2422_v26, %v5432_v49 }
 0x709   : > { %v3681_v2 = vmul.f32 -1.442695, %v2410_v60  ;;  %v3682_v13 = vmul.f32 -1.442695, %v2423_v4 }
 0x70b   : > { %3924 = vpow2.f32 %v3681_v2 }
 0x70c   : > { %3926 = vpow2.f32 %v3682_v13 }
 0x70d   : > { %v2435_v22 = vpop.f32.mrf.mxu2  ;;  %v2448_v20 = vpop.f32.mrf.mxu3 }
 0x70e   : > { %v2449_v12 = vadd.f32 %v2448_v20, %v5436_v28  ;;  %v2411_v52 = vpop.f32.mrf.mxu0  ;;  %v2424_v47 = vpop.f32.mrf.mxu1  ;;  %v2436_v23 = vadd.f32 %v2435_v22, %v5439_v7 }
 0x710   : > { %v3683_v27 = vmul.f32 -1.442695, %v2449_v12 }
 0x711   : > { %v3925_v39 = vpop.eup %3924 }
 0x712   : > { %v3927_v36 = vpop.eup %3926  ;;  %v2455_v3 = vadd.f32 1.0, %v3925_v39  ;;  %3928 = vpow2.f32 %v3683_v27 }
 0x713   : > { %v2474_v0 = vadd.f32 1.0, %v3927_v36 }
 0x714   : > { %3930 = vrcp.f32 %v2455_v3  ;;  %v2467_v60 = vand.u32 2147483648, %v2455_v3  ;;  %v2465_v13 = vand.u32 2147483647, %v2455_v3  ;;  %vm2461_vm13 = vweird.f32 %v2455_v3 }
 0x715   : > { %3932 = vrcp.f32 %v2474_v0  ;;  %v2437_v33 = vpop.f32.mrf.mxu2  ;;  %v2450_v45 = vpop.f32.mrf.mxu3  ;;  %v2486_v4 = vand.u32 2147483648, %v2474_v0  ;;  %v2484_v34 = vand.u32 2147483647, %v2474_v0  ;;  %vm2480_vm14 = vweird.f32 %v2474_v0 }
 0x716   : > { %v2468_v22 = vor.u32 1.1754944e-38, %v2467_v60  ;;  %vm2466_vm2 = vcmp.eq.f32.partialorder %v2465_v13, 8.507059e+37 }
 0x717   : > { %v2487_v39 = vor.u32 1.1754944e-38, %v2486_v4  ;;  %vm2485_vm3 = vcmp.eq.f32.partialorder %v2484_v34, 8.507059e+37 }
 0x718   : > { %v3929_v18 = vpop.eup %3928 }
 0x719   : > { %v2494_v25 = vadd.f32 1.0, %v3929_v18 }
 0x71a   : > { %v3931_v53 = vpop.eup %3930 }
 0x71b   : > { %v3933_v17 = vpop.eup %3932  ;;  %v2457_v58 = vmul.f32 %v3931_v53, %v2455_v3  ;;  %3934 = vrcp.f32 %v2494_v25  ;;  %vm2462_vm11 = vweird.f32 %v3931_v53  ;;  %v2506_v60 = vand.u32 2147483648, %v2494_v25 }
 0x71c   : > { %v2476_v51 = vmul.f32 %v3933_v17, %v2474_v0  ;;  %3936 = vtanh.f32 %v2436_v23  ;;  %vm2481_vm12 = vweird.f32 %v3933_v17  ;;  %vm2463_vm15 = vmor %vm2461_vm13, %vm2462_vm11  ;;  %vm2500_vm5 = vweird.f32 %v2494_v25 }
 0x71d   : > { %v2458_v30 = vsub.f32 1.0, %v2457_v58  ;;  %vm2482_vm0 = vmor %vm2480_vm14, %vm2481_vm12 }
 0x71e   : > { %v2477_v26 = vsub.f32 1.0, %v2476_v51 }
 0x71f   : > { %v2459_v2 = vmul.f32 %v3931_v53, %v2458_v30 }
 0x720   : > { %v2478_v20 = vmul.f32 %v3933_v17, %v2477_v26 }
 0x721   : > { %v3935_v12 = vpop.eup %3934  ;;  %v2460_v52 = vadd.f32 %v3931_v53, %v2459_v2  ;;  %v2507_v2 = vor.u32 1.1754944e-38, %v2506_v60 }
 0x722   : > { %v2479_v47 = vadd.f32 %v3933_v17, %v2478_v20  ;;  %v2496_v27 = vmul.f32 %v3935_v12, %v2494_v25  ;;  %v3937_v33 = vpop.eup %3936  ;;  %vm2501_vm4 = vweird.f32 %v3935_v12 }
 0x723   : > { %v2464_v36 = vsel %vm2463_vm15, %v3931_v53, %v2460_v52  ;;  %v2504_v53 = vand.u32 2147483647, %v2494_v25  ;;  %vm2502_vm6 = vmor %vm2500_vm5, %vm2501_vm4 }
 0x724   : > { %v2469_v45 = vsel %vm2466_vm2, %v2468_v22, %v2464_v36  ;;  %v2483_v18 = vsel %vm2482_vm0, %v3933_v17, %v2479_v47  ;;  %v2497_v23 = vsub.f32 1.0, %v2496_v27 }
 0x725   : > { %v2488_v58 = vsel %vm2485_vm3, %v2487_v39, %v2483_v18  ;;  %v2511_v51 = vmul.f32 %v3937_v33, %v2469_v45  ;;  %vm2505_vm7 = vcmp.eq.f32.partialorder %v2504_v53, 8.507059e+37 }
 0x726   : > { %v2510_v30 = vmul.f32 %v2488_v58, %v5387_v19  ;;  %v2498_v26 = vmul.f32 %v3935_v12, %v2497_v23 }
 0x728   : > { %v5443_v3 = vadd.f32 %v2511_v51, %v2510_v30  ;;  %v2499_v0 = vadd.f32 %v3935_v12, %v2498_v26 }
 0x72a   : > { %3938 = vtanh.f32 %v5443_v3  ;;  %v2503_v4 = vsel %vm2502_vm6, %v3935_v12, %v2499_v0 }
 0x72b   : > { %v2508_v13 = vsel %vm2505_vm7, %v2507_v2, %v2503_v4 }
 0x730   : > { %v3939_v17 = vpop.eup %3938 }
 0x731   : > { %v5446_v20 = vmul.f32 %v3939_v17, %v2508_v13 }
 0x733   : > { %5920 = vst [vmem:[#allocation39_spill] sm:$0xff] %v5446_v20  ;;  %v2517_v19 = vpack.c.bf16 %v5446_v20, %v5446_v20 }
 0x735   : > { %2526 = vmatmul.bf16.vlgmr.msrb.gmra.mxu0 %v2517_v19  ;;  %2539 = vmatmul.bf16.vlgmr.msra.gmra.mxu1 %v2517_v19 }
 0x736   : > { %2552 = vmatmul.bf16.vlgmr.msrb.gmra.mxu2 %v2517_v19  ;;  %2565 = vmatmul.bf16.vlgmr.msrb.gmra.mxu3 %v2517_v19 }
 0x737   : > { %2754 = vmatpush.bf16.msrb.mxu0 %v5164_v48  ;;  %2767 = vmatpush.bf16.msra.mxu1 %v5180_v15 }
 0x738   : > { %2780 = vmatpush.bf16.msrb.mxu2 %v5182_v40  ;;  %2793 = vmatpush.bf16.msrb.mxu3 %v5185_v6 }
 0x73b   : > { %2755 = vmatpush.bf16.msrb.mxu0 %v5187_v61  ;;  %2768 = vmatpush.bf16.msra.mxu1 %v5199_v43 }
 0x73c   : > { %2781 = vmatpush.bf16.msrb.mxu2 %v5202_v63  ;;  %2794 = vmatpush.bf16.msrb.mxu3 %v5205_v31 }
 0x73f   : > { %2756 = vmatpush.bf16.msrb.mxu0 %v5209_v54  ;;  %2769 = vmatpush.bf16.msra.mxu1 %v5221_v42 }
 0x740   : > { %2782 = vmatpush.bf16.msrb.mxu2 %v5224_v37  ;;  %2795 = vmatpush.bf16.msrb.mxu3 %v5227_v59 }
 0x743   : > { %2757 = vmatpush.bf16.msrb.mxu0 %v5231_v50  ;;  %2770 = vmatpush.bf16.msra.mxu1 %v5243_v57 }
 0x744   : > { %2783 = vmatpush.bf16.msrb.mxu2 %v5246_v32  ;;  %2796 = vmatpush.bf16.msrb.mxu3 %v5249_v24 }
 0x747   : > { %2758 = vmatpush.bf16.msrb.mxu0 %v5253_v35  ;;  %2771 = vmatpush.bf16.msra.mxu1 %v5265_v44 }
 0x748   : > { %2784 = vmatpush.bf16.msrb.mxu2 %v5268_v56  ;;  %2797 = vmatpush.bf16.msrb.mxu3 %v5271_v62 }
 0x74b   : > { %2759 = vmatpush.bf16.msrb.mxu0 %v5275_v14  ;;  %2772 = vmatpush.bf16.msra.mxu1 %v5287_v1 }
 0x74c   : > { %2785 = vmatpush.bf16.msrb.mxu2 %v5290_v5  ;;  %2798 = vmatpush.bf16.msrb.mxu3 %v5293_v10 }
 0x74f   : > { %2760 = vmatpush.bf16.msrb.mxu0 %v5307_v9  ;;  %2773 = vmatpush.bf16.msra.mxu1 %v5314_v16 }
 0x750   : > { %2786 = vmatpush.bf16.msrb.mxu2 %v5317_v55  ;;  %2799 = vmatpush.bf16.msrb.mxu3 %v5320_v46 }
 0x753   : > { %2761 = vmatpush.bf16.msrb.mxu0 %v5327_v41  ;;  %2774 = vmatpush.bf16.msra.mxu1 %v5329_v8 }
 0x754   : > { %2787 = vmatpush.bf16.msrb.mxu2 %v5331_v21  ;;  %2800 = vmatpush.bf16.msrb.mxu3 %v5333_v38 }
 0x7b2   : > { %v2527_v25 = vpop.f32.mrf.mxu0  ;;  %v2540_v34 = vpop.f32.mrf.mxu1 }
 0x7b3   : > { %v2528_v12 = vadd.f32 %v2527_v25, %v5430_v29  ;;  %v2541_v52 = vadd.f32 %v2540_v34, %v5432_v49 }
 0x7b5   : > { %v3684_v22 = vmul.f32 -1.442695, %v2528_v12  ;;  %v3685_v47 = vmul.f32 -1.442695, %v2541_v52 }
 0x7b7   : > { %3940 = vpow2.f32 %v3684_v22 }
 0x7b8   : > { %3942 = vpow2.f32 %v3685_v47 }
 0x7b9   : > { %v2553_v27 = vpop.f32.mrf.mxu2  ;;  %v2566_v39 = vpop.f32.mrf.mxu3 }
 0x7ba   : > { %v2567_v36 = vadd.f32 %v2566_v39, %v5436_v28  ;;  %v2529_v33 = vpop.f32.mrf.mxu0  ;;  %v2542_v45 = vpop.f32.mrf.mxu1  ;;  %v2554_v2 = vadd.f32 %v2553_v27, %v5439_v7 }
 0x7bc   : > { %v3686_v18 = vmul.f32 -1.442695, %v2567_v36 }
 0x7bd   : > { %v3941_v23 = vpop.eup %3940 }
 0x7be   : > { %v3943_v58 = vpop.eup %3942  ;;  %v2573_v51 = vadd.f32 1.0, %v3941_v23  ;;  %3944 = vpow2.f32 %v3686_v18 }
 0x7bf   : > { %v2592_v30 = vadd.f32 1.0, %v3943_v58 }
 0x7c0   : > { %3946 = vrcp.f32 %v2573_v51  ;;  %v2585_v12 = vand.u32 2147483648, %v2573_v51  ;;  %v2583_v47 = vand.u32 2147483647, %v2573_v51  ;;  %vm2579_vm10 = vweird.f32 %v2573_v51 }
 0x7c1   : > { %3948 = vrcp.f32 %v2592_v30  ;;  %v2555_v26 = vpop.f32.mrf.mxu2  ;;  %v2568_v0 = vpop.f32.mrf.mxu3  ;;  %v2604_v52 = vand.u32 2147483648, %v2592_v30  ;;  %v2602_v36 = vand.u32 2147483647, %v2592_v30  ;;  %vm2598_vm11 = vweird.f32 %v2592_v30 }
 0x7c2   : > { %v2586_v27 = vor.u32 1.1754944e-38, %v2585_v12  ;;  %vm2584_vm14 = vcmp.eq.f32.partialorder %v2583_v47, 8.507059e+37 }
 0x7c3   : > { %v2605_v58 = vor.u32 1.1754944e-38, %v2604_v52  ;;  %vm2603_vm15 = vcmp.eq.f32.partialorder %v2602_v36, 8.507059e+37 }
 0x7c4   : > { %v3945_v60 = vpop.eup %3944 }
 0x7c5   : > { %v2612_v53 = vadd.f32 1.0, %v3945_v60 }
 0x7c6   : > { %v3947_v4 = vpop.eup %3946 }
 0x7c7   : > { %v3949_v17 = vpop.eup %3948  ;;  %v2575_v13 = vmul.f32 %v3947_v4, %v2573_v51  ;;  %3950 = vrcp.f32 %v2612_v53  ;;  %vm2580_vm8 = vweird.f32 %v3947_v4  ;;  %v2624_v12 = vand.u32 2147483648, %v2612_v53 }
 0x7c8   : > { %v2594_v19 = vmul.f32 %v3949_v17, %v2592_v30  ;;  %3952 = vtanh.f32 %v2554_v2  ;;  %vm2599_vm9 = vweird.f32 %v3949_v17  ;;  %vm2581_vm12 = vmor %vm2579_vm10, %vm2580_vm8  ;;  %vm2618_vm2 = vweird.f32 %v2612_v53 }
 0x7c9   : > { %v2576_v25 = vsub.f32 1.0, %v2575_v13  ;;  %vm2600_vm13 = vmor %vm2598_vm11, %vm2599_vm9  ;;  %v2625_v47 = vor.u32 1.1754944e-38, %v2624_v12 }
 0x7ca   : > { %v2595_v34 = vsub.f32 1.0, %v2594_v19 }
 0x7cb   : > { %v2577_v22 = vmul.f32 %v3947_v4, %v2576_v25 }
 0x7cc   : > { %v2596_v39 = vmul.f32 %v3949_v17, %v2595_v34 }
 0x7cd   : > { %v3951_v33 = vpop.eup %3950  ;;  %v2578_v45 = vadd.f32 %v3947_v4, %v2577_v22 }
 0x7ce   : > { %v2597_v18 = vadd.f32 %v3949_v17, %v2596_v39  ;;  %v2614_v23 = vmul.f32 %v3951_v33, %v2612_v53  ;;  %v3953_v0 = vpop.eup %3952  ;;  %vm2619_vm0 = vweird.f32 %v3951_v33 }
 0x7cf   : > { %v2582_v26 = vsel %vm2581_vm12, %v3947_v4, %v2578_v45  ;;  %v2622_v4 = vand.u32 2147483647, %v2612_v53  ;;  %vm2620_vm3 = vmor %vm2618_vm2, %vm2619_vm0 }
 0x7d0   : > { %v2587_v60 = vsel %vm2584_vm14, %v2586_v27, %v2582_v26  ;;  %v2601_v2 = vsel %vm2600_vm13, %v3949_v17, %v2597_v18  ;;  %v2615_v13 = vsub.f32 1.0, %v2614_v23 }
 0x7d1   : > { %v2606_v19 = vsel %vm2603_vm15, %v2605_v58, %v2601_v2  ;;  %v2629_v25 = vmul.f32 %v3953_v0, %v2587_v60  ;;  %vm2623_vm4 = vcmp.eq.f32.partialorder %v2622_v4, 8.507059e+37 }
 0x7d2   : > { %v2628_v34 = vmul.f32 %v2606_v19, %v5443_v3  ;;  %v2616_v22 = vmul.f32 %v3951_v33, %v2615_v13 }
 0x7d4   : > { %v5487_v51 = vadd.f32 %v2629_v25, %v2628_v34  ;;  %v2617_v30 = vadd.f32 %v3951_v33, %v2616_v22 }
 0x7d6   : > { %3954 = vtanh.f32 %v5487_v51  ;;  %v2621_v52 = vsel %vm2620_vm3, %v3951_v33, %v2617_v30 }
 0x7d7   : > { %v2626_v39 = vsel %vm2623_vm4, %v2625_v47, %v2621_v52 }
 0x7dc   : > { %v3955_v17 = vpop.eup %3954 }
 0x7dd   : > { %v5490_v36 = vmul.f32 %v3955_v17, %v2626_v39 }
 0x7df   : > { %v2635_v3 = vpack.c.bf16 %v5490_v36, %v5490_v36 }
 0x7e1   : > { %2644 = vmatmul.bf16.vlgmr.msra.gmra.mxu0 %v2635_v3  ;;  %2657 = vmatmul.bf16.vlgmr.msrb.gmra.mxu1 %v2635_v3 }
 0x7e2   : > { %2670 = vmatmul.bf16.vlgmr.msra.gmra.mxu2 %v2635_v3  ;;  %2683 = vmatmul.bf16.vlgmr.msra.gmra.mxu3 %v2635_v3 }
 0x7e3   : > { %2872 = vmatpush.bf16.msra.mxu0 %v5164_v48  ;;  %2885 = vmatpush.bf16.msrb.mxu1 %v5180_v15 }
 0x7e4   : > { %2898 = vmatpush.bf16.msra.mxu2 %v5182_v40  ;;  %2911 = vmatpush.bf16.msra.mxu3 %v5185_v6 }
 0x7e7   : > { %2873 = vmatpush.bf16.msra.mxu0 %v5187_v61  ;;  %2886 = vmatpush.bf16.msrb.mxu1 %v5199_v43 }
 0x7e8   : > { %2899 = vmatpush.bf16.msra.mxu2 %v5202_v63  ;;  %2912 = vmatpush.bf16.msra.mxu3 %v5205_v31 }
 0x7eb   : > { %2874 = vmatpush.bf16.msra.mxu0 %v5209_v54  ;;  %2887 = vmatpush.bf16.msrb.mxu1 %v5221_v42 }
 0x7ec   : > { %2900 = vmatpush.bf16.msra.mxu2 %v5224_v37  ;;  %2913 = vmatpush.bf16.msra.mxu3 %v5227_v59 }
 0x7ef   : > { %2875 = vmatpush.bf16.msra.mxu0 %v5231_v50  ;;  %2888 = vmatpush.bf16.msrb.mxu1 %v5243_v57 }
 0x7f0   : > { %2901 = vmatpush.bf16.msra.mxu2 %v5246_v32  ;;  %2914 = vmatpush.bf16.msra.mxu3 %v5249_v24 }
 0x7f3   : > { %2876 = vmatpush.bf16.msra.mxu0 %v5253_v35  ;;  %2889 = vmatpush.bf16.msrb.mxu1 %v5265_v44 }
 0x7f4   : > { %2902 = vmatpush.bf16.msra.mxu2 %v5268_v56  ;;  %2915 = vmatpush.bf16.msra.mxu3 %v5271_v62 }
 0x7f7   : > { %2877 = vmatpush.bf16.msra.mxu0 %v5275_v14  ;;  %2890 = vmatpush.bf16.msrb.mxu1 %v5287_v1 }
 0x7f8   : > { %2903 = vmatpush.bf16.msra.mxu2 %v5290_v5  ;;  %2916 = vmatpush.bf16.msra.mxu3 %v5293_v10 }
 0x7fb   : > { %2878 = vmatpush.bf16.msra.mxu0 %v5307_v9  ;;  %2891 = vmatpush.bf16.msrb.mxu1 %v5314_v16 }
 0x7fc   : > { %2904 = vmatpush.bf16.msra.mxu2 %v5317_v55  ;;  %2917 = vmatpush.bf16.msra.mxu3 %v5320_v46 }
 0x7ff   : > { %2879 = vmatpush.bf16.msra.mxu0 %v5327_v41  ;;  %2892 = vmatpush.bf16.msrb.mxu1 %v5329_v8 }
 0x800   : > { %2905 = vmatpush.bf16.msra.mxu2 %v5331_v21  ;;  %2918 = vmatpush.bf16.msra.mxu3 %v5333_v38 }
 0x85e   : > { %v2645_v53 = vpop.f32.mrf.mxu0  ;;  %v2658_v33 = vpop.f32.mrf.mxu1 }
 0x85f   : > { %v2646_v45 = vadd.f32 %v2645_v53, %v5430_v29  ;;  %v2659_v27 = vadd.f32 %v2658_v33, %v5432_v49 }
 0x861   : > { %v3687_v18 = vmul.f32 -1.442695, %v2646_v45  ;;  %v3688_v23 = vmul.f32 -1.442695, %v2659_v27 }
 0x863   : > { %3956 = vpow2.f32 %v3687_v18 }
 0x864   : > { %3958 = vpow2.f32 %v3688_v23 }
 0x865   : > { %v2671_v58 = vpop.f32.mrf.mxu2  ;;  %v2684_v26 = vpop.f32.mrf.mxu3 }
 0x866   : > { %v2685_v0 = vadd.f32 %v2684_v26, %v5436_v28  ;;  %v2647_v60 = vpop.f32.mrf.mxu0  ;;  %v2660_v2 = vpop.f32.mrf.mxu1  ;;  %v2672_v17 = vadd.f32 %v2671_v58, %v5439_v7 }
 0x868   : > { %v3689_v13 = vmul.f32 -1.442695, %v2685_v0 }
 0x869   : > { %v3957_v19 = vpop.eup %3956 }
 0x86a   : > { %v3959_v25 = vpop.eup %3958  ;;  %v2691_v34 = vadd.f32 1.0, %v3957_v19  ;;  %3960 = vpow2.f32 %v3689_v13 }
 0x86b   : > { %v2710_v22 = vadd.f32 1.0, %v3959_v25 }
 0x86c   : > { %3962 = vrcp.f32 %v2691_v34  ;;  %v2703_v27 = vand.u32 2147483648, %v2691_v34  ;;  %v2701_v26 = vand.u32 2147483647, %v2691_v34  ;;  %vm2697_vm7 = vweird.f32 %v2691_v34 }
 0x86d   : > { %3964 = vrcp.f32 %v2710_v22  ;;  %v2673_v30 = vpop.f32.mrf.mxu2  ;;  %v2686_v12 = vpop.f32.mrf.mxu3  ;;  %v2722_v18 = vand.u32 2147483648, %v2710_v22  ;;  %v2720_v60 = vand.u32 2147483647, %v2710_v22  ;;  %vm2716_vm8 = vweird.f32 %v2710_v22 }
 0x86e   : > { %v2704_v58 = vor.u32 1.1754944e-38, %v2703_v27  ;;  %vm2702_vm11 = vcmp.eq.f32.partialorder %v2701_v26, 8.507059e+37 }
 0x86f   : > { %v2723_v30 = vor.u32 1.1754944e-38, %v2722_v18  ;;  %vm2721_vm12 = vcmp.eq.f32.partialorder %v2720_v60, 8.507059e+37 }
 0x870   : > { %v3961_v4 = vpop.eup %3960 }
 0x871   : > { %v2730_v52 = vadd.f32 1.0, %v3961_v4 }
 0x872   : > { %v3963_v47 = vpop.eup %3962 }
 0x873   : > { %v3965_v39 = vpop.eup %3964  ;;  %v2693_v3 = vmul.f32 %v3963_v47, %v2691_v34  ;;  %3966 = vrcp.f32 %v2730_v52  ;;  %vm2698_vm5 = vweird.f32 %v3963_v47  ;;  %v2742_v27 = vand.u32 2147483648, %v2730_v52 }
 0x874   : > { %v2712_v53 = vmul.f32 %v3965_v39, %v2710_v22  ;;  %3968 = vtanh.f32 %v2672_v17  ;;  %vm2717_vm6 = vweird.f32 %v3965_v39  ;;  %vm2699_vm9 = vmor %vm2697_vm7, %vm2698_vm5  ;;  %vm2736_vm14 = vweird.f32 %v2730_v52 }
 0x875   : > { %v2694_v33 = vsub.f32 1.0, %v2693_v3  ;;  %vm2718_vm10 = vmor %vm2716_vm8, %vm2717_vm6  ;;  %v2743_v26 = vor.u32 1.1754944e-38, %v2742_v27 }
 0x876   : > { %v2713_v45 = vsub.f32 1.0, %v2712_v53 }
 0x877   : > { %v2695_v23 = vmul.f32 %v3963_v47, %v2694_v33 }
 0x878   : > { %v2714_v0 = vmul.f32 %v3965_v39, %v2713_v45 }
 0x879   : > { %v3967_v2 = vpop.eup %3966  ;;  %v2696_v13 = vadd.f32 %v3963_v47, %v2695_v23 }
 0x87a   : > { %v2715_v19 = vadd.f32 %v3965_v39, %v2714_v0  ;;  %v2732_v25 = vmul.f32 %v3967_v2, %v2730_v52  ;;  %v3969_v4 = vpop.eup %3968  ;;  %vm2737_vm13 = vweird.f32 %v3967_v2 }
 0x87b   : > { %v2700_v12 = vsel %vm2699_vm9, %v3963_v47, %v2696_v13  ;;  %v2740_v47 = vand.u32 2147483647, %v2730_v52  ;;  %vm2738_vm15 = vmor %vm2736_vm14, %vm2737_vm13 }
 0x87c   : > { %v2705_v17 = vsel %vm2702_vm11, %v2704_v58, %v2700_v12  ;;  %v2719_v3 = vsel %vm2718_vm10, %v3965_v39, %v2715_v19  ;;  %v2733_v53 = vsub.f32 1.0, %v2732_v25 }
 0x87d   : > { %v2724_v33 = vsel %vm2721_vm12, %v2723_v30, %v2719_v3  ;;  %v2747_v45 = vmul.f32 %v3969_v4, %v2705_v17  ;;  %vm2741_vm0 = vcmp.eq.f32.partialorder %v2740_v47, 8.507059e+37 }
 0x87e   : > { %v2746_v11 = vmul.f32 %v2724_v33, %v5487_v51  ;;  %v2734_v23 = vmul.f32 %v3967_v2, %v2733_v53 }
 0x880   : > { %v5531_v34 = vadd.f32 %v2747_v45, %v2746_v11  ;;  %v2735_v22 = vadd.f32 %v3967_v2, %v2734_v23 }
 0x882   : > { %3970 = vtanh.f32 %v5531_v34  ;;  %v2739_v18 = vsel %vm2738_vm15, %v3967_v2, %v2735_v22 }
 0x883   : > { %v2744_v0 = vsel %vm2741_vm0, %v2743_v26, %v2739_v18 }
 0x888   : > { %v3971_v39 = vpop.eup %3970 }
 0x889   : > { %v5534_v60 = vmul.f32 %v3971_v39, %v2744_v0 }
 0x88b   : > { %v2753_v51 = vpack.c.bf16 %v5534_v60, %v5534_v60 }
 0x88d   : > { %2762 = vmatmul.bf16.vlgmr.msrb.gmra.mxu0 %v2753_v51  ;;  %2775 = vmatmul.bf16.vlgmr.msra.gmra.mxu1 %v2753_v51 }
 0x88e   : > { %2788 = vmatmul.bf16.vlgmr.msrb.gmra.mxu2 %v2753_v51  ;;  %2801 = vmatmul.bf16.vlgmr.msrb.gmra.mxu3 %v2753_v51 }
 0x88f   : > { %2990 = vmatpush.bf16.msrb.mxu0 %v5164_v48  ;;  %3003 = vmatpush.bf16.msra.mxu1 %v5180_v15 }
 0x890   : > { %3016 = vmatpush.bf16.msrb.mxu2 %v5182_v40  ;;  %3029 = vmatpush.bf16.msrb.mxu3 %v5185_v6 }
 0x893   : > { %2991 = vmatpush.bf16.msrb.mxu0 %v5187_v61  ;;  %3004 = vmatpush.bf16.msra.mxu1 %v5199_v43 }
 0x894   : > { %3017 = vmatpush.bf16.msrb.mxu2 %v5202_v63  ;;  %3030 = vmatpush.bf16.msrb.mxu3 %v5205_v31 }
 0x897   : > { %2992 = vmatpush.bf16.msrb.mxu0 %v5209_v54  ;;  %3005 = vmatpush.bf16.msra.mxu1 %v5221_v42 }
 0x898   : > { %3018 = vmatpush.bf16.msrb.mxu2 %v5224_v37  ;;  %3031 = vmatpush.bf16.msrb.mxu3 %v5227_v59 }
 0x89b   : > { %2993 = vmatpush.bf16.msrb.mxu0 %v5231_v50  ;;  %3006 = vmatpush.bf16.msra.mxu1 %v5243_v57 }
 0x89c   : > { %3019 = vmatpush.bf16.msrb.mxu2 %v5246_v32  ;;  %3032 = vmatpush.bf16.msrb.mxu3 %v5249_v24 }
 0x89f   : > { %2994 = vmatpush.bf16.msrb.mxu0 %v5253_v35  ;;  %3007 = vmatpush.bf16.msra.mxu1 %v5265_v44 }
 0x8a0   : > { %3020 = vmatpush.bf16.msrb.mxu2 %v5268_v56  ;;  %3033 = vmatpush.bf16.msrb.mxu3 %v5271_v62 }
 0x8a3   : > { %2995 = vmatpush.bf16.msrb.mxu0 %v5275_v14  ;;  %3008 = vmatpush.bf16.msra.mxu1 %v5287_v1 }
 0x8a4   : > { %3021 = vmatpush.bf16.msrb.mxu2 %v5290_v5  ;;  %3034 = vmatpush.bf16.msrb.mxu3 %v5293_v10 }
 0x8a7   : > { %2996 = vmatpush.bf16.msrb.mxu0 %v5307_v9  ;;  %3009 = vmatpush.bf16.msra.mxu1 %v5314_v16 }
 0x8a8   : > { %3022 = vmatpush.bf16.msrb.mxu2 %v5317_v55  ;;  %3035 = vmatpush.bf16.msrb.mxu3 %v5320_v46 }
 0x8ab   : > { %2997 = vmatpush.bf16.msrb.mxu0 %v5327_v41  ;;  %3010 = vmatpush.bf16.msra.mxu1 %v5329_v8 }
 0x8ac   : > { %3023 = vmatpush.bf16.msrb.mxu2 %v5331_v21  ;;  %3036 = vmatpush.bf16.msrb.mxu3 %v5333_v38 }
 0x90a   : > { %v2763_v11 = vpop.f32.mrf.mxu0  ;;  %v2776_v52 = vpop.f32.mrf.mxu1 }
 0x90b   : > { %v2764_v2 = vadd.f32 %v2763_v11, %v5430_v29  ;;  %v2777_v13 = vadd.f32 %v2776_v52, %v5432_v49 }
 0x90d   : > { %v3690_v58 = vmul.f32 -1.442695, %v2764_v2  ;;  %v3691_v19 = vmul.f32 -1.442695, %v2777_v13 }
 0x90f   : > { %3972 = vpow2.f32 %v3690_v58 }
 0x910   : > { %3974 = vpow2.f32 %v3691_v19 }
 0x911   : > { %v2789_v25 = vpop.f32.mrf.mxu2  ;;  %v2802_v30 = vpop.f32.mrf.mxu3 }
 0x912   : > { %v2803_v12 = vadd.f32 %v2802_v30, %v5436_v28  ;;  %v2765_v4 = vpop.f32.mrf.mxu0  ;;  %v2778_v17 = vpop.f32.mrf.mxu1  ;;  %v2790_v39 = vadd.f32 %v2789_v25, %v5439_v7 }
 0x914   : > { %v3692_v3 = vmul.f32 -1.442695, %v2803_v12 }
 0x915   : > { %v3973_v53 = vpop.eup %3972 }
 0x916   : > { %v3975_v33 = vpop.eup %3974  ;;  %v2809_v45 = vadd.f32 1.0, %v3973_v53  ;;  %3976 = vpow2.f32 %v3692_v3 }
 0x917   : > { %v2828_v23 = vadd.f32 1.0, %v3975_v33 }
 0x918   : > { %3978 = vrcp.f32 %v2809_v45  ;;  %v2821_v13 = vand.u32 2147483648, %v2809_v45  ;;  %v2819_v30 = vand.u32 2147483647, %v2809_v45  ;;  %vm2815_vm4 = vweird.f32 %v2809_v45 }
 0x919   : > { %3980 = vrcp.f32 %v2828_v23  ;;  %v2791_v22 = vpop.f32.mrf.mxu2  ;;  %v2804_v27 = vpop.f32.mrf.mxu3  ;;  %v2840_v58 = vand.u32 2147483648, %v2828_v23  ;;  %v2838_v4 = vand.u32 2147483647, %v2828_v23  ;;  %vm2834_vm5 = vweird.f32 %v2828_v23 }
 0x91a   : > { %v2822_v25 = vor.u32 1.1754944e-38, %v2821_v13  ;;  %vm2820_vm8 = vcmp.eq.f32.partialorder %v2819_v30, 8.507059e+37 }
 0x91b   : > { %v2841_v22 = vor.u32 1.1754944e-38, %v2840_v58  ;;  %vm2839_vm9 = vcmp.eq.f32.partialorder %v2838_v4, 8.507059e+37 }
 0x91c   : > { %v3977_v47 = vpop.eup %3976 }
 0x91d   : > { %v2848_v18 = vadd.f32 1.0, %v3977_v47 }
 0x91e   : > { %v3979_v26 = vpop.eup %3978 }
 0x91f   : > { %v3981_v0 = vpop.eup %3980  ;;  %v2811_v51 = vmul.f32 %v3979_v26, %v2809_v45  ;;  %3982 = vrcp.f32 %v2848_v18  ;;  %vm2816_vm2 = vweird.f32 %v3979_v26  ;;  %v2860_v13 = vand.u32 2147483648, %v2848_v18 }
 0x920   : > { %v2830_v11 = vmul.f32 %v3981_v0, %v2828_v23  ;;  %3984 = vtanh.f32 %v2790_v39  ;;  %vm2835_vm3 = vweird.f32 %v3981_v0  ;;  %vm2817_vm6 = vmor %vm2815_vm4, %vm2816_vm2  ;;  %vm2854_vm11 = vweird.f32 %v2848_v18 }
 0x921   : > { %v2812_v52 = vsub.f32 1.0, %v2811_v51  ;;  %vm2836_vm7 = vmor %vm2834_vm5, %vm2835_vm3  ;;  %v2861_v30 = vor.u32 1.1754944e-38, %v2860_v13 }
 0x922   : > { %v2831_v2 = vsub.f32 1.0, %v2830_v11 }
 0x923   : > { %v2813_v19 = vmul.f32 %v3979_v26, %v2812_v52 }
 0x924   : > { %v2832_v12 = vmul.f32 %v3981_v0, %v2831_v2 }
 0x925   : > { %v3983_v17 = vpop.eup %3982  ;;  %v2814_v3 = vadd.f32 %v3979_v26, %v2813_v19 }
 0x926   : > { %v2833_v53 = vadd.f32 %v3981_v0, %v2832_v12  ;;  %v2850_v33 = vmul.f32 %v3983_v17, %v2848_v18  ;;  %v3985_v47 = vpop.eup %3984  ;;  %vm2855_vm10 = vweird.f32 %v3983_v17 }
 0x927   : > { %v2818_v27 = vsel %vm2817_vm6, %v3979_v26, %v2814_v3  ;;  %v2858_v26 = vand.u32 2147483647, %v2848_v18  ;;  %vm2856_vm12 = vmor %vm2854_vm11, %vm2855_vm10 }
 0x928   : > { %v2823_v39 = vsel %vm2820_vm8, %v2822_v25, %v2818_v27  ;;  %v2837_v51 = vsel %vm2836_vm7, %v3981_v0, %v2833_v53  ;;  %v2851_v11 = vsub.f32 1.0, %v2850_v33 }
 0x929   : > { %v2842_v52 = vsel %vm2839_vm9, %v2841_v22, %v2837_v51  ;;  %v2865_v2 = vmul.f32 %v3985_v47, %v2823_v39  ;;  %vm2859_vm13 = vcmp.eq.f32.partialorder %v2858_v26, 8.507059e+37 }
 0x92a   : > { %v2864_v20 = vmul.f32 %v2842_v52, %v5531_v34  ;;  %v2852_v19 = vmul.f32 %v3983_v17, %v2851_v11 }
 0x92c   : > { %v5575_v45 = vadd.f32 %v2865_v2, %v2864_v20  ;;  %v2853_v23 = vadd.f32 %v3983_v17, %v2852_v19 }
 0x92e   : > { %3986 = vtanh.f32 %v5575_v45  ;;  %v2857_v58 = vsel %vm2856_vm12, %v3983_v17, %v2853_v23 }
 0x92f   : > { %v2862_v12 = vsel %vm2859_vm13, %v2861_v30, %v2857_v58 }
 0x934   : > { %v3987_v0 = vpop.eup %3986 }
 0x935   : > { %v5578_v4 = vmul.f32 %v3987_v0, %v2862_v12 }
 0x937   : > { %v2871_v34 = vpack.c.bf16 %v5578_v4, %v5578_v4 }
 0x939   : > { %2880 = vmatmul.bf16.vlgmr.msra.gmra.mxu0 %v2871_v34  ;;  %2893 = vmatmul.bf16.vlgmr.msrb.gmra.mxu1 %v2871_v34 }
 0x93a   : > { %2906 = vmatmul.bf16.vlgmr.msra.gmra.mxu2 %v2871_v34  ;;  %2919 = vmatmul.bf16.vlgmr.msra.gmra.mxu3 %v2871_v34 }
 0x93b   : > { %3108 = vmatpush.bf16.msra.mxu0 %v5164_v48  ;;  %3121 = vmatpush.bf16.msrb.mxu1 %v5180_v15 }
 0x93c   : > { %3134 = vmatpush.bf16.msra.mxu2 %v5182_v40  ;;  %3147 = vmatpush.bf16.msra.mxu3 %v5185_v6 }
 0x93f   : > { %3109 = vmatpush.bf16.msra.mxu0 %v5187_v61  ;;  %3122 = vmatpush.bf16.msrb.mxu1 %v5199_v43 }
 0x940   : > { %3135 = vmatpush.bf16.msra.mxu2 %v5202_v63  ;;  %3148 = vmatpush.bf16.msra.mxu3 %v5205_v31 }
 0x943   : > { %3110 = vmatpush.bf16.msra.mxu0 %v5209_v54  ;;  %3123 = vmatpush.bf16.msrb.mxu1 %v5221_v42 }
 0x944   : > { %3136 = vmatpush.bf16.msra.mxu2 %v5224_v37  ;;  %3149 = vmatpush.bf16.msra.mxu3 %v5227_v59 }
 0x947   : > { %3111 = vmatpush.bf16.msra.mxu0 %v5231_v50  ;;  %3124 = vmatpush.bf16.msrb.mxu1 %v5243_v57 }
 0x948   : > { %3137 = vmatpush.bf16.msra.mxu2 %v5246_v32  ;;  %3150 = vmatpush.bf16.msra.mxu3 %v5249_v24 }
 0x94b   : > { %3112 = vmatpush.bf16.msra.mxu0 %v5253_v35  ;;  %3125 = vmatpush.bf16.msrb.mxu1 %v5265_v44 }
 0x94c   : > { %3138 = vmatpush.bf16.msra.mxu2 %v5268_v56  ;;  %3151 = vmatpush.bf16.msra.mxu3 %v5271_v62 }
 0x94f   : > { %3113 = vmatpush.bf16.msra.mxu0 %v5275_v14  ;;  %3126 = vmatpush.bf16.msrb.mxu1 %v5287_v1 }
 0x950   : > { %3139 = vmatpush.bf16.msra.mxu2 %v5290_v5  ;;  %3152 = vmatpush.bf16.msra.mxu3 %v5293_v10 }
 0x953   : > { %3114 = vmatpush.bf16.msra.mxu0 %v5307_v9  ;;  %3127 = vmatpush.bf16.msrb.mxu1 %v5314_v16 }
 0x954   : > { %3140 = vmatpush.bf16.msra.mxu2 %v5317_v55  ;;  %3153 = vmatpush.bf16.msra.mxu3 %v5320_v46 }
 0x957   : > { %3115 = vmatpush.bf16.msra.mxu0 %v5327_v41  ;;  %3128 = vmatpush.bf16.msrb.mxu1 %v5329_v8 }
 0x958   : > { %3141 = vmatpush.bf16.msra.mxu2 %v5331_v21  ;;  %3154 = vmatpush.bf16.msra.mxu3 %v5333_v38 }
 0x9b6   : > { %v2881_v48 = vpop.f32.mrf.mxu0  ;;  %v2894_v15 = vpop.f32.mrf.mxu1 }
 0x9b7   : > { %v2882_v40 = vadd.f32 %v2881_v48, %v5430_v29  ;;  %v2895_v6 = vadd.f32 %v2894_v15, %v5432_v49  ;;  %v4036_v15 = vld [vmem:[%s5727_s7 + $0x38] sm:$0xff] }
 0x9b9   : > { %v3693_v61 = vmul.f32 -1.442695, %v2882_v40  ;;  %v3694_v43 = vmul.f32 -1.442695, %v2895_v6  ;;  %v4037_v40 = vld [vmem:[%s5727_s7 + $0x30] sm:$0xff]  ;;  %v4038_v6 = vld [vmem:[%s5727_s7 + $0x28] sm:$0xff] }
 0x9bb   : > { %3988 = vpow2.f32 %v3693_v61  ;;  %v4039_v61 = vld [vmem:[%s5727_s7 + $0x20] sm:$0xff] }
 0x9bc   : > { %3990 = vpow2.f32 %v3694_v43  ;;  %v4040_v43 = vld [vmem:[%s5727_s7 + $0x18] sm:$0xff] }
 0x9bd   : > { %v2907_v63 = vpop.f32.mrf.mxu2  ;;  %v2920_v31 = vpop.f32.mrf.mxu3 }
 0x9be   : > { %v2921_v54 = vadd.f32 %v2920_v31, %v5436_v28  ;;  %v2883_v42 = vpop.f32.mrf.mxu0  ;;  %v2896_v37 = vpop.f32.mrf.mxu1  ;;  %v2908_v1 = vadd.f32 %v2907_v63, %v5439_v7  ;;  %v4041_v63 = vld [vmem:[%s5727_s7 + $0x10] sm:$0xff]  ;;  %v4042_v31 = vld [vmem:[%s5727_s7 + $0x8] sm:$0xff] }
 0x9c0   : > { %v3695_v59 = vmul.f32 -1.442695, %v2921_v54  ;;  %v4043_v54 = vld [vmem:[%s5727_s7] sm:$0xff] }
 0x9c1   : > { %v3989_v50 = vpop.eup %3988 }
 0x9c2   : > { %v3991_v57 = vpop.eup %3990  ;;  %v2927_v32 = vadd.f32 1.0, %v3989_v50  ;;  %3992 = vpow2.f32 %v3695_v59 }
 0x9c3   : > { %v2946_v24 = vadd.f32 1.0, %v3991_v57 }
 0x9c4   : > { %3994 = vrcp.f32 %v2927_v32  ;;  %v2939_v46 = vand.u32 2147483648, %v2927_v32  ;;  %v2937_v21 = vand.u32 2147483647, %v2927_v32  ;;  %vm2933_vm0 = vweird.f32 %v2927_v32 }
 0x9c5   : > { %3996 = vrcp.f32 %v2946_v24  ;;  %v2909_v35 = vpop.f32.mrf.mxu2  ;;  %v2922_v44 = vpop.f32.mrf.mxu3  ;;  %v2958_v41 = vand.u32 2147483648, %v2946_v24  ;;  %v2956_v20 = vand.u32 2147483647, %v2946_v24  ;;  %vm2952_vm2 = vweird.f32 %v2946_v24 }
 0x9c6   : > { %v2940_v3 = vor.u32 1.1754944e-38, %v2939_v46  ;;  %vm2938_vm5 = vcmp.eq.f32.partialorder %v2937_v21, 8.507059e+37 }
 0x9c7   : > { %v2959_v33 = vor.u32 1.1754944e-38, %v2958_v41  ;;  %vm2957_vm6 = vcmp.eq.f32.partialorder %v2956_v20, 8.507059e+37 }
 0x9c8   : > { %v3993_v56 = vpop.eup %3992 }
 0x9c9   : > { %v2966_v62 = vadd.f32 1.0, %v3993_v56 }
 0x9ca   : > { %v3995_v14 = vpop.eup %3994 }
 0x9cb   : > { %v3997_v5 = vpop.eup %3996  ;;  %v2929_v10 = vmul.f32 %v3995_v14, %v2927_v32  ;;  %3998 = vrcp.f32 %v2966_v62  ;;  %vm2934_vm14 = vweird.f32 %v3995_v14  ;;  %v2978_v26 = vand.u32 2147483648, %v2966_v62 }
 0x9cc   : > { %v2948_v9 = vmul.f32 %v3997_v5, %v2946_v24  ;;  %4000 = vtanh.f32 %v2908_v1  ;;  %vm2953_vm15 = vweird.f32 %v3997_v5  ;;  %vm2935_vm3 = vmor %vm2933_vm0, %vm2934_vm14  ;;  %vm2972_vm8 = vweird.f32 %v2966_v62 }
 0x9cd   : > { %v2930_v16 = vsub.f32 1.0, %v2929_v10  ;;  %vm2954_vm4 = vmor %vm2952_vm2, %vm2953_vm15  ;;  %v2976_v58 = vand.u32 2147483647, %v2966_v62  ;;  %v2979_v0 = vor.u32 1.1754944e-38, %v2978_v26 }
 0x9ce   : > { %v2949_v55 = vsub.f32 1.0, %v2948_v9 }
 0x9cf   : > { %v2931_v8 = vmul.f32 %v3995_v14, %v2930_v16  ;;  %vm2977_vm10 = vcmp.eq.f32.partialorder %v2976_v58, 8.507059e+37 }
 0x9d0   : > { %v2950_v38 = vmul.f32 %v3997_v5, %v2949_v55 }
 0x9d1   : > { %v3999_v18 = vpop.eup %3998  ;;  %v2932_v17 = vadd.f32 %v3995_v14, %v2931_v8 }
 0x9d2   : > { %v2951_v25 = vadd.f32 %v3997_v5, %v2950_v38  ;;  %v2968_v53 = vmul.f32 %v3999_v18, %v2966_v62  ;;  %v4001_v27 = vpop.eup %4000  ;;  %vm2973_vm7 = vweird.f32 %v3999_v18 }
 0x9d3   : > { %v2936_v22 = vsel %vm2935_vm3, %v3995_v14, %v2932_v17  ;;  %vm2974_vm9 = vmor %vm2972_vm8, %vm2973_vm7 }
 0x9d4   : > { %v2941_v47 = vsel %vm2938_vm5, %v2940_v3, %v2936_v22  ;;  %v2955_v39 = vsel %vm2954_vm4, %v3997_v5, %v2951_v25  ;;  %v2969_v51 = vsub.f32 1.0, %v2968_v53 }
 0x9d5   : > { %v2960_v11 = vsel %vm2957_vm6, %v2959_v33, %v2955_v39  ;;  %v2983_v52 = vmul.f32 %v4001_v27, %v2941_v47 }
 0x9d6   : > { %v2982_v2 = vmul.f32 %v2960_v11, %v5575_v45  ;;  %v2970_v19 = vmul.f32 %v3999_v18, %v2969_v51 }
 0x9d8   : > { %v5619_v23 = vadd.f32 %v2983_v52, %v2982_v2  ;;  %v2971_v13 = vadd.f32 %v3999_v18, %v2970_v19 }
 0x9da   : > { %4002 = vtanh.f32 %v5619_v23  ;;  %v2975_v30 = vsel %vm2974_vm9, %v3999_v18, %v2971_v13 }
 0x9db   : > { %v2980_v34 = vsel %vm2977_vm10, %v2979_v0, %v2975_v30 }
 0x9e0   : > { %v4003_v12 = vpop.eup %4002 }
 0x9e1   : > { %v5622_v48 = vmul.f32 %v4003_v12, %v2980_v34 }
 0x9e3   : > { %v2989_v45 = vpack.c.bf16 %v5622_v48, %v5622_v48 }
 0x9e5   : > { %2998 = vmatmul.bf16.vlgmr.msrb.gmra.mxu0 %v2989_v45  ;;  %3011 = vmatmul.bf16.vlgmr.msra.gmra.mxu1 %v2989_v45 }
 0x9e6   : > { %3024 = vmatmul.bf16.vlgmr.msrb.gmra.mxu2 %v2989_v45  ;;  %3037 = vmatmul.bf16.vlgmr.msrb.gmra.mxu3 %v2989_v45 }
 0x9e7   : > { %3247 = vmatpush.bf16.msrb.mxu0 %v4036_v15 }
 0x9eb   : > { %3248 = vmatpush.bf16.msrb.mxu0 %v4037_v40 }
 0x9ef   : > { %3249 = vmatpush.bf16.msrb.mxu0 %v4038_v6 }
 0x9f3   : > { %3250 = vmatpush.bf16.msrb.mxu0 %v4039_v61 }
 0x9f7   : > { %3251 = vmatpush.bf16.msrb.mxu0 %v4040_v43 }
 0x9fb   : > { %3252 = vmatpush.bf16.msrb.mxu0 %v4041_v63 }
 0x9ff   : > { %3253 = vmatpush.bf16.msrb.mxu0 %v4042_v31 }
 0xa03   : > { %3254 = vmatpush.bf16.msrb.mxu0 %v4043_v54 }
 0xa62   : > { %v2999_v42 = vpop.f32.mrf.mxu0  ;;  %v3012_v37 = vpop.f32.mrf.mxu1 }
 0xa63   : > { %v3000_v59 = vadd.f32 %v2999_v42, %v5430_v29  ;;  %v3013_v50 = vadd.f32 %v3012_v37, %v5432_v49 }
 0xa65   : > { %v3696_v57 = vmul.f32 -1.442695, %v3000_v59  ;;  %v3697_v32 = vmul.f32 -1.442695, %v3013_v50 }
 0xa67   : > { %4004 = vpow2.f32 %v3696_v57 }
 0xa68   : > { %4006 = vpow2.f32 %v3697_v32 }
 0xa69   : > { %v3025_v24 = vpop.f32.mrf.mxu2  ;;  %v3038_v35 = vpop.f32.mrf.mxu3 }
 0xa6a   : > { %v3039_v44 = vadd.f32 %v3038_v35, %v5436_v28  ;;  %v3001_v56 = vpop.f32.mrf.mxu0  ;;  %v3014_v62 = vpop.f32.mrf.mxu1  ;;  %v3026_v21 = vadd.f32 %v3025_v24, %v5439_v7 }
 0xa6c   : > { %v3698_v14 = vmul.f32 -1.442695, %v3039_v44 }
 0xa6d   : > { %v4005_v1 = vpop.eup %4004 }
 0xa6e   : > { %v4007_v5 = vpop.eup %4006  ;;  %v3045_v10 = vadd.f32 1.0, %v4005_v1  ;;  %4008 = vpow2.f32 %v3698_v14 }
 0xa6f   : > { %v3064_v9 = vadd.f32 1.0, %v4007_v5 }
 0xa70   : > { %4010 = vrcp.f32 %v3045_v10  ;;  %v3057_v25 = vand.u32 2147483648, %v3045_v10  ;;  %v3055_v22 = vand.u32 2147483647, %v3045_v10  ;;  %vm3051_vm13 = vweird.f32 %v3045_v10 }
 0xa71   : > { %4012 = vrcp.f32 %v3064_v9  ;;  %v3027_v16 = vpop.f32.mrf.mxu2  ;;  %v3040_v55 = vpop.f32.mrf.mxu3  ;;  %v3076_v53 = vand.u32 2147483648, %v3064_v9  ;;  %v3074_v47 = vand.u32 2147483647, %v3064_v9  ;;  %vm3070_vm14 = vweird.f32 %v3064_v9 }
 0xa72   : > { %v3058_v11 = vor.u32 1.1754944e-38, %v3057_v25  ;;  %vm3056_vm2 = vcmp.eq.f32.partialorder %v3055_v22, 8.507059e+37 }
 0xa73   : > { %v3077_v19 = vor.u32 1.1754944e-38, %v3076_v53  ;;  %vm3075_vm3 = vcmp.eq.f32.partialorder %v3074_v47, 8.507059e+37 }
 0xa74   : > { %v4009_v46 = vpop.eup %4008 }
 0xa75   : > { %v3084_v41 = vadd.f32 1.0, %v4009_v46 }
 0xa76   : > { %v4011_v8 = vpop.eup %4010 }
 0xa77   : > { %v4013_v38 = vpop.eup %4012  ;;  %v3047_v20 = vmul.f32 %v4011_v8, %v3045_v10  ;;  %4014 = vrcp.f32 %v3084_v41  ;;  %vm3052_vm11 = vweird.f32 %v4011_v8  ;;  %v3096_v61 = vand.u32 2147483648, %v3084_v41 }
 0xa78   : > { %v3066_v18 = vmul.f32 %v4013_v38, %v3064_v9  ;;  %4016 = vtanh.f32 %v3026_v21  ;;  %vm3071_vm12 = vweird.f32 %v4013_v38  ;;  %vm3053_vm15 = vmor %vm3051_vm13, %vm3052_vm11  ;;  %vm3090_vm5 = vweird.f32 %v3084_v41 }
 0xa79   : > { %v3048_v17 = vsub.f32 1.0, %v3047_v20  ;;  %vm3072_vm0 = vmor %vm3070_vm14, %vm3071_vm12  ;;  %v3094_v43 = vand.u32 2147483647, %v3084_v41  ;;  %v3097_v31 = vor.u32 1.1754944e-38, %v3096_v61 }
 0xa7a   : > { %v3067_v3 = vsub.f32 1.0, %v3066_v18 }
 0xa7b   : > { %v3049_v33 = vmul.f32 %v4011_v8, %v3048_v17  ;;  %vm3095_vm7 = vcmp.eq.f32.partialorder %v3094_v43, 8.507059e+37 }
 0xa7c   : > { %v3068_v27 = vmul.f32 %v4013_v38, %v3067_v3 }
 0xa7d   : > { %v4015_v39 = vpop.eup %4014  ;;  %v3050_v51 = vadd.f32 %v4011_v8, %v3049_v33 }
 0xa7e   : > { %v3069_v52 = vadd.f32 %v4013_v38, %v3068_v27  ;;  %v3086_v2 = vmul.f32 %v4015_v39, %v3084_v41  ;;  %v4017_v26 = vpop.eup %4016  ;;  %vm3091_vm4 = vweird.f32 %v4015_v39 }
 0xa7f   : > { %v3054_v13 = vsel %vm3053_vm15, %v4011_v8, %v3050_v51  ;;  %vm3092_vm6 = vmor %vm3090_vm5, %vm3091_vm4 }
 0xa80   : > { %v3059_v58 = vsel %vm3056_vm2, %v3058_v11, %v3054_v13  ;;  %v3073_v30 = vsel %vm3072_vm0, %v4013_v38, %v3069_v52  ;;  %v3087_v0 = vsub.f32 1.0, %v3086_v2 }
 0xa81   : > { %v3078_v12 = vsel %vm3075_vm3, %v3077_v19, %v3073_v30  ;;  %v3101_v34 = vmul.f32 %v4017_v26, %v3059_v58 }
 0xa82   : > { %v3100_v45 = vmul.f32 %v3078_v12, %v5619_v23  ;;  %v3088_v15 = vmul.f32 %v4015_v39, %v3087_v0 }
 0xa84   : > { %v5655_v40 = vadd.f32 %v3101_v34, %v3100_v45  ;;  %v3089_v6 = vadd.f32 %v4015_v39, %v3088_v15 }
 0xa86   : > { %4018 = vtanh.f32 %v5655_v40  ;;  %v3093_v63 = vsel %vm3092_vm6, %v4015_v39, %v3089_v6 }
 0xa87   : > { %v3098_v42 = vsel %vm3095_vm7, %v3097_v31, %v3093_v63 }
 0xa8c   : > { %v4019_v54 = vpop.eup %4018 }
 0xa8d   : > { %v5658_v37 = vmul.f32 %v4019_v54, %v3098_v42 }
 0xa8f   : > { %v3107_v23 = vpack.c.bf16 %v5658_v37, %v5658_v37 }
 0xa91   : > { %3116 = vmatmul.bf16.vlgmr.msra.gmra.mxu0 %v3107_v23  ;;  %3129 = vmatmul.bf16.vlgmr.msrb.gmra.mxu1 %v3107_v23 }
 0xa92   : > { %3142 = vmatmul.bf16.vlgmr.msra.gmra.mxu2 %v3107_v23  ;;  %3155 = vmatmul.bf16.vlgmr.msra.gmra.mxu3 %v3107_v23 }
 0xb0e   : > { %v3117_v59 = vpop.f32.mrf.mxu0  ;;  %v3130_v50 = vpop.f32.mrf.mxu1 }
 0xb0f   : > { %v3118_v57 = vadd.f32 %v3117_v59, %v5430_v29  ;;  %v3131_v32 = vadd.f32 %v3130_v50, %v5432_v49  ;;  %v3234_v59 = vpack.c.bf16 %v5490_v36, %v5534_v60  ;;  %v5921_v50 = vld [vmem:[#allocation39_spill] sm:$0xff] }
 0xb11   : > { %v3699_v24 = vmul.f32 -1.442695, %v3118_v57  ;;  %v3700_v35 = vmul.f32 -1.442695, %v3131_v32  ;;  %v5922_v57 = vld [vmem:[#allocation19_spill] sm:$0xff] }
 0xb12   : > { %v3235_v32 = vpack.c.bf16 %v5922_v57, %v5921_v50 }
 0xb13   : > { %4020 = vpow2.f32 %v3699_v24  ;;  %v3795_v24 = vld [vmem:[%s5728_s8] ss:$0 sm:$0xff] }
 0xb14   : > { %4022 = vpow2.f32 %v3700_v35 }
 0xb15   : > { %v3143_v44 = vpop.f32.mrf.mxu2  ;;  %v3156_v56 = vpop.f32.mrf.mxu3 }
 0xb16   : > { %v3157_v62 = vadd.f32 %v3156_v56, %v5436_v28  ;;  %v3119_v14 = vpop.f32.mrf.mxu0  ;;  %v3132_v1 = vpop.f32.mrf.mxu1  ;;  %v3144_v21 = vadd.f32 %v3143_v44, %v5439_v7 }
 0xb18   : > { %v3701_v5 = vmul.f32 -1.442695, %v3157_v62 }
 0xb19   : > { %v4021_v10 = vpop.eup %4020 }
 0xb1a   : > { %v4023_v9 = vpop.eup %4022  ;;  %v3163_v16 = vadd.f32 1.0, %v4021_v10  ;;  %4024 = vpow2.f32 %v3701_v5 }
 0xb1b   : > { %v3182_v55 = vadd.f32 1.0, %v4023_v9 }
 0xb1c   : > { %4026 = vrcp.f32 %v3163_v16  ;;  %v3175_v3 = vand.u32 2147483648, %v3163_v16  ;;  %v3173_v33 = vand.u32 2147483647, %v3163_v16  ;;  %vm3169_vm10 = vweird.f32 %v3163_v16 }
 0xb1d   : > { %4028 = vrcp.f32 %v3182_v55  ;;  %v3145_v29 = vpop.f32.mrf.mxu2  ;;  %v3158_v49 = vpop.f32.mrf.mxu3  ;;  %v3194_v25 = vand.u32 2147483648, %v3182_v55  ;;  %v3192_v27 = vand.u32 2147483647, %v3182_v55  ;;  %vm3188_vm11 = vweird.f32 %v3182_v55 }
 0xb1e   : > { %v3176_v7 = vor.u32 1.1754944e-38, %v3175_v3  ;;  %vm3174_vm14 = vcmp.eq.f32.partialorder %v3173_v33, 8.507059e+37 }
 0xb1f   : > { %v3195_v52 = vor.u32 1.1754944e-38, %v3194_v25  ;;  %vm3193_vm15 = vcmp.eq.f32.partialorder %v3192_v27, 8.507059e+37 }
 0xb20   : > { %v4025_v46 = vpop.eup %4024 }
 0xb21   : > { %v3202_v41 = vadd.f32 1.0, %v4025_v46 }
 0xb22   : > { %v4027_v8 = vpop.eup %4026 }
 0xb23   : > { %v4029_v38 = vpop.eup %4028  ;;  %v3165_v20 = vmul.f32 %v4027_v8, %v3163_v16  ;;  %4030 = vrcp.f32 %v3202_v41  ;;  %vm3170_vm8 = vweird.f32 %v4027_v8  ;;  %v3214_v6 = vand.u32 2147483648, %v3202_v41 }
 0xb24   : > { %v3184_v28 = vmul.f32 %v4029_v38, %v3182_v55  ;;  %4032 = vtanh.f32 %v3144_v21  ;;  %vm3189_vm9 = vweird.f32 %v4029_v38  ;;  %vm3171_vm12 = vmor %vm3169_vm10, %vm3170_vm8  ;;  %vm3208_vm2 = vweird.f32 %v3202_v41 }
 0xb25   : > { %v3166_v18 = vsub.f32 1.0, %v3165_v20  ;;  %vm3190_vm13 = vmor %vm3188_vm11, %vm3189_vm9  ;;  %v3212_v61 = vand.u32 2147483647, %v3202_v41  ;;  %v3215_v63 = vor.u32 1.1754944e-38, %v3214_v6 }
 0xb26   : > { %v3185_v17 = vsub.f32 1.0, %v3184_v28 }
 0xb27   : > { %v3167_v53 = vmul.f32 %v4027_v8, %v3166_v18  ;;  %vm3213_vm4 = vcmp.eq.f32.partialorder %v3212_v61, 8.507059e+37 }
 0xb28   : > { %v3186_v22 = vmul.f32 %v4029_v38, %v3185_v17 }
 0xb29   : > { %v4031_v47 = vpop.eup %4030  ;;  %v3168_v39 = vadd.f32 %v4027_v8, %v3167_v53 }
 0xb2a   : > { %v3187_v51 = vadd.f32 %v4029_v38, %v3186_v22  ;;  %v3204_v11 = vmul.f32 %v4031_v47, %v3202_v41  ;;  %v4033_v19 = vpop.eup %4032  ;;  %vm3209_vm0 = vweird.f32 %v4031_v47 }
 0xb2b   : > { %v3172_v2 = vsel %vm3171_vm12, %v4027_v8, %v3168_v39  ;;  %vm3210_vm3 = vmor %vm3208_vm2, %vm3209_vm0 }
 0xb2c   : > { %v3177_v13 = vsel %vm3174_vm14, %v3176_v7, %v3172_v2  ;;  %v3191_v26 = vsel %vm3190_vm13, %v4029_v38, %v3187_v51  ;;  %v3205_v58 = vsub.f32 1.0, %v3204_v11 }
 0xb2d   : > { %v3196_v30 = vsel %vm3193_vm15, %v3195_v52, %v3191_v26  ;;  %v3219_v0 = vmul.f32 %v4033_v19, %v3177_v13 }
 0xb2e   : > { %v3218_v12 = vmul.f32 %v3196_v30, %v5655_v40  ;;  %v3206_v34 = vmul.f32 %v4031_v47, %v3205_v58  ;;  %v3233_v40 = vpack.c.bf16 %v5578_v4, %v5622_v48 }
 0xb30   : > { %v3220_v45 = vadd.f32 %v3219_v0, %v3218_v12  ;;  %v3207_v15 = vadd.f32 %v4031_v47, %v3206_v34 }
 0xb32   : > { %4034 = vtanh.f32 %v3220_v45  ;;  %v3211_v43 = vsel %vm3210_vm3, %v4031_v47, %v3207_v15 }
 0xb33   : > { %v3216_v54 = vsel %vm3213_vm4, %v3215_v63, %v3211_v43 }
 0xb38   : > { %v4035_v31 = vpop.eup %4034 }
 0xb39   : > { %v3222_v42 = vmul.f32 %v4035_v31, %v3216_v54 }
 0xb3b   : > { %v3232_v23 = vpack.c.bf16 %v5658_v37, %v3222_v42 }
 0xb3d   : > { %3255 = vmatmul.bf16.vlgmr.msrb.gmra.mxu0 %v3232_v23 }
 0xb4d   : > { %3260 = vmatmul.bf16.gmra.mxu0 %v3233_v40 }
 0xb5d   : > { %3265 = vmatmul.bf16.gmra.mxu0 %v3234_v59 }
 0xb6d   : > { %3270 = vmatmul.bf16.gmra.mxu0 %v3235_v32 }
 0xbba   : > { %v3256_v35 = vpop.f32.mrf.mxu0 }
 0xbbb   : > { %v3257_v44 = vadd.f32 %v3795_v24, %v3256_v35 }
 0xbbd   : > { %3276 = vst.msk [vmem:[%s5678_s24] sm:$0xff] %vm543_vm1, %v3257_v44 }
 0xbc2   : > { %v3258_v36 = vpop.f32.mrf.mxu0 }
 0xbc3   : > { %v3259_v60 = vadd.f32 %v3795_v24, %v3258_v36 }
 0xbc4   : > { %v3335_v29 = vld [vmem:[%s5678_s24] sm:$0xff] (%p4226_p5) }
 0xbc5   : > { %3277 = vst.msk [vmem:[%s5678_s24 + $0x8] sm:$0xff] %vm543_vm1, %v3259_v60 }
 0xbc6   : > { %3336 = vst [vmem:[%s3292_s27] sm:$0xff] (%p4226_p5), %v3335_v29 }
 0xbca   : > { %v3261_v4 = vpop.f32.mrf.mxu0 }
 0xbcb   : > { %v3262_v48 = vadd.f32 %v3795_v24, %v3261_v4 }
 0xbcc   : > { %v3337_v49 = vld [vmem:[%s5678_s24 + $0x8] sm:$0xff] (%p4226_p5) }
 0xbcd   : > { %3278 = vst.msk [vmem:[%s5678_s24 + $0x10] sm:$0xff] %vm543_vm1, %v3262_v48 }
 0xbce   : > { %3338 = vst [vmem:[%s3292_s27 + $0x10] sm:$0xff] (%p4226_p5), %v3337_v49 }
 0xbd2   : > { %v3263_v37 = vpop.f32.mrf.mxu0 }
 0xbd3   : > { %v3264_v56 = vadd.f32 %v3795_v24, %v3263_v37 }
 0xbd4   : > { %v3339_v46 = vld [vmem:[%s5678_s24 + $0x10] sm:$0xff] (%p4226_p5) }
 0xbd5   : > { %3279 = vst.msk [vmem:[%s5678_s24 + $0x18] sm:$0xff] %vm543_vm1, %v3264_v56 }
 0xbd6   : > { %3340 = vst [vmem:[%s3292_s27 + $0x20] sm:$0xff] (%p4226_p5), %v3339_v46 }
 0xbda   : > { %v3266_v62 = vpop.f32.mrf.mxu0 }
 0xbdb   : > { %v3267_v14 = vadd.f32 %v3795_v24, %v3266_v62 }
 0xbdc   : > { %v3341_v41 = vld [vmem:[%s5678_s24 + $0x18] sm:$0xff] (%p4226_p5) }
 0xbdd   : > { %3280 = vst.msk [vmem:[%s5678_s24 + $0x20] sm:$0xff] %vm543_vm1, %v3267_v14 }
 0xbde   : > { %3342 = vst [vmem:[%s3292_s27 + $0x30] sm:$0xff] (%p4226_p5), %v3341_v41 }
 0xbe2   : > { %v3268_v1 = vpop.f32.mrf.mxu0 }
 0xbe3   : > { %v3269_v5 = vadd.f32 %v3795_v24, %v3268_v1 }
 0xbe4   : > { %v3343_v8 = vld [vmem:[%s5678_s24 + $0x20] sm:$0xff] (%p4226_p5) }
 0xbe5   : > { %3281 = vst.msk [vmem:[%s5678_s24 + $0x28] sm:$0xff] %vm543_vm1, %v3269_v5 }
 0xbe6   : > { %3344 = vst [vmem:[%s3292_s27 + $0x40] sm:$0xff] (%p4226_p5), %v3343_v8 }
 0xbea   : > { %v3271_v10 = vpop.f32.mrf.mxu0 }
 0xbeb   : > { %v3272_v9 = vadd.f32 %v3795_v24, %v3271_v10 }
 0xbec   : > { %v3345_v21 = vld [vmem:[%s5678_s24 + $0x28] sm:$0xff] (%p4226_p5) }
 0xbed   : > { %3282 = vst.msk [vmem:[%s5678_s24 + $0x30] sm:$0xff] %vm543_vm1, %v3272_v9 }
 0xbee   : > { %3346 = vst [vmem:[%s3292_s27 + $0x50] sm:$0xff] (%p4226_p5), %v3345_v21 }
 0xbf1   : > { %3290 = sbr.rel (!%p4226_p5) target bundleno = 3070 (0xbfe), region = 106 }
 0xbf2   : > { %v3273_v16 = vpop.f32.mrf.mxu0 }
 0xbf3   : > { %v3274_v55 = vadd.f32 %v3795_v24, %v3273_v16 }
 0xbf4   : > { %v3347_v38 = vld [vmem:[%s5678_s24 + $0x30] sm:$0xff] (%p4226_p5) }
 0xbf5   : > { %3283 = vst.msk [vmem:[%s5678_s24 + $0x38] sm:$0xff] %vm543_vm1, %v3274_v55 }
 0xbf6   : > { %3348 = vst [vmem:[%s3292_s27 + $0x60] sm:$0xff] %v3347_v38 }
 0xbfc   : > { %v3349_v20 = vld [vmem:[%s5678_s24 + $0x38] sm:$0xff] }
 0xbfd   : > { %3350 = vst [vmem:[%s3292_s27 + $0x70] sm:$0xff] %v3349_v20 }
 0xbfe PF: > { %p18_p13 = scmp.ge.s32.totalorder %s4210_s13, 4   ;;  %s5923_s30 = smov %s4130_s10 }
 0xbff   : > { %s5924_s10 = smov %s4220_s16  ;;  %s5925_s11 = smov %s4210_s13 }
 0xc00   :  { %20 = sbr.rel (!%p18_p13) target bundleno = 5 (0x5), region = 190 }
 0xc05   :  { %3366 = vsyncpa [#allocation7], 1 }
 0xc06   :  { %3368 = vsyncpa [#allocation7 + $0x1], 1 }
 0xc07   :  { %3369 = vsyncpa [#allocation9], 1 }

</bundles_post_ra>
